<compile_context>
chip_gen: v7x
topology: tpu7x:2x2x1
jax: 0.10.0
libtpu: 0.0.40
codegen_flags: <defaults>
</compile_context>

<pallas_src>
import functools

import jax
import jax.numpy as jnp
from jax import lax
from jax.experimental import pallas as pl
from jax.experimental.pallas import tpu as pltpu


def _round_up(v, m):
    return ((v + m - 1) // m) * m


# ---------------------------------------------------------------------------
# Fused RCAB kernel: one grid step == one image.
# ---------------------------------------------------------------------------
def _rcab_kernel(x_ref, w1_ref, b1_ref, w2_ref, b2_ref,
                 cw1_ref, cb1_ref, cw2_ref, cb2_ref,
                 o_ref, pad_a, pad_b, *, th):
    H, W, C = o_ref.shape
    Cp = w2_ref.shape[-1]
    Wp = pad_b.shape[1]              # = W + 16 ; interior columns are [8, 8+W)
    n_bands = H // th
    M = th * Wp                      # matmul M dim (full padded width per band)

    # ---- zero only the halo strips (cheap; redone every step => megacore-safe) --
    def zero_halo(buf):
        Kc = buf.shape[-1]
        side = jnp.zeros((H + 2, 8, Kc), jnp.float32)
        buf[:, 0:8, :] = side                         # left dead zone + halo col 7
        buf[:, W + 8:W + 16, :] = side                # halo col W+8 + right dead zone
        row = jnp.zeros((1, Wp, Kc), jnp.float32)
        buf[0:1, :, :] = row                          # top halo row
        buf[H + 1:H + 2, :, :] = row                  # bottom halo row

    zero_halo(pad_a)
    zero_halo(pad_b)

    # ---- x -> pad_a interior (native C, aligned store at column 8) ----
    def stage_x_band(bi):
        r0 = bi * th
        pad_a[pl.ds(1 + r0, th), 8:8 + W, :] = (
            x_ref[pl.ds(r0, th), :, :].astype(jnp.float32))

    # ---- 3x3 conv over one band of `th` output rows ----
    # One full-width slab load per dy; dx taps via pltpu.roll.  Non-interior
    # output columns hold garbage and are sliced away.
    def conv_band(src, w_ref, b_ref, r0, relu):
        Kc = src.shape[-1]
        Nc = w_ref.shape[-1]
        acc = jnp.zeros((M, Nc), jnp.float32)
        for dy in range(3):
            slab = src[pl.ds(r0 + dy, th), :, :].reshape(M, Kc)
            for dx in range(3):
                if dx == 1:
                    tap = slab
                else:
                    tap = pltpu.roll(slab, (1 - dx) % M, axis=0)
                acc = acc + jnp.dot(tap, w_ref[dy, dx],
                                    preferred_element_type=jnp.float32)
        acc = acc + b_ref[...]                        # bias once, after the taps
        if relu:
            acc = jnp.maximum(acc, 0.0)
        return acc.reshape(th, Wp, Nc)[:, 8:8 + W, :]   # (th, W, Nc) interior only

    # ---- conv1 + ReLU -> pad_b interior (x staging fused, 1-band lookahead) ----
    stage_x_band(0)

    def c1_body(bi, carry):
        @pl.when(bi + 1 < n_bands)
        def _():
            stage_x_band(bi + 1)
        r0 = bi * th
        pad_b[pl.ds(1 + r0, th), 8:8 + W, :] = conv_band(
            pad_a, w1_ref, b1_ref, r0, relu=True)
        return carry

    lax.fori_loop(0, n_bands, c1_body, 0)

    # ---- conv2 -> pad_a interior (res at native C) + global channel sums ----
    def c2_body(bi, pooled):
        r0 = bi * th
        res_b = conv_band(pad_b, w2_ref, b2_ref, r0, relu=False)   # (th, W, Cp)
        pad_a[pl.ds(1 + r0, th), 8:8 + W, :] = res_b[:, :, :C]
        return pooled + jnp.sum(res_b.reshape(th * W, Cp), axis=0, keepdims=True)

    pooled = lax.fori_loop(0, n_bands, c2_body, jnp.zeros((1, Cp), jnp.float32))

    # ---- CALayer: avg-pool -> 1x1 squeeze -> ReLU -> 1x1 excite -> sigmoid ----
    pooled = pooled * (1.0 / (H * W))
    y = jnp.dot(pooled, cw1_ref[...], preferred_element_type=jnp.float32) + cb1_ref[...]
    y = jnp.maximum(y, 0.0)
    y = jnp.dot(y, cw2_ref[...], preferred_element_type=jnp.float32) + cb2_ref[...]
    scale = jax.nn.sigmoid(y)[:, :C].reshape(1, 1, C)

    # ---- out = res * scale + x  (all native C, written band by band) ----
    def out_body(bi, carry):
        r0 = bi * th
        res_b = pad_a[pl.ds(1 + r0, th), 8:8 + W, :]
        x_b = x_ref[pl.ds(r0, th), :, :].astype(jnp.float32)
        o_ref[pl.ds(r0, th), :, :] = (res_b * scale + x_b).astype(o_ref.dtype)
        return carry

    lax.fori_loop(0, n_bands, out_body, 0)


# ---------------------------------------------------------------------------
# Public forward (NCHW in / NCHW out, like PyTorch).
# ---------------------------------------------------------------------------
def rcab_forward(x_nchw, params, *, band_rows=8):
    B, C, H, W = x_nchw.shape
    Cr = params["ca_w1"].shape[1]
    Cp = _round_up(C, 128)
    Crp = _round_up(Cr, 128)
    Wp = W + 16                      # interior at cols [8, 8+W); halos at 7 and W+8

    # Band height: a divisor of H, capped so th*Wp*Cp f32 accumulator ~<= 16 vregs.
    max_rows = max(1, min(band_rows, max(1, 128 // Wp)))
    th = 1
    for d in range(1, min(max_rows, H) + 1):
        if H % d == 0:
            th = d

    # NCHW -> NHWC; NO channel padding of the activations (native-C HBM I/O).
    x_nhwc = jnp.transpose(x_nchw, (0, 2, 3, 1))

    # Pad only the weights (once).  conv1 keeps its *input* channels native.
    w1p = jnp.pad(params["conv1_w"], ((0, 0), (0, 0), (0, 0), (0, Cp - C)))
    b1p = jnp.pad(params["conv1_b"], (0, Cp - C)).reshape(1, Cp)
    w2p = jnp.pad(params["conv2_w"], ((0, 0), (0, 0), (0, Cp - C), (0, Cp - C)))
    b2p = jnp.pad(params["conv2_b"], (0, Cp - C)).reshape(1, Cp)
    cw1p = jnp.pad(params["ca_w1"], ((0, Cp - C), (0, Crp - Cr)))
    cb1p = jnp.pad(params["ca_b1"], (0, Crp - Cr)).reshape(1, Crp)
    cw2p = jnp.pad(params["ca_w2"], ((0, Crp - Cr), (0, Cp - C)))
    cb2p = jnp.pad(params["ca_b2"], (0, Cp - C)).reshape(1, Cp)

    # VMEM budget derived from actual sizes (scratch + double-buffered blocks/weights).
    f32 = 4
    bytes_scratch = (H + 2) * Wp * (C + Cp) * f32
    bytes_blocks = 2 * 2 * H * W * C * x_nchw.dtype.itemsize       # x + out blocks
    bytes_weights = 2 * f32 * (9 * C * Cp + 9 * Cp * Cp + 2 * Cp * Crp
                               + 3 * Cp + Crp)
    vmem_limit = int(1.5 * (bytes_scratch + bytes_blocks + bytes_weights)) + (2 << 20)
    vmem_limit = min(max(vmem_limit, 16 << 20), 96 << 20)

    kernel = functools.partial(_rcab_kernel, th=th)
    out_nhwc = pl.pallas_call(
        kernel,
        out_shape=jax.ShapeDtypeStruct((B, H, W, C), x_nchw.dtype),
        grid_spec=pltpu.PrefetchScalarGridSpec(
            num_scalar_prefetch=0,
            grid=(B,),
            in_specs=[
                pl.BlockSpec((None, H, W, C), lambda b: (b, 0, 0, 0)),   # x (native C)
                pl.BlockSpec((3, 3, C, Cp), lambda b: (0, 0, 0, 0)),     # conv1 w
                pl.BlockSpec((1, Cp), lambda b: (0, 0)),                 # conv1 b
                pl.BlockSpec((3, 3, Cp, Cp), lambda b: (0, 0, 0, 0)),    # conv2 w
                pl.BlockSpec((1, Cp), lambda b: (0, 0)),                 # conv2 b
                pl.BlockSpec((Cp, Crp), lambda b: (0, 0)),               # ca w1
                pl.BlockSpec((1, Crp), lambda b: (0, 0)),                # ca b1
                pl.BlockSpec((Crp, Cp), lambda b: (0, 0)),               # ca w2
                pl.BlockSpec((1, Cp), lambda b: (0, 0)),                 # ca b2
            ],
            out_specs=pl.BlockSpec((None, H, W, C), lambda b: (b, 0, 0, 0)),
            scratch_shapes=[
                pltpu.VMEM((H + 2, Wp, C), jnp.float32),    # pad_a: x staging, then res
                pltpu.VMEM((H + 2, Wp, Cp), jnp.float32),   # pad_b: relu(conv1)
            ],
        ),
        compiler_params=pltpu.CompilerParams(
            dimension_semantics=("parallel",),
            vmem_limit_bytes=vmem_limit,
        ),
    )(x_nhwc, w1p, b1p, w2p, b2p, cw1p, cb1p, cw2p, cb2p)

    return jnp.transpose(out_nhwc, (0, 3, 1, 2))            # NHWC -> NCHW


# ---------------------------------------------------------------------------
# Pure-JAX reference for correctness checking.
# ---------------------------------------------------------------------------
def rcab_reference(x_nchw, params):
    x = jnp.transpose(x_nchw, (0, 2, 3, 1))
    dn = ("NHWC", "HWIO", "NHWC")
    r = jax.lax.conv_general_dilated(x, params["conv1_w"], (1, 1), "SAME",
                                     dimension_numbers=dn) + params["conv1_b"]
    r = jax.nn.relu(r)
    r = jax.lax.conv_general_dilated(r, params["conv2_w"], (1, 1), "SAME",
                                     dimension_numbers=dn) + params["conv2_b"]
    pooled = jnp.mean(r, axis=(1, 2))                        # (B, C)
    y = jax.nn.relu(pooled @ params["ca_w1"] + params["ca_b1"])
    y = jax.nn.sigmoid(y @ params["ca_w2"] + params["ca_b2"])
    out = r * y[:, None, None, :] + x
    return jnp.transpose(out, (0, 3, 1, 2))


def init_params(key, n_feat, reduction):
    c_red = n_feat // reduction
    ks = jax.random.split(key, 6)
    s = 0.1
    return {
        # conv weights stored HWIO (kernel-native layout for this script)
        "conv1_w": s * jax.random.normal(ks[0], (3, 3, n_feat, n_feat), jnp.float32),
        "conv1_b": s * jax.random.normal(ks[1], (n_feat,), jnp.float32),
        "conv2_w": s * jax.random.normal(ks[2], (3, 3, n_feat, n_feat), jnp.float32),
        "conv2_b": s * jax.random.normal(ks[3], (n_feat,), jnp.float32),
        # CALayer 1x1 convs as dense matrices (C, Cr) and (Cr, C)
        "ca_w1": s * jax.random.normal(ks[4], (n_feat, c_red), jnp.float32),
        "ca_b1": jnp.zeros((c_red,), jnp.float32),
        "ca_w2": s * jax.random.normal(ks[5], (c_red, n_feat), jnp.float32),
        "ca_b2": jnp.zeros((n_feat,), jnp.float32),
    }


if __name__ == "__main__":
    B, C, H, W = 2, 32, 16, 16          # n_feat=32, reduction=16 -> squeeze dim 2
    reduction = 16

    key = jax.random.PRNGKey(0)
    k_x, k_p = jax.random.split(key)
    x = jax.random.normal(k_x, (B, C, H, W), jnp.float32)    # NCHW, like PyTorch
    params = init_params(k_p, C, reduction)

    out = jax.block_until_ready(rcab_forward(x, params))
    ref = jax.block_until_ready(rcab_reference(x, params))

    assert out.shape == (B, C, H, W)
    assert jnp.allclose(out, ref, atol=1e-4, rtol=1e-4), "mismatch vs reference"
    print("KERNEL_OK")
</pallas_src>

<mosaic_0001>
module attributes {stable_mosaic.version = 11 : i64} {
  func.func @_rcab_kernel(%arg0: i32, %arg1: memref<1x16x16x32xf32, #tpu.memory_space<vmem>>, %arg2: memref<3x3x32x128xf32, #tpu.memory_space<vmem>>, %arg3: memref<1x128xf32, #tpu.memory_space<vmem>>, %arg4: memref<3x3x128x128xf32, #tpu.memory_space<vmem>>, %arg5: memref<1x128xf32, #tpu.memory_space<vmem>>, %arg6: memref<128x128xf32, #tpu.memory_space<vmem>>, %arg7: memref<1x128xf32, #tpu.memory_space<vmem>>, %arg8: memref<128x128xf32, #tpu.memory_space<vmem>>, %arg9: memref<1x128xf32, #tpu.memory_space<vmem>>, %arg10: memref<1x16x16x32xf32, #tpu.memory_space<vmem>>, %arg11: memref<18x32x32xf32, #tpu.memory_space<vmem>>, %arg12: memref<18x32x128xf32, #tpu.memory_space<vmem>>) attributes {dimension_semantics = [#tpu.dimension_semantics<parallel>], iteration_bounds = array<i64: 2>, scalar_prefetch = 0 : i64, scratch_operands = 2 : i64, tpu.core_type = #tpu.core_type<tc>, window_params = [{transform_indices = @transform_0, window_bounds = array<i64: 1, 16, 16, 32>}, {pipeline_mode = #tpu.pipeline_mode<synchronous>, transform_indices = @transform_1, window_bounds = array<i64: 3, 3, 32, 128>}, {pipeline_mode = #tpu.pipeline_mode<synchronous>, transform_indices = @transform_2, window_bounds = array<i64: 1, 128>}, {pipeline_mode = #tpu.pipeline_mode<synchronous>, transform_indices = @transform_3, window_bounds = array<i64: 3, 3, 128, 128>}, {pipeline_mode = #tpu.pipeline_mode<synchronous>, transform_indices = @transform_4, window_bounds = array<i64: 1, 128>}, {pipeline_mode = #tpu.pipeline_mode<synchronous>, transform_indices = @transform_5, window_bounds = array<i64: 128, 128>}, {pipeline_mode = #tpu.pipeline_mode<synchronous>, transform_indices = @transform_6, window_bounds = array<i64: 1, 128>}, {pipeline_mode = #tpu.pipeline_mode<synchronous>, transform_indices = @transform_7, window_bounds = array<i64: 128, 128>}, {pipeline_mode = #tpu.pipeline_mode<synchronous>, transform_indices = @transform_8, window_bounds = array<i64: 1, 128>}, {transform_indices = @transform_9, window_bounds = array<i64: 1, 16, 16, 32>}]} {
    %cst = arith.constant 0.000000e+00 : f32
    %0 = vector.broadcast %cst : f32 to vector<18x8x32xf32>
    %c0 = arith.constant 0 : index
    %c0_0 = arith.constant 0 : index
    %c0_1 = arith.constant 0 : index
    %1 = vector.load %arg11[%c0, %c0_0, %c0_1] : memref<18x32x32xf32, #tpu.memory_space<vmem>>, vector<18x8x32xf32>
    tpu.vector_store %arg11[%c0, %c0_0, %c0_1], %0 {strides = array<i32>} : memref<18x32x32xf32, #tpu.memory_space<vmem>>, vector<18x8x32xf32>,
    %c0_2 = arith.constant 0 : index
    %c24 = arith.constant 24 : index
    %c0_3 = arith.constant 0 : index
    %2 = vector.load %arg11[%c0_2, %c24, %c0_3] : memref<18x32x32xf32, #tpu.memory_space<vmem>>, vector<18x8x32xf32>
    tpu.vector_store %arg11[%c0_2, %c24, %c0_3], %0 {strides = array<i32>} : memref<18x32x32xf32, #tpu.memory_space<vmem>>, vector<18x8x32xf32>,
    %cst_4 = arith.constant 0.000000e+00 : f32
    %3 = vector.broadcast %cst_4 : f32 to vector<1x32x32xf32>
    %c0_5 = arith.constant 0 : index
    %c0_6 = arith.constant 0 : index
    %c0_7 = arith.constant 0 : index
    %4 = vector.load %arg11[%c0_5, %c0_6, %c0_7] : memref<18x32x32xf32, #tpu.memory_space<vmem>>, vector<1x32x32xf32>
    tpu.vector_store %arg11[%c0_5, %c0_6, %c0_7], %3 {strides = array<i32>} : memref<18x32x32xf32, #tpu.memory_space<vmem>>, vector<1x32x32xf32>,
    %c17 = arith.constant 17 : index
    %c0_8 = arith.constant 0 : index
    %c0_9 = arith.constant 0 : index
    %5 = vector.load %arg11[%c17, %c0_8, %c0_9] : memref<18x32x32xf32, #tpu.memory_space<vmem>>, vector<1x32x32xf32>
    tpu.vector_store %arg11[%c17, %c0_8, %c0_9], %3 {strides = array<i32>} : memref<18x32x32xf32, #tpu.memory_space<vmem>>, vector<1x32x32xf32>,
    %cst_10 = arith.constant 0.000000e+00 : f32
    %6 = vector.broadcast %cst_10 : f32 to vector<18x8x128xf32>
    %c0_11 = arith.constant 0 : index
    %c0_12 = arith.constant 0 : index
    %c0_13 = arith.constant 0 : index
    %7 = vector.load %arg12[%c0_11, %c0_12, %c0_13] : memref<18x32x128xf32, #tpu.memory_space<vmem>>, vector<18x8x128xf32>
    tpu.vector_store %arg12[%c0_11, %c0_12, %c0_13], %6 {strides = array<i32>} : memref<18x32x128xf32, #tpu.memory_space<vmem>>, vector<18x8x128xf32>,
    %c0_14 = arith.constant 0 : index
    %c24_15 = arith.constant 24 : index
    %c0_16 = arith.constant 0 : index
    %8 = vector.load %arg12[%c0_14, %c24_15, %c0_16] : memref<18x32x128xf32, #tpu.memory_space<vmem>>, vector<18x8x128xf32>
    tpu.vector_store %arg12[%c0_14, %c24_15, %c0_16], %6 {strides = array<i32>} : memref<18x32x128xf32, #tpu.memory_space<vmem>>, vector<18x8x128xf32>,
    %cst_17 = arith.constant 0.000000e+00 : f32
    %9 = vector.broadcast %cst_17 : f32 to vector<1x32x128xf32>
    %c0_18 = arith.constant 0 : index
    %c0_19 = arith.constant 0 : index
    %c0_20 = arith.constant 0 : index
    %10 = vector.load %arg12[%c0_18, %c0_19, %c0_20] : memref<18x32x128xf32, #tpu.memory_space<vmem>>, vector<1x32x128xf32>
    tpu.vector_store %arg12[%c0_18, %c0_19, %c0_20], %9 {strides = array<i32>} : memref<18x32x128xf32, #tpu.memory_space<vmem>>, vector<1x32x128xf32>,
    %c17_21 = arith.constant 17 : index
    %c0_22 = arith.constant 0 : index
    %c0_23 = arith.constant 0 : index
    %11 = vector.load %arg12[%c17_21, %c0_22, %c0_23] : memref<18x32x128xf32, #tpu.memory_space<vmem>>, vector<1x32x128xf32>
    tpu.vector_store %arg12[%c17_21, %c0_22, %c0_23], %9 {strides = array<i32>} : memref<18x32x128xf32, #tpu.memory_space<vmem>>, vector<1x32x128xf32>,
    %c0_24 = arith.constant 0 : index
    %c0_25 = arith.constant 0 : index
    %c0_26 = arith.constant 0 : index
    %c0_27 = arith.constant 0 : index
    %12 = vector.load %arg1[%c0_24, %c0_25, %c0_26, %c0_27] : memref<1x16x16x32xf32, #tpu.memory_space<vmem>>, vector<1x4x16x32xf32>
    %13 = vector.shape_cast %12 : vector<1x4x16x32xf32> to vector<4x16x32xf32>
    %c1 = arith.constant 1 : index
    %c8 = arith.constant 8 : index
    %c0_28 = arith.constant 0 : index
    %14 = vector.load %arg11[%c1, %c8, %c0_28] : memref<18x32x32xf32, #tpu.memory_space<vmem>>, vector<4x16x32xf32>
    tpu.vector_store %arg11[%c1, %c8, %c0_28], %13 {strides = array<i32>} : memref<18x32x32xf32, #tpu.memory_space<vmem>>, vector<4x16x32xf32>,
    %c0_i32 = arith.constant 0 : i32
    %c4_i32 = arith.constant 4 : i32
    %15 = arith.addi %c0_i32, %c4_i32 : i32
    %c1_i32 = arith.constant 1 : i32
    scf.for %arg13 = %c0_i32 to %15 step %c1_i32  : i32 {
      %c1_i32_52 = arith.constant 1 : i32
      %39 = arith.addi %arg13, %c1_i32_52 : i32
      %c4_i32_53 = arith.constant 4 : i32
      %40 = arith.cmpi slt, %39, %c4_i32_53 : i32
      %41 = arith.extui %40 : i1 to i32
      %c0_i32_54 = arith.constant 0 : i32
      %42 = arith.cmpi ne, %41, %c0_i32_54 : i32
      scf.if %42 {
        %c1_i32_120 = arith.constant 1 : i32
        %109 = arith.addi %arg13, %c1_i32_120 : i32
        %c4_i32_121 = arith.constant 4 : i32
        %110 = arith.muli %109, %c4_i32_121 : i32
        %c0_122 = arith.constant 0 : index
        %111 = arith.index_cast %110 : i32 to index
        %c0_123 = arith.constant 0 : index
        %c0_124 = arith.constant 0 : index
        %112 = vector.load %arg1[%c0_122, %111, %c0_123, %c0_124] : memref<1x16x16x32xf32, #tpu.memory_space<vmem>>, vector<1x4x16x32xf32>
        %113 = vector.shape_cast %112 : vector<1x4x16x32xf32> to vector<4x16x32xf32>
        %c1_i32_125 = arith.constant 1 : i32
        %114 = arith.addi %c1_i32_125, %110 : i32
        %115 = arith.index_cast %114 : i32 to index
        %c8_126 = arith.constant 8 : index
        %c0_127 = arith.constant 0 : index
        %116 = vector.load %arg11[%115, %c8_126, %c0_127] : memref<18x32x32xf32, #tpu.memory_space<vmem>>, vector<4x16x32xf32>
        tpu.vector_store %arg11[%115, %c8_126, %c0_127], %113 {strides = array<i32>} : memref<18x32x32xf32, #tpu.memory_space<vmem>>, vector<4x16x32xf32>,
      } else {
      }
      %c4_i32_55 = arith.constant 4 : i32
      %43 = arith.muli %arg13, %c4_i32_55 : i32
      %cst_56 = arith.constant 0.000000e+00 : f32
      %44 = vector.broadcast %cst_56 : f32 to vector<128x128xf32>
      %c0_i32_57 = arith.constant 0 : i32
      %45 = arith.addi %43, %c0_i32_57 : i32
      %46 = arith.index_cast %45 : i32 to index
      %c0_58 = arith.constant 0 : index
      %c0_59 = arith.constant 0 : index
      %47 = vector.load %arg11[%46, %c0_58, %c0_59] : memref<18x32x32xf32, #tpu.memory_space<vmem>>, vector<4x32x32xf32>
      %48 = vector.shape_cast %47 : vector<4x32x32xf32> to vector<128x32xf32>
      %c1_i32_60 = arith.constant 1 : i32
      %49 = tpu.dynamic_rotate %48 by %c1_i32_60 dim 0 : vector<128x32xf32>, i32 -> vector<128x32xf32>
      %c0_61 = arith.constant 0 : index
      %c0_62 = arith.constant 0 : index
      %c0_63 = arith.constant 0 : index
      %c0_64 = arith.constant 0 : index
      %50 = vector.load %arg2[%c0_61, %c0_62, %c0_63, %c0_64] : memref<3x3x32x128xf32, #tpu.memory_space<vmem>>, vector<1x1x32x128xf32>
      %51 = vector.shape_cast %50 : vector<1x1x32x128xf32> to vector<32x128xf32>
      %cst_65 = arith.constant dense<0.000000e+00> : vector<128x128xf32>
      %52 = tpu.matmul %49, %51, %cst_65 {dimension_numbers = #tpu.dot_dimension_numbers<[1], [0], [0], [1], [0, 0, 1, 1], [], []>} : vector<128x32xf32>, vector<32x128xf32>, vector<128x128xf32> -> vector<128x128xf32>
      %53 = arith.addf %44, %52 : vector<128x128xf32>
      %c0_66 = arith.constant 0 : index
      %c1_67 = arith.constant 1 : index
      %c0_68 = arith.constant 0 : index
      %c0_69 = arith.constant 0 : index
      %54 = vector.load %arg2[%c0_66, %c1_67, %c0_68, %c0_69] : memref<3x3x32x128xf32, #tpu.memory_space<vmem>>, vector<1x1x32x128xf32>
      %55 = vector.shape_cast %54 : vector<1x1x32x128xf32> to vector<32x128xf32>
      %cst_70 = arith.constant dense<0.000000e+00> : vector<128x128xf32>
      %56 = tpu.matmul %48, %55, %cst_70 {dimension_numbers = #tpu.dot_dimension_numbers<[1], [0], [0], [1], [0, 0, 1, 1], [], []>} : vector<128x32xf32>, vector<32x128xf32>, vector<128x128xf32> -> vector<128x128xf32>
      %57 = arith.addf %53, %56 : vector<128x128xf32>
      %c127_i32 = arith.constant 127 : i32
      %58 = tpu.dynamic_rotate %48 by %c127_i32 dim 0 : vector<128x32xf32>, i32 -> vector<128x32xf32>
      %c0_71 = arith.constant 0 : index
      %c2 = arith.constant 2 : index
      %c0_72 = arith.constant 0 : index
      %c0_73 = arith.constant 0 : index
      %59 = vector.load %arg2[%c0_71, %c2, %c0_72, %c0_73] : memref<3x3x32x128xf32, #tpu.memory_space<vmem>>, vector<1x1x32x128xf32>
      %60 = vector.shape_cast %59 : vector<1x1x32x128xf32> to vector<32x128xf32>
      %cst_74 = arith.constant dense<0.000000e+00> : vector<128x128xf32>
      %61 = tpu.matmul %58, %60, %cst_74 {dimension_numbers = #tpu.dot_dimension_numbers<[1], [0], [0], [1], [0, 0, 1, 1], [], []>} : vector<128x32xf32>, vector<32x128xf32>, vector<128x128xf32> -> vector<128x128xf32>
      %62 = arith.addf %57, %61 : vector<128x128xf32>
      %c1_i32_75 = arith.constant 1 : i32
      %63 = arith.addi %43, %c1_i32_75 : i32
      %64 = arith.index_cast %63 : i32 to index
      %c0_76 = arith.constant 0 : index
      %c0_77 = arith.constant 0 : index
      %65 = vector.load %arg11[%64, %c0_76, %c0_77] : memref<18x32x32xf32, #tpu.memory_space<vmem>>, vector<4x32x32xf32>
      %66 = vector.shape_cast %65 : vector<4x32x32xf32> to vector<128x32xf32>
      %c1_i32_78 = arith.constant 1 : i32
      %67 = tpu.dynamic_rotate %66 by %c1_i32_78 dim 0 : vector<128x32xf32>, i32 -> vector<128x32xf32>
      %c1_79 = arith.constant 1 : index
      %c0_80 = arith.constant 0 : index
      %c0_81 = arith.constant 0 : index
      %c0_82 = arith.constant 0 : index
      %68 = vector.load %arg2[%c1_79, %c0_80, %c0_81, %c0_82] : memref<3x3x32x128xf32, #tpu.memory_space<vmem>>, vector<1x1x32x128xf32>
      %69 = vector.shape_cast %68 : vector<1x1x32x128xf32> to vector<32x128xf32>
      %cst_83 = arith.constant dense<0.000000e+00> : vector<128x128xf32>
      %70 = tpu.matmul %67, %69, %cst_83 {dimension_numbers = #tpu.dot_dimension_numbers<[1], [0], [0], [1], [0, 0, 1, 1], [], []>} : vector<128x32xf32>, vector<32x128xf32>, vector<128x128xf32> -> vector<128x128xf32>
      %71 = arith.addf %62, %70 : vector<128x128xf32>
      %c1_84 = arith.constant 1 : index
      %c1_85 = arith.constant 1 : index
      %c0_86 = arith.constant 0 : index
      %c0_87 = arith.constant 0 : index
      %72 = vector.load %arg2[%c1_84, %c1_85, %c0_86, %c0_87] : memref<3x3x32x128xf32, #tpu.memory_space<vmem>>, vector<1x1x32x128xf32>
      %73 = vector.shape_cast %72 : vector<1x1x32x128xf32> to vector<32x128xf32>
      %cst_88 = arith.constant dense<0.000000e+00> : vector<128x128xf32>
      %74 = tpu.matmul %66, %73, %cst_88 {dimension_numbers = #tpu.dot_dimension_numbers<[1], [0], [0], [1], [0, 0, 1, 1], [], []>} : vector<128x32xf32>, vector<32x128xf32>, vector<128x128xf32> -> vector<128x128xf32>
      %75 = arith.addf %71, %74 : vector<128x128xf32>
      %c127_i32_89 = arith.constant 127 : i32
      %76 = tpu.dynamic_rotate %66 by %c127_i32_89 dim 0 : vector<128x32xf32>, i32 -> vector<128x32xf32>
      %c1_90 = arith.constant 1 : index
      %c2_91 = arith.constant 2 : index
      %c0_92 = arith.constant 0 : index
      %c0_93 = arith.constant 0 : index
      %77 = vector.load %arg2[%c1_90, %c2_91, %c0_92, %c0_93] : memref<3x3x32x128xf32, #tpu.memory_space<vmem>>, vector<1x1x32x128xf32>
      %78 = vector.shape_cast %77 : vector<1x1x32x128xf32> to vector<32x128xf32>
      %cst_94 = arith.constant dense<0.000000e+00> : vector<128x128xf32>
      %79 = tpu.matmul %76, %78, %cst_94 {dimension_numbers = #tpu.dot_dimension_numbers<[1], [0], [0], [1], [0, 0, 1, 1], [], []>} : vector<128x32xf32>, vector<32x128xf32>, vector<128x128xf32> -> vector<128x128xf32>
      %80 = arith.addf %75, %79 : vector<128x128xf32>
      %c2_i32 = arith.constant 2 : i32
      %81 = arith.addi %43, %c2_i32 : i32
      %82 = arith.index_cast %81 : i32 to index
      %c0_95 = arith.constant 0 : index
      %c0_96 = arith.constant 0 : index
      %83 = vector.load %arg11[%82, %c0_95, %c0_96] : memref<18x32x32xf32, #tpu.memory_space<vmem>>, vector<4x32x32xf32>
      %84 = vector.shape_cast %83 : vector<4x32x32xf32> to vector<128x32xf32>
      %c1_i32_97 = arith.constant 1 : i32
      %85 = tpu.dynamic_rotate %84 by %c1_i32_97 dim 0 : vector<128x32xf32>, i32 -> vector<128x32xf32>
      %c2_98 = arith.constant 2 : index
      %c0_99 = arith.constant 0 : index
      %c0_100 = arith.constant 0 : index
      %c0_101 = arith.constant 0 : index
      %86 = vector.load %arg2[%c2_98, %c0_99, %c0_100, %c0_101] : memref<3x3x32x128xf32, #tpu.memory_space<vmem>>, vector<1x1x32x128xf32>
      %87 = vector.shape_cast %86 : vector<1x1x32x128xf32> to vector<32x128xf32>
      %cst_102 = arith.constant dense<0.000000e+00> : vector<128x128xf32>
      %88 = tpu.matmul %85, %87, %cst_102 {dimension_numbers = #tpu.dot_dimension_numbers<[1], [0], [0], [1], [0, 0, 1, 1], [], []>} : vector<128x32xf32>, vector<32x128xf32>, vector<128x128xf32> -> vector<128x128xf32>
      %89 = arith.addf %80, %88 : vector<128x128xf32>
      %c2_103 = arith.constant 2 : index
      %c1_104 = arith.constant 1 : index
      %c0_105 = arith.constant 0 : index
      %c0_106 = arith.constant 0 : index
      %90 = vector.load %arg2[%c2_103, %c1_104, %c0_105, %c0_106] : memref<3x3x32x128xf32, #tpu.memory_space<vmem>>, vector<1x1x32x128xf32>
      %91 = vector.shape_cast %90 : vector<1x1x32x128xf32> to vector<32x128xf32>
      %cst_107 = arith.constant dense<0.000000e+00> : vector<128x128xf32>
      %92 = tpu.matmul %84, %91, %cst_107 {dimension_numbers = #tpu.dot_dimension_numbers<[1], [0], [0], [1], [0, 0, 1, 1], [], []>} : vector<128x32xf32>, vector<32x128xf32>, vector<128x128xf32> -> vector<128x128xf32>
      %93 = arith.addf %89, %92 : vector<128x128xf32>
      %c127_i32_108 = arith.constant 127 : i32
      %94 = tpu.dynamic_rotate %84 by %c127_i32_108 dim 0 : vector<128x32xf32>, i32 -> vector<128x32xf32>
      %c2_109 = arith.constant 2 : index
      %c2_110 = arith.constant 2 : index
      %c0_111 = arith.constant 0 : index
      %c0_112 = arith.constant 0 : index
      %95 = vector.load %arg2[%c2_109, %c2_110, %c0_111, %c0_112] : memref<3x3x32x128xf32, #tpu.memory_space<vmem>>, vector<1x1x32x128xf32>
      %96 = vector.shape_cast %95 : vector<1x1x32x128xf32> to vector<32x128xf32>
      %cst_113 = arith.constant dense<0.000000e+00> : vector<128x128xf32>
      %97 = tpu.matmul %94, %96, %cst_113 {dimension_numbers = #tpu.dot_dimension_numbers<[1], [0], [0], [1], [0, 0, 1, 1], [], []>} : vector<128x32xf32>, vector<32x128xf32>, vector<128x128xf32> -> vector<128x128xf32>
      %98 = arith.addf %93, %97 : vector<128x128xf32>
      %c0_114 = arith.constant 0 : index
      %c0_115 = arith.constant 0 : index
      %99 = vector.load %arg3[%c0_114, %c0_115] : memref<1x128xf32, #tpu.memory_space<vmem>>, vector<1x128xf32>
      %100 = vector.broadcast %99 : vector<1x128xf32> to vector<128x128xf32>
      %101 = arith.addf %98, %100 : vector<128x128xf32>
      %cst_116 = arith.constant 0.000000e+00 : f32
      %102 = vector.broadcast %cst_116 : f32 to vector<128x128xf32>
      %103 = arith.maximumf %101, %102 : vector<128x128xf32>
      %104 = vector.shape_cast %103 : vector<128x128xf32> to vector<4x32x128xf32>
      %105 = vector.extract_strided_slice %104 {offsets = [0, 8, 0], sizes = [4, 16, 128], strides = [1, 1, 1]} : vector<4x32x128xf32> to vector<4x16x128xf32>
      %c1_i32_117 = arith.constant 1 : i32
      %106 = arith.addi %c1_i32_117, %43 : i32
      %107 = arith.index_cast %106 : i32 to index
      %c8_118 = arith.constant 8 : index
      %c0_119 = arith.constant 0 : index
      %108 = vector.load %arg12[%107, %c8_118, %c0_119] : memref<18x32x128xf32, #tpu.memory_space<vmem>>, vector<4x16x128xf32>
      tpu.vector_store %arg12[%107, %c8_118, %c0_119], %105 {strides = array<i32>} : memref<18x32x128xf32, #tpu.memory_space<vmem>>, vector<4x16x128xf32>,
    }
    %c4_i32_29 = arith.constant 4 : i32
    %cst_30 = arith.constant 0.000000e+00 : f32
    %16 = vector.broadcast %cst_30 : f32 to vector<1x128xf32>
    %c0_i32_31 = arith.constant 0 : i32
    %c4_i32_32 = arith.constant 4 : i32
    %17 = arith.addi %c0_i32_31, %c4_i32_32 : i32
    %c1_i32_33 = arith.constant 1 : i32
    %18 = scf.for %arg13 = %c0_i32_31 to %17 step %c1_i32_33 iter_args(%arg14 = %16) -> (vector<1x128xf32>)  : i32 {
      %c4_i32_52 = arith.constant 4 : i32
      %39 = arith.muli %arg13, %c4_i32_52 : i32
      %cst_53 = arith.constant 0.000000e+00 : f32
      %40 = vector.broadcast %cst_53 : f32 to vector<128x128xf32>
      %c0_i32_54 = arith.constant 0 : i32
      %41 = arith.addi %39, %c0_i32_54 : i32
      %42 = arith.index_cast %41 : i32 to index
      %c0_55 = arith.constant 0 : index
      %c0_56 = arith.constant 0 : index
      %43 = vector.load %arg12[%42, %c0_55, %c0_56] : memref<18x32x128xf32, #tpu.memory_space<vmem>>, vector<4x32x128xf32>
      %44 = vector.shape_cast %43 : vector<4x32x128xf32> to vector<128x128xf32>
      %c1_i32_57 = arith.constant 1 : i32
      %45 = tpu.dynamic_rotate %44 by %c1_i32_57 dim 0 : vector<128x128xf32>, i32 -> vector<128x128xf32>
      %c0_58 = arith.constant 0 : index
      %c0_59 = arith.constant 0 : index
      %c0_60 = arith.constant 0 : index
      %c0_61 = arith.constant 0 : index
      %46 = vector.load %arg4[%c0_58, %c0_59, %c0_60, %c0_61] : memref<3x3x128x128xf32, #tpu.memory_space<vmem>>, vector<1x1x128x128xf32>
      %47 = vector.shape_cast %46 : vector<1x1x128x128xf32> to vector<128x128xf32>
      %cst_62 = arith.constant dense<0.000000e+00> : vector<128x128xf32>
      %48 = tpu.matmul %45, %47, %cst_62 {dimension_numbers = #tpu.dot_dimension_numbers<[1], [0], [0], [1], [0, 0, 1, 1], [], []>} : vector<128x128xf32>, vector<128x128xf32>, vector<128x128xf32> -> vector<128x128xf32>
      %49 = arith.addf %40, %48 : vector<128x128xf32>
      %c0_63 = arith.constant 0 : index
      %c1_64 = arith.constant 1 : index
      %c0_65 = arith.constant 0 : index
      %c0_66 = arith.constant 0 : index
      %50 = vector.load %arg4[%c0_63, %c1_64, %c0_65, %c0_66] : memref<3x3x128x128xf32, #tpu.memory_space<vmem>>, vector<1x1x128x128xf32>
      %51 = vector.shape_cast %50 : vector<1x1x128x128xf32> to vector<128x128xf32>
      %cst_67 = arith.constant dense<0.000000e+00> : vector<128x128xf32>
      %52 = tpu.matmul %44, %51, %cst_67 {dimension_numbers = #tpu.dot_dimension_numbers<[1], [0], [0], [1], [0, 0, 1, 1], [], []>} : vector<128x128xf32>, vector<128x128xf32>, vector<128x128xf32> -> vector<128x128xf32>
      %53 = arith.addf %49, %52 : vector<128x128xf32>
      %c127_i32 = arith.constant 127 : i32
      %54 = tpu.dynamic_rotate %44 by %c127_i32 dim 0 : vector<128x128xf32>, i32 -> vector<128x128xf32>
      %c0_68 = arith.constant 0 : index
      %c2 = arith.constant 2 : index
      %c0_69 = arith.constant 0 : index
      %c0_70 = arith.constant 0 : index
      %55 = vector.load %arg4[%c0_68, %c2, %c0_69, %c0_70] : memref<3x3x128x128xf32, #tpu.memory_space<vmem>>, vector<1x1x128x128xf32>
      %56 = vector.shape_cast %55 : vector<1x1x128x128xf32> to vector<128x128xf32>
      %cst_71 = arith.constant dense<0.000000e+00> : vector<128x128xf32>
      %57 = tpu.matmul %54, %56, %cst_71 {dimension_numbers = #tpu.dot_dimension_numbers<[1], [0], [0], [1], [0, 0, 1, 1], [], []>} : vector<128x128xf32>, vector<128x128xf32>, vector<128x128xf32> -> vector<128x128xf32>
      %58 = arith.addf %53, %57 : vector<128x128xf32>
      %c1_i32_72 = arith.constant 1 : i32
      %59 = arith.addi %39, %c1_i32_72 : i32
      %60 = arith.index_cast %59 : i32 to index
      %c0_73 = arith.constant 0 : index
      %c0_74 = arith.constant 0 : index
      %61 = vector.load %arg12[%60, %c0_73, %c0_74] : memref<18x32x128xf32, #tpu.memory_space<vmem>>, vector<4x32x128xf32>
      %62 = vector.shape_cast %61 : vector<4x32x128xf32> to vector<128x128xf32>
      %c1_i32_75 = arith.constant 1 : i32
      %63 = tpu.dynamic_rotate %62 by %c1_i32_75 dim 0 : vector<128x128xf32>, i32 -> vector<128x128xf32>
      %c1_76 = arith.constant 1 : index
      %c0_77 = arith.constant 0 : index
      %c0_78 = arith.constant 0 : index
      %c0_79 = arith.constant 0 : index
      %64 = vector.load %arg4[%c1_76, %c0_77, %c0_78, %c0_79] : memref<3x3x128x128xf32, #tpu.memory_space<vmem>>, vector<1x1x128x128xf32>
      %65 = vector.shape_cast %64 : vector<1x1x128x128xf32> to vector<128x128xf32>
      %cst_80 = arith.constant dense<0.000000e+00> : vector<128x128xf32>
      %66 = tpu.matmul %63, %65, %cst_80 {dimension_numbers = #tpu.dot_dimension_numbers<[1], [0], [0], [1], [0, 0, 1, 1], [], []>} : vector<128x128xf32>, vector<128x128xf32>, vector<128x128xf32> -> vector<128x128xf32>
      %67 = arith.addf %58, %66 : vector<128x128xf32>
      %c1_81 = arith.constant 1 : index
      %c1_82 = arith.constant 1 : index
      %c0_83 = arith.constant 0 : index
      %c0_84 = arith.constant 0 : index
      %68 = vector.load %arg4[%c1_81, %c1_82, %c0_83, %c0_84] : memref<3x3x128x128xf32, #tpu.memory_space<vmem>>, vector<1x1x128x128xf32>
      %69 = vector.shape_cast %68 : vector<1x1x128x128xf32> to vector<128x128xf32>
      %cst_85 = arith.constant dense<0.000000e+00> : vector<128x128xf32>
      %70 = tpu.matmul %62, %69, %cst_85 {dimension_numbers = #tpu.dot_dimension_numbers<[1], [0], [0], [1], [0, 0, 1, 1], [], []>} : vector<128x128xf32>, vector<128x128xf32>, vector<128x128xf32> -> vector<128x128xf32>
      %71 = arith.addf %67, %70 : vector<128x128xf32>
      %c127_i32_86 = arith.constant 127 : i32
      %72 = tpu.dynamic_rotate %62 by %c127_i32_86 dim 0 : vector<128x128xf32>, i32 -> vector<128x128xf32>
      %c1_87 = arith.constant 1 : index
      %c2_88 = arith.constant 2 : index
      %c0_89 = arith.constant 0 : index
      %c0_90 = arith.constant 0 : index
      %73 = vector.load %arg4[%c1_87, %c2_88, %c0_89, %c0_90] : memref<3x3x128x128xf32, #tpu.memory_space<vmem>>, vector<1x1x128x128xf32>
      %74 = vector.shape_cast %73 : vector<1x1x128x128xf32> to vector<128x128xf32>
      %cst_91 = arith.constant dense<0.000000e+00> : vector<128x128xf32>
      %75 = tpu.matmul %72, %74, %cst_91 {dimension_numbers = #tpu.dot_dimension_numbers<[1], [0], [0], [1], [0, 0, 1, 1], [], []>} : vector<128x128xf32>, vector<128x128xf32>, vector<128x128xf32> -> vector<128x128xf32>
      %76 = arith.addf %71, %75 : vector<128x128xf32>
      %c2_i32 = arith.constant 2 : i32
      %77 = arith.addi %39, %c2_i32 : i32
      %78 = arith.index_cast %77 : i32 to index
      %c0_92 = arith.constant 0 : index
      %c0_93 = arith.constant 0 : index
      %79 = vector.load %arg12[%78, %c0_92, %c0_93] : memref<18x32x128xf32, #tpu.memory_space<vmem>>, vector<4x32x128xf32>
      %80 = vector.shape_cast %79 : vector<4x32x128xf32> to vector<128x128xf32>
      %c1_i32_94 = arith.constant 1 : i32
      %81 = tpu.dynamic_rotate %80 by %c1_i32_94 dim 0 : vector<128x128xf32>, i32 -> vector<128x128xf32>
      %c2_95 = arith.constant 2 : index
      %c0_96 = arith.constant 0 : index
      %c0_97 = arith.constant 0 : index
      %c0_98 = arith.constant 0 : index
      %82 = vector.load %arg4[%c2_95, %c0_96, %c0_97, %c0_98] : memref<3x3x128x128xf32, #tpu.memory_space<vmem>>, vector<1x1x128x128xf32>
      %83 = vector.shape_cast %82 : vector<1x1x128x128xf32> to vector<128x128xf32>
      %cst_99 = arith.constant dense<0.000000e+00> : vector<128x128xf32>
      %84 = tpu.matmul %81, %83, %cst_99 {dimension_numbers = #tpu.dot_dimension_numbers<[1], [0], [0], [1], [0, 0, 1, 1], [], []>} : vector<128x128xf32>, vector<128x128xf32>, vector<128x128xf32> -> vector<128x128xf32>
      %85 = arith.addf %76, %84 : vector<128x128xf32>
      %c2_100 = arith.constant 2 : index
      %c1_101 = arith.constant 1 : index
      %c0_102 = arith.constant 0 : index
      %c0_103 = arith.constant 0 : index
      %86 = vector.load %arg4[%c2_100, %c1_101, %c0_102, %c0_103] : memref<3x3x128x128xf32, #tpu.memory_space<vmem>>, vector<1x1x128x128xf32>
      %87 = vector.shape_cast %86 : vector<1x1x128x128xf32> to vector<128x128xf32>
      %cst_104 = arith.constant dense<0.000000e+00> : vector<128x128xf32>
      %88 = tpu.matmul %80, %87, %cst_104 {dimension_numbers = #tpu.dot_dimension_numbers<[1], [0], [0], [1], [0, 0, 1, 1], [], []>} : vector<128x128xf32>, vector<128x128xf32>, vector<128x128xf32> -> vector<128x128xf32>
      %89 = arith.addf %85, %88 : vector<128x128xf32>
      %c127_i32_105 = arith.constant 127 : i32
      %90 = tpu.dynamic_rotate %80 by %c127_i32_105 dim 0 : vector<128x128xf32>, i32 -> vector<128x128xf32>
      %c2_106 = arith.constant 2 : index
      %c2_107 = arith.constant 2 : index
      %c0_108 = arith.constant 0 : index
      %c0_109 = arith.constant 0 : index
      %91 = vector.load %arg4[%c2_106, %c2_107, %c0_108, %c0_109] : memref<3x3x128x128xf32, #tpu.memory_space<vmem>>, vector<1x1x128x128xf32>
      %92 = vector.shape_cast %91 : vector<1x1x128x128xf32> to vector<128x128xf32>
      %cst_110 = arith.constant dense<0.000000e+00> : vector<128x128xf32>
      %93 = tpu.matmul %90, %92, %cst_110 {dimension_numbers = #tpu.dot_dimension_numbers<[1], [0], [0], [1], [0, 0, 1, 1], [], []>} : vector<128x128xf32>, vector<128x128xf32>, vector<128x128xf32> -> vector<128x128xf32>
      %94 = arith.addf %89, %93 : vector<128x128xf32>
      %c0_111 = arith.constant 0 : index
      %c0_112 = arith.constant 0 : index
      %95 = vector.load %arg5[%c0_111, %c0_112] : memref<1x128xf32, #tpu.memory_space<vmem>>, vector<1x128xf32>
      %96 = vector.broadcast %95 : vector<1x128xf32> to vector<128x128xf32>
      %97 = arith.addf %94, %96 : vector<128x128xf32>
      %98 = vector.shape_cast %97 : vector<128x128xf32> to vector<4x32x128xf32>
      %99 = vector.extract_strided_slice %98 {offsets = [0, 8, 0], sizes = [4, 16, 128], strides = [1, 1, 1]} : vector<4x32x128xf32> to vector<4x16x128xf32>
      %100 = vector.extract_strided_slice %99 {offsets = [0, 0, 0], sizes = [4, 16, 32], strides = [1, 1, 1]} : vector<4x16x128xf32> to vector<4x16x32xf32>
      %c1_i32_113 = arith.constant 1 : i32
      %101 = arith.addi %c1_i32_113, %39 : i32
      %102 = arith.index_cast %101 : i32 to index
      %c8_114 = arith.constant 8 : index
      %c0_115 = arith.constant 0 : index
      %103 = vector.load %arg11[%102, %c8_114, %c0_115] : memref<18x32x32xf32, #tpu.memory_space<vmem>>, vector<4x16x32xf32>
      tpu.vector_store %arg11[%102, %c8_114, %c0_115], %100 {strides = array<i32>} : memref<18x32x32xf32, #tpu.memory_space<vmem>>, vector<4x16x32xf32>,
      %104 = vector.shape_cast %99 : vector<4x16x128xf32> to vector<64x128xf32>
      %cst_116 = arith.constant dense<0.000000e+00> : vector<128xf32>
      %105 = vector.multi_reduction <add>, %104, %cst_116 [0] : vector<64x128xf32> to vector<128xf32>
      %106 = vector.shape_cast %105 : vector<128xf32> to vector<1x128xf32>
      %107 = arith.addf %arg14, %106 : vector<1x128xf32>
      scf.yield %107 : vector<1x128xf32>
    }
    %c4_i32_34 = arith.constant 4 : i32
    %cst_35 = arith.constant 3.906250e-03 : f32
    %19 = vector.broadcast %cst_35 : f32 to vector<1x128xf32>
    %20 = arith.mulf %18, %19 : vector<1x128xf32>
    %c0_36 = arith.constant 0 : index
    %c0_37 = arith.constant 0 : index
    %21 = vector.load %arg6[%c0_36, %c0_37] : memref<128x128xf32, #tpu.memory_space<vmem>>, vector<128x128xf32>
    %cst_38 = arith.constant dense<0.000000e+00> : vector<1x128xf32>
    %22 = tpu.matmul %20, %21, %cst_38 {dimension_numbers = #tpu.dot_dimension_numbers<[1], [0], [0], [1], [0, 0, 1, 1], [], []>} : vector<1x128xf32>, vector<128x128xf32>, vector<1x128xf32> -> vector<1x128xf32>
    %c0_39 = arith.constant 0 : index
    %c0_40 = arith.constant 0 : index
    %23 = vector.load %arg7[%c0_39, %c0_40] : memref<1x128xf32, #tpu.memory_space<vmem>>, vector<1x128xf32>
    %24 = arith.addf %22, %23 : vector<1x128xf32>
    %cst_41 = arith.constant 0.000000e+00 : f32
    %25 = vector.broadcast %cst_41 : f32 to vector<1x128xf32>
    %26 = arith.maximumf %24, %25 : vector<1x128xf32>
    %c0_42 = arith.constant 0 : index
    %c0_43 = arith.constant 0 : index
    %27 = vector.load %arg8[%c0_42, %c0_43] : memref<128x128xf32, #tpu.memory_space<vmem>>, vector<128x128xf32>
    %cst_44 = arith.constant dense<0.000000e+00> : vector<1x128xf32>
    %28 = tpu.matmul %26, %27, %cst_44 {dimension_numbers = #tpu.dot_dimension_numbers<[1], [0], [0], [1], [0, 0, 1, 1], [], []>} : vector<1x128xf32>, vector<128x128xf32>, vector<1x128xf32> -> vector<1x128xf32>
    %c0_45 = arith.constant 0 : index
    %c0_46 = arith.constant 0 : index
    %29 = vector.load %arg9[%c0_45, %c0_46] : memref<1x128xf32, #tpu.memory_space<vmem>>, vector<1x128xf32>
    %30 = arith.addf %28, %29 : vector<1x128xf32>
    %31 = arith.negf %30 : vector<1x128xf32>
    %32 = math.exp %31 : vector<1x128xf32>
    %cst_47 = arith.constant 1.000000e+00 : f32
    %33 = vector.broadcast %cst_47 : f32 to vector<1x128xf32>
    %34 = arith.addf %33, %32 : vector<1x128xf32>
    %35 = arith.divf %33, %34 : vector<1x128xf32>
    %36 = vector.extract_strided_slice %35 {offsets = [0, 0], sizes = [1, 32], strides = [1, 1]} : vector<1x128xf32> to vector<1x32xf32>
    %37 = vector.shape_cast %36 : vector<1x32xf32> to vector<1x1x32xf32>
    %c0_i32_48 = arith.constant 0 : i32
    %c4_i32_49 = arith.constant 4 : i32
    %38 = arith.addi %c0_i32_48, %c4_i32_49 : i32
    %c1_i32_50 = arith.constant 1 : i32
    scf.for %arg13 = %c0_i32_48 to %38 step %c1_i32_50  : i32 {
      %c4_i32_52 = arith.constant 4 : i32
      %39 = arith.muli %arg13, %c4_i32_52 : i32
      %c1_i32_53 = arith.constant 1 : i32
      %40 = arith.addi %c1_i32_53, %39 : i32
      %41 = arith.index_cast %40 : i32 to index
      %c8_54 = arith.constant 8 : index
      %c0_55 = arith.constant 0 : index
      %42 = vector.load %arg11[%41, %c8_54, %c0_55] : memref<18x32x32xf32, #tpu.memory_space<vmem>>, vector<4x16x32xf32>
      %c0_56 = arith.constant 0 : index
      %43 = arith.index_cast %39 : i32 to index
      %c0_57 = arith.constant 0 : index
      %c0_58 = arith.constant 0 : index
      %44 = vector.load %arg1[%c0_56, %43, %c0_57, %c0_58] : memref<1x16x16x32xf32, #tpu.memory_space<vmem>>, vector<1x4x16x32xf32>
      %45 = vector.shape_cast %44 : vector<1x4x16x32xf32> to vector<4x16x32xf32>
      %46 = vector.broadcast %37 : vector<1x1x32xf32> to vector<4x16x32xf32>
      %47 = arith.mulf %42, %46 : vector<4x16x32xf32>
      %48 = arith.addf %47, %45 : vector<4x16x32xf32>
      %c0_59 = arith.constant 0 : index
      %49 = arith.index_cast %39 : i32 to index
      %c0_60 = arith.constant 0 : index
      %c0_61 = arith.constant 0 : index
      %50 = vector.load %arg10[%c0_59, %49, %c0_60, %c0_61] : memref<1x16x16x32xf32, #tpu.memory_space<vmem>>, vector<1x4x16x32xf32>
      %51 = vector.shape_cast %50 : vector<1x4x16x32xf32> to vector<4x16x32xf32>
      %52 = vector.shape_cast %48 : vector<4x16x32xf32> to vector<1x4x16x32xf32>
      tpu.vector_store %arg10[%c0_59, %49, %c0_60, %c0_61], %52 {strides = array<i32>} : memref<1x16x16x32xf32, #tpu.memory_space<vmem>>, vector<1x4x16x32xf32>,
    }
    %c4_i32_51 = arith.constant 4 : i32
    return
  }
  func.func @transform_0(%arg0: i32) -> (i32, i32, i32, i32) {
    %c0_i32 = arith.constant 0 : i32
    %c0_i32_0 = arith.constant 0 : i32
    %c0_i32_1 = arith.constant 0 : i32
    %c0_i32_2 = arith.constant 0 : i32
    return %arg0, %c0_i32, %c0_i32_0, %c0_i32_1 : i32, i32, i32, i32
  }
  func.func @transform_1(%arg0: i32) -> (i32, i32, i32, i32) {
    %c0_i32 = arith.constant 0 : i32
    %c0_i32_0 = arith.constant 0 : i32
    %c0_i32_1 = arith.constant 0 : i32
    %c0_i32_2 = arith.constant 0 : i32
    %c0_i32_3 = arith.constant 0 : i32
    return %c0_i32, %c0_i32_0, %c0_i32_1, %c0_i32_2 : i32, i32, i32, i32
  }
  func.func @transform_2(%arg0: i32) -> (i32, i32) {
    %c0_i32 = arith.constant 0 : i32
    %c0_i32_0 = arith.constant 0 : i32
    %c0_i32_1 = arith.constant 0 : i32
    return %c0_i32, %c0_i32_0 : i32, i32
  }
  func.func @transform_3(%arg0: i32) -> (i32, i32, i32, i32) {
    %c0_i32 = arith.constant 0 : i32
    %c0_i32_0 = arith.constant 0 : i32
    %c0_i32_1 = arith.constant 0 : i32
    %c0_i32_2 = arith.constant 0 : i32
    %c0_i32_3 = arith.constant 0 : i32
    return %c0_i32, %c0_i32_0, %c0_i32_1, %c0_i32_2 : i32, i32, i32, i32
  }
  func.func @transform_4(%arg0: i32) -> (i32, i32) {
    %c0_i32 = arith.constant 0 : i32
    %c0_i32_0 = arith.constant 0 : i32
    %c0_i32_1 = arith.constant 0 : i32
    return %c0_i32, %c0_i32_0 : i32, i32
  }
  func.func @transform_5(%arg0: i32) -> (i32, i32) {
    %c0_i32 = arith.constant 0 : i32
    %c0_i32_0 = arith.constant 0 : i32
    %c0_i32_1 = arith.constant 0 : i32
    return %c0_i32, %c0_i32_0 : i32, i32
  }
  func.func @transform_6(%arg0: i32) -> (i32, i32) {
    %c0_i32 = arith.constant 0 : i32
    %c0_i32_0 = arith.constant 0 : i32
    %c0_i32_1 = arith.constant 0 : i32
    return %c0_i32, %c0_i32_0 : i32, i32
  }
  func.func @transform_7(%arg0: i32) -> (i32, i32) {
    %c0_i32 = arith.constant 0 : i32
    %c0_i32_0 = arith.constant 0 : i32
    %c0_i32_1 = arith.constant 0 : i32
    return %c0_i32, %c0_i32_0 : i32, i32
  }
  func.func @transform_8(%arg0: i32) -> (i32, i32) {
    %c0_i32 = arith.constant 0 : i32
    %c0_i32_0 = arith.constant 0 : i32
    %c0_i32_1 = arith.constant 0 : i32
    return %c0_i32, %c0_i32_0 : i32, i32
  }
  func.func @transform_9(%arg0: i32) -> (i32, i32, i32, i32) {
    %c0_i32 = arith.constant 0 : i32
    %c0_i32_0 = arith.constant 0 : i32
    %c0_i32_1 = arith.constant 0 : i32
    %c0_i32_2 = arith.constant 0 : i32
    return %arg0, %c0_i32, %c0_i32_0, %c0_i32_1 : i32, i32, i32, i32
  }
}

</mosaic_0001>

<bundles_post_ra>
// kernel: tpu_custom_call.1
= control target key start
LH: loop header
LB: loop body
LE: loop exit
PB: predicated region body
PF: predicated region fallthrough
CT: control target
= control target key end

     0   :  { %s9064_s0 = inlined_call_operand.hbm [shape: f32[2,16,16,32], index: 0, kind: input, shape index: {}]   ;;  %s9065_s1 = inlined_call_operand.hbm [shape: f32[3,3,32,128], index: 1, kind: input, shape index: {}]   ;;  %s9066_s2 = inlined_call_operand.vmem [shape: f32[1,128], index: 2, kind: input, shape index: {}]   ;;  %s9067_s3 = inlined_call_operand.hbm [shape: f32[3,3,128,128], index: 3, kind: input, shape index: {}]   ;;  %s9068_s4 = inlined_call_operand.vmem [shape: f32[1,128], index: 4, kind: input, shape index: {}]   ;;  %s9069_s5 = inlined_call_operand.hbm [shape: f32[128,128], index: 5, kind: input, shape index: {}]   ;;  %s9070_s6 = inlined_call_operand.vmem [shape: f32[1,128], index: 6, kind: input, shape index: {}]   ;;  %s9071_s7 = inlined_call_operand.hbm [shape: f32[128,128], index: 7, kind: input, shape index: {}]   ;;  %s9072_s8 = inlined_call_operand.vmem [shape: f32[1,128], index: 8, kind: input, shape index: {}]   ;;  %s9073_s9 = inlined_call_operand.hbm [shape: f32[2,16,16,32], index: 9, kind: output, shape index: {}]  }
   0x1   :  { %9093 = sst [smem:[#allocation29_spill]] %s9073_s9 }
   0x2   :  { %14 = vsyncpa [#allocation5], 0 }
   0x3   :  { %16 = vsyncpa [#allocation5 + $0x1], 0 }
   0x4   :  { %17 = vsyncpa [#allocation8], 0 }
   0x5   :  { %18 = vsyncpa [#allocation11], 0 }
   0x6   :  { %19 = vsyncpa [#allocation6], 0 }
   0x7   :  { %21 = vsyncpa [#allocation6 + $0x1], 0  ;;  %s7309_s30 = smov 0   ;;  %s7311_s10 = smov 0  }
   0x8   :  { %s7313_s11 = smov 0   ;;  %s7315_s12 = smov 0  }
   0x9 LB: > { %9094 = sst [smem:[#allocation18_spill]] %s7216_s30  ;;  %s7330_s13 = sadd.s32 4294967295, %s7228_s12   ;;  %s7228_s12 = sphi %s7315_s12, %s9149_s12   ;;  %s7224_s11 = sphi %s7313_s11, %s9148_s11   ;;  %s7220_s10 = sphi %s7311_s10, %s9147_s10   ;;  %s7216_s30 = sphi %s7309_s30, %s9146_s30  }
   0xa   : > { %s4764_s14 = sadd.s32 4294967294, %s7228_s12   ;;  %p47_p0 = scmp.ne.s32.totalorder %s7220_s10, %s7216_s30 }
   0xb   : > { %p9074_p1 = scmp.eq.s32.totalorder %s7330_s13, 0  ;;  %p245_p3 = scmp.eq.s32.totalorder %s4764_s14, 1 }
   0xc   : > { %p4765_p5 = scmp.ge.s32.totalorder %s7228_s12, 1  ;;  %p252_p7 = scmp.lt.s32.totalorder %s7228_s12, 3 }
   0xd   : > { %p7339_p4 = por %p9074_p1, %p47_p0  ;;  %p7344_p6 = por %p245_p3, %p47_p0 }
   0xe   : > { %p7349_p8 = pnand %p4765_p5, %p252_p7  ;;  %s7246_s18 = smov [#allocation7]  }
   0xf   : > { %s9095_s15 = scalar_select %p7339_p4, 1, 0 }
  0x10   : > { %s9096_s16 = scalar_select %p7344_p6, 1, 0 }
  0x11   : > { %s9098_s17 = scalar_select %p7349_p8, 1, 0 }
  0x12   : > { %9097 = sst [smem:[#allocation19_spill]] %s9096_s16  ;;  %s264_s19 = sshll.u32 %s7246_s18, 4  ;;  %s7353_s19 = int_to_ptr.vmem [resolvable:$true] %s264_s19 }
  0x13   : > { %p6886_p9 = pneg %p7349_p8  ;;  %s7247_s21 = smov [#allocation10]  }
  0x14   : > { %s296_s22 = sshll.u32 %s7247_s21, 4  ;;  %s7248_s23 = smov [#allocation9]   ;;  %s7364_s22 = int_to_ptr.vmem [resolvable:$true] %s296_s22 }
  0x15   : > { %p7360_p11 = pnand %p6886_p9, %p9074_p1  ;;  %s7366_s24 = sshll.u32 %s7248_s23, 4  ;;  %s281_s24 = int_to_ptr.vmem [resolvable:$true] %s7366_s24 }
  0x16   : > { %s6996_s27 = scalar_lea.hbm %s9065_s1, 4608 }
  0x17   : > { %p6997_p12 = scmp.ne.s32.totalorder %s9065_s1, %s6996_s27  ;;  %p7376_p13 = pneg %p7360_p11 }
  0x18   : > { %p7003_p5 = scmp.lt.u32.totalorder %s6996_s27, %s9065_s1 }
  0x19   : > { %p6999_p0 = pnand %p7376_p13, %p6997_p12 }
  0x1b   : > { %p7000_p3 = pneg %p6999_p0 }
  0x1d   : > { %p7005_p7 = pnand %p7003_p5, %p7000_p3 }
  0x1f   : > { %7008 = shalt.err (!%p7005_p7)
}
  0x20   : > { %s7009_s23 = scalar_lea.vmem %s7353_s19, 4608  ;;  %p7017_p2 = scmp.lt.s32.totalorder %s7353_s19, %s7353_s19 }
  0x21   : > { %p7010_p9 = scmp.ne.s32.totalorder %s7353_s19, %s7009_s23  ;;  %p7018_p6 = scmp.lt.s32.totalorder %s7009_s23, %s7009_s23 }
  0x23   : > { %p7012_p10 = pnand %p7010_p9, %p7376_p13  ;;  %p7019_p12 = por %p7018_p6, %p7017_p2 }
  0x25   : > { %p7013_p1 = pneg %p7012_p10 }
  0x27   : > { %p7020_p0 = pnand %p7019_p12, %p7013_p1 }
  0x29   : > { %7023 = shalt.err (!%p7020_p0)
}
  0x2a   : > { %s7249_s25 = smov 128   ;;  %s7250_s26 = smov 8  }
  0x2b   : > { %6889 = dma.hbm_to_vmem [thread:$0]  (!%p7360_p11), %s9065_s1, 4608, %s7353_s19, [#allocation8], %s7249_s25, %s7249_s25, %s7250_s26  }
  0x2c   : > { %s7024_s21 = scalar_lea.hbm %s9069_s5, 2048 }
  0x2d   : > { %p7025_p1 = scmp.ne.s32.totalorder %s9069_s5, %s7024_s21  ;;  %p7031_p10 = scmp.lt.u32.totalorder %s7024_s21, %s9069_s5 }
  0x2f   : > { %p7027_p2 = pnand %p7025_p1, %p7376_p13 }
  0x31   : > { %p7028_p6 = pneg %p7027_p2 }
  0x33   : > { %p7033_p3 = pnand %p7031_p10, %p7028_p6 }
  0x35   : > { %7036 = shalt.err (!%p7033_p3)
}
  0x36   : > { %s7037_s19 = scalar_lea.vmem %s7364_s22, 2048  ;;  %p7045_p12 = scmp.lt.s32.totalorder %s7364_s22, %s7364_s22 }
  0x37   : > { %p7038_p5 = scmp.ne.s32.totalorder %s7364_s22, %s7037_s19  ;;  %p7046_p0 = scmp.lt.s32.totalorder %s7037_s19, %s7037_s19 }
  0x39   : > { %p7040_p7 = pnand %p7038_p5, %p7376_p13  ;;  %p7047_p1 = por %p7046_p0, %p7045_p12 }
  0x3b   : > { %p7041_p9 = pneg %p7040_p7 }
  0x3d   : > { %p7048_p2 = pnand %p7047_p1, %p7041_p9 }
  0x3f   : > { %7051 = shalt.err (!%p7048_p2)
}
  0x40   : > { %6895 = dma.hbm_to_vmem [thread:$0]  (!%p7360_p11), %s9069_s5, 2048, %s7364_s22, [#allocation11], %s7249_s25, %s7249_s25, %s7250_s26  }
  0x41   : > { %s7052_s28 = scalar_lea.hbm %s9067_s3, 18432 }
  0x42   : > { %p7053_p6 = scmp.ne.s32.totalorder %s9067_s3, %s7052_s28  ;;  %p7059_p5 = scmp.lt.u32.totalorder %s7052_s28, %s9067_s3 }
  0x44   : > { %p7055_p10 = pnand %p7053_p6, %p7376_p13 }
  0x46   : > { %p7056_p3 = pneg %p7055_p10 }
  0x48   : > { %p7061_p7 = pnand %p7059_p5, %p7056_p3 }
  0x4a   : > { %7064 = shalt.err (!%p7061_p7)
}
  0x4b   : > { %s7065_s19 = scalar_lea.vmem %s281_s24, 18432  ;;  %p7073_p1 = scmp.lt.s32.totalorder %s281_s24, %s281_s24 }
  0x4c   : > { %p7066_p9 = scmp.ne.s32.totalorder %s281_s24, %s7065_s19  ;;  %p7074_p2 = scmp.lt.s32.totalorder %s7065_s19, %s7065_s19 }
  0x4e   : > { %p7068_p12 = pnand %p7066_p9, %p7376_p13  ;;  %p7075_p4 = por %p7074_p2, %p7073_p1 }
  0x50   : > { %p7069_p0 = pneg %p7068_p12 }
  0x52   : > { %p7076_p8 = pnand %p7075_p4, %p7069_p0 }
  0x54   : > { %7079 = shalt.err (!%p7076_p8)
}
  0x55   : > { %6892 = dma.hbm_to_vmem [thread:$0]  (!%p7360_p11), %s9067_s3, 18432, %s281_s24, [#allocation8], %s7249_s25, %s7249_s25, %s7250_s26  }
  0x56   : > { %s7251_s30 = smov [#allocation12]   ;;  %s7080_s29 = scalar_lea.hbm %s9071_s7, 2048 }
  0x57   : > { %s312_s16 = sshll.u32 %s7251_s30, 4  ;;  %p7081_p4 = scmp.ne.s32.totalorder %s9071_s7, %s7080_s29  ;;  %s313_s16 = int_to_ptr.vmem [resolvable:$true] %s312_s16 }
  0x58   : > { %p7087_p10 = scmp.lt.u32.totalorder %s7080_s29, %s9071_s7 }
  0x59   : > { %p7083_p8 = pnand %p7081_p4, %p7376_p13 }
  0x5b   : > { %p7084_p6 = pneg %p7083_p8 }
  0x5d   : > { %p7089_p3 = pnand %p7087_p10, %p7084_p6 }
  0x5f   : > { %7092 = shalt.err (!%p7089_p3)
}
  0x60   : > { %s7093_s24 = scalar_lea.vmem %s313_s16, 2048  ;;  %p7101_p12 = scmp.lt.s32.totalorder %s313_s16, %s313_s16 }
  0x61   : > { %p7094_p5 = scmp.ne.s32.totalorder %s313_s16, %s7093_s24  ;;  %p7102_p0 = scmp.lt.s32.totalorder %s7093_s24, %s7093_s24 }
  0x63   : > { %p7096_p7 = pnand %p7094_p5, %p7376_p13  ;;  %p7103_p1 = por %p7102_p0, %p7101_p12 }
  0x65   : > { %p7097_p9 = pneg %p7096_p7 }
  0x67   : > { %p7104_p2 = pnand %p7103_p1, %p7097_p9 }
  0x69   : > { %7107 = shalt.err (!%p7104_p2)
}
  0x6a   : > { %6898 = dma.hbm_to_vmem [thread:$0]  (!%p7360_p11), %s9071_s7, 2048, %s313_s16, [#allocation11], %s7249_s25, %s7249_s25, %s7250_s26  }
  0x6b   : > { %s7470_s14 = sadd.s32 1, %s7228_s12   ;;  %s34_s20 = sadd.s32 1, %s7224_s11 }
  0x6c   : > { %s31_s30 = ssub.s32 %s7228_s12, %s7470_s14  ;;  %p41_p13 = scmp.ne.s32.totalorder %s7224_s11, %s7220_s10 }
  0x6d   : > { %p32_p4 = scmp.eq.s32.totalorder %s31_s30, 0  ;;  %p42_p8 = scmp.eq.s32.totalorder %s7228_s12, 0 }
  0x6e   : > { %p9101_p6 = scmp.eq.s32.totalorder %s7330_s13, 1  ;;  %p6911_p3 = scmp.lt.s32.totalorder %s7228_s12, 2 }
  0x6f   : > { %s7486_s28 = scalar_select %p32_p4, %s7224_s11, %s34_s20  }
  0x70   : > { %p7480_p10 = por %p9101_p6, %p41_p13  ;;  %p43_p5 = por %p42_p8, %p41_p13 }
  0x71   : > { %s329_s29 = sand.u32 1, %s7224_s11   ;;  %s5061_s16 = sshll.u32 %s7228_s12, 12 }
  0x72   : > { %s4771_s18 = sshll.u32 %s329_s29, 8  ;;  %s7493_s19 = scalar_lea.hbm %s9064_s0, %s5061_s16 }
  0x73   : > { %s333_s24 = scalar_lea.vmem [#allocation4], %s4771_s18  ;;  %p7497_p11 = pnand %p6911_p3, %p43_p5 }
  0x74   : > { %s340_s22 = sshll.u32 %s333_s24, 4  ;;  %s7501_s20 = scalar_lea.sflag [#allocation5], %s329_s29  ;;  %s7495_s22 = int_to_ptr.vmem [resolvable:$true] %s340_s22 }
  0x75   : > { %s7108_s30 = scalar_lea.hbm %s7493_s19, 4096  ;;  %p7110_p9 = pneg %p7497_p11 }
  0x76   : > { %p7109_p7 = scmp.ne.s32.totalorder %s7493_s19, %s7108_s30  ;;  %s7113_s21 = scalar_lea.hbm %s9064_s0, 8192 }
  0x77   : > { %p7114_p1 = scmp.lt.u32.totalorder %s7493_s19, %s9064_s0  ;;  %p7115_p2 = scmp.lt.u32.totalorder %s7113_s21, %s7108_s30 }
  0x78   : > { %p7111_p12 = pnand %p7110_p9, %p7109_p7  ;;  %p7117_p4 = scmp.lt.u32.totalorder %s7108_s30, %s7493_s19 }
  0x79   : > { %p7116_p13 = por %p7115_p2, %p7114_p1 }
  0x7a   : > { %p7112_p0 = pneg %p7111_p12 }
  0x7b   : > { %p7118_p8 = por %p7117_p4, %p7116_p13 }
  0x7d   : > { %p7119_p6 = pnand %p7118_p8, %p7112_p0 }
  0x7f   : > { %7122 = shalt.err (!%p7119_p6)
}
  0x80   : > { %s7123_s29 = scalar_lea.vmem %s7495_s22, 4096  ;;  %s7252_s18 = smov [#allocation4]  }
  0x81   : > { %p7124_p3 = scmp.ne.s32.totalorder %s7495_s22, %s7123_s29  ;;  %s7128_s16 = sshll.u32 %s7252_s18, 4  ;;  %s7129_s16 = int_to_ptr.vmem [resolvable:$false] %s7128_s16 }
  0x82   : > { %s7130_s23 = scalar_lea.vmem %s7129_s16, 8192  ;;  %p7131_p12 = scmp.lt.s32.totalorder %s7495_s22, %s7129_s16 }
  0x83   : > { %p7126_p5 = pnand %p7124_p3, %p7110_p9  ;;  %p7132_p1 = scmp.lt.s32.totalorder %s7130_s23, %s7123_s29 }
  0x85   : > { %p7127_p7 = pneg %p7126_p5  ;;  %p7133_p2 = por %p7132_p1, %p7131_p12 }
  0x87   : > { %p7134_p13 = pnand %p7133_p2, %p7127_p7 }
  0x89   : > { %7137 = shalt.err (!%p7134_p13)
}
  0x8a   : > { %6902 = dma.hbm_to_vmem [thread:$0]  (!%p7497_p11), %s7493_s19, 4096, %s7495_s22, %s7501_s20, %s7249_s25, %s7249_s25, %s7250_s26  }
  0x8b   : > { %p9104_p9 = scmp.ne.s32.totalorder %s9098_s17, 0 }
  0x8c   : > { %s7535_s30 = sand.u32 (!%p9104_p9), 1, %s7220_s10   ;;  %p9105_p0 = scmp.ne.s32.totalorder (!%p9104_p9), %s9095_s15, 0 }
  0x8d   : > { %352 = sbr.rel (%p9104_p9) target bundleno = 1520 (0x5f0), region = 56  ;;  %s4775_s21 = sshll.u32 (!%p9104_p9), %s7535_s30, 8 }
  0x8e   : > { %s355_s24 = scalar_lea.sflag (!%p9104_p9), [#allocation5], %s7535_s30  ;;  %s7541_s9 = scalar_lea.vmem (!%p9104_p9), [#allocation4], %s4775_s21 }
  0x94   : > { %7199 = dma.done.wait (%p9105_p0), %s355_s24, 4096  }
  0x95   : > { %7201 = vsyncadd (%p9105_p0), %s355_s24, 4294963200  ;;  %p9106_p11 = scmp.eq.s32.totalorder %s7330_s13, 0 }
  0x97   : > { %7203 = dma.done.wait (%p9106_p11), [#allocation8], 23040   ;;  %p9107_p4 = pmov %p9106_p11 }
  0x99   : > { %7205 = vsyncadd (%p9107_p4), [#allocation8], 4294944256  ;;  %p9108_p8 = pmov %p9107_p4 }
  0x9a   : > { %p9109_p6 = pmov %p9107_p4 }
  0x9b   : > { %7207 = dma.done.wait (%p9108_p8), [#allocation11], 4096  }
  0x9c   : > { %7209 = vsyncadd (%p9109_p6), [#allocation11], 4294963200  ;;  %vm409_vm0 = vcmask 261120   ;;  %v9080_v0 = vmov 0.0   ;;  %v500_v1 = vld [vmem:[%s7541_s9] sm:$0xff]  ;;  %v501_v2 = vld [vmem:[%s7541_s9 + $0x8] sm:$0xff] }
  0x9d   : > { %410 = vst.msk [vmem:[#allocation2] sm:$0xff] %vm409_vm0, %v9080_v0  ;;  %411 = vst.msk [vmem:[#allocation2 + $0x20] sm:$0xff] %vm409_vm0, %v9080_v0  ;;  %v502_v3 = vld [vmem:[%s7541_s9 + $0x10] sm:$0xff]  ;;  %v503_v4 = vld [vmem:[%s7541_s9 + $0x18] sm:$0xff]  ;;  %s7701_s15 = scalar_lea.vmem [#allocation13], %s4775_s21  ;;  %s7703_s17 = smov 0  }
  0x9e   : > { %412 = vst.msk [vmem:[#allocation2 + $0x40] sm:$0xff] %vm409_vm0, %v9080_v0  ;;  %413 = vst.msk [vmem:[#allocation2 + $0x60] sm:$0xff] %vm409_vm0, %v9080_v0  ;;  %v504_v5 = vld [vmem:[%s7541_s9 + $0x20] sm:$0xff]  ;;  %v505_v6 = vld [vmem:[%s7541_s9 + $0x28] sm:$0xff] }
  0x9f   : > { %414 = vst.msk [vmem:[#allocation2 + $0x80] sm:$0xff] %vm409_vm0, %v9080_v0  ;;  %415 = vst.msk [vmem:[#allocation2 + $0xa0] sm:$0xff] %vm409_vm0, %v9080_v0  ;;  %v506_v7 = vld [vmem:[%s7541_s9 + $0x30] sm:$0xff]  ;;  %v507_v8 = vld [vmem:[%s7541_s9 + $0x38] sm:$0xff] }
  0xa0   : > { %416 = vst.msk [vmem:[#allocation2 + $0xc0] sm:$0xff] %vm409_vm0, %v9080_v0  ;;  %417 = vst.msk [vmem:[#allocation2 + $0xe0] sm:$0xff] %vm409_vm0, %v9080_v0 }
  0xa1   : > { %418 = vst.msk [vmem:[#allocation2 + $0x100] sm:$0xff] %vm409_vm0, %v9080_v0  ;;  %419 = vst.msk [vmem:[#allocation2 + $0x120] sm:$0xff] %vm409_vm0, %v9080_v0 }
  0xa2   : > { %420 = vst.msk [vmem:[#allocation2 + $0x140] sm:$0xff] %vm409_vm0, %v9080_v0  ;;  %421 = vst.msk [vmem:[#allocation2 + $0x160] sm:$0xff] %vm409_vm0, %v9080_v0 }
  0xa3   : > { %422 = vst.msk [vmem:[#allocation2 + $0x180] sm:$0xff] %vm409_vm0, %v9080_v0  ;;  %423 = vst.msk [vmem:[#allocation2 + $0x1a0] sm:$0xff] %vm409_vm0, %v9080_v0 }
  0xa4   : > { %424 = vst.msk [vmem:[#allocation2 + $0x1c0] sm:$0xff] %vm409_vm0, %v9080_v0  ;;  %425 = vst.msk [vmem:[#allocation2 + $0x1e0] sm:$0xff] %vm409_vm0, %v9080_v0 }
  0xa5   : > { %426 = vst.msk [vmem:[#allocation2 + $0x200] sm:$0xff] %vm409_vm0, %v9080_v0  ;;  %427 = vst.msk [vmem:[#allocation2 + $0x220] sm:$0xff] %vm409_vm0, %v9080_v0 }
  0xa6   : > { %428 = vst.msk [vmem:[#allocation2 + $0x18] sm:$0xff] %vm409_vm0, %v9080_v0  ;;  %429 = vst.msk [vmem:[#allocation2 + $0x38] sm:$0xff] %vm409_vm0, %v9080_v0 }
  0xa7   : > { %430 = vst.msk [vmem:[#allocation2 + $0x58] sm:$0xff] %vm409_vm0, %v9080_v0  ;;  %431 = vst.msk [vmem:[#allocation2 + $0x78] sm:$0xff] %vm409_vm0, %v9080_v0 }
  0xa8   : > { %432 = vst.msk [vmem:[#allocation2 + $0x98] sm:$0xff] %vm409_vm0, %v9080_v0  ;;  %433 = vst.msk [vmem:[#allocation2 + $0xb8] sm:$0xff] %vm409_vm0, %v9080_v0 }
  0xa9   : > { %434 = vst.msk [vmem:[#allocation2 + $0xd8] sm:$0xff] %vm409_vm0, %v9080_v0  ;;  %435 = vst.msk [vmem:[#allocation2 + $0xf8] sm:$0xff] %vm409_vm0, %v9080_v0 }
  0xaa   : > { %436 = vst.msk [vmem:[#allocation2 + $0x118] sm:$0xff] %vm409_vm0, %v9080_v0  ;;  %437 = vst.msk [vmem:[#allocation2 + $0x138] sm:$0xff] %vm409_vm0, %v9080_v0 }
  0xab   : > { %438 = vst.msk [vmem:[#allocation2 + $0x158] sm:$0xff] %vm409_vm0, %v9080_v0  ;;  %439 = vst.msk [vmem:[#allocation2 + $0x178] sm:$0xff] %vm409_vm0, %v9080_v0 }
  0xac   : > { %440 = vst.msk [vmem:[#allocation2 + $0x198] sm:$0xff] %vm409_vm0, %v9080_v0  ;;  %441 = vst.msk [vmem:[#allocation2 + $0x1b8] sm:$0xff] %vm409_vm0, %v9080_v0 }
  0xad   : > { %442 = vst.msk [vmem:[#allocation2 + $0x1d8] sm:$0xff] %vm409_vm0, %v9080_v0  ;;  %443 = vst.msk [vmem:[#allocation2 + $0x1f8] sm:$0xff] %vm409_vm0, %v9080_v0 }
  0xae   : > { %444 = vst.msk [vmem:[#allocation2 + $0x218] sm:$0xff] %vm409_vm0, %v9080_v0  ;;  %445 = vst.msk [vmem:[#allocation2 + $0x238] sm:$0xff] %vm409_vm0, %v9080_v0 }
  0xaf   : > { %447 = vst.msk [vmem:[#allocation2 + $0x8] sm:$0xff] %vm409_vm0, %v9080_v0  ;;  %448 = vst.msk [vmem:[#allocation2 + $0x10] sm:$0xff] %vm409_vm0, %v9080_v0 }
  0xb0   : > { %452 = vst.msk [vmem:[#allocation2 + $0x228] sm:$0xff] %vm409_vm0, %v9080_v0  ;;  %453 = vst.msk [vmem:[#allocation2 + $0x230] sm:$0xff] %vm409_vm0, %v9080_v0 }
  0xb1   : > { %456 = vst [vmem:[#allocation3 + $0x20] sm:$0xff] %v9080_v0  ;;  %457 = vst [vmem:[#allocation3 + $0x40] sm:$0xff] %v9080_v0 }
  0xb2   : > { %458 = vst [vmem:[#allocation3 + $0x60] sm:$0xff] %v9080_v0  ;;  %459 = vst [vmem:[#allocation3 + $0x80] sm:$0xff] %v9080_v0 }
  0xb3   : > { %460 = vst [vmem:[#allocation3 + $0xa0] sm:$0xff] %v9080_v0  ;;  %461 = vst [vmem:[#allocation3 + $0xc0] sm:$0xff] %v9080_v0 }
  0xb4   : > { %462 = vst [vmem:[#allocation3 + $0xe0] sm:$0xff] %v9080_v0  ;;  %463 = vst [vmem:[#allocation3 + $0x100] sm:$0xff] %v9080_v0 }
  0xb5   : > { %464 = vst [vmem:[#allocation3 + $0x120] sm:$0xff] %v9080_v0  ;;  %465 = vst [vmem:[#allocation3 + $0x140] sm:$0xff] %v9080_v0 }
  0xb6   : > { %466 = vst [vmem:[#allocation3 + $0x160] sm:$0xff] %v9080_v0  ;;  %467 = vst [vmem:[#allocation3 + $0x180] sm:$0xff] %v9080_v0 }
  0xb7   : > { %468 = vst [vmem:[#allocation3 + $0x1a0] sm:$0xff] %v9080_v0  ;;  %469 = vst [vmem:[#allocation3 + $0x1c0] sm:$0xff] %v9080_v0 }
  0xb8   : > { %470 = vst [vmem:[#allocation3 + $0x1e0] sm:$0xff] %v9080_v0  ;;  %471 = vst [vmem:[#allocation3 + $0x200] sm:$0xff] %v9080_v0 }
  0xb9   : > { %474 = vst [vmem:[#allocation3 + $0x38] sm:$0xff] %v9080_v0  ;;  %475 = vst [vmem:[#allocation3 + $0x58] sm:$0xff] %v9080_v0 }
  0xba   : > { %476 = vst [vmem:[#allocation3 + $0x78] sm:$0xff] %v9080_v0  ;;  %477 = vst [vmem:[#allocation3 + $0x98] sm:$0xff] %v9080_v0 }
  0xbb   : > { %478 = vst [vmem:[#allocation3 + $0xb8] sm:$0xff] %v9080_v0  ;;  %479 = vst [vmem:[#allocation3 + $0xd8] sm:$0xff] %v9080_v0 }
  0xbc   : > { %480 = vst [vmem:[#allocation3 + $0xf8] sm:$0xff] %v9080_v0  ;;  %481 = vst [vmem:[#allocation3 + $0x118] sm:$0xff] %v9080_v0 }
  0xbd   : > { %482 = vst [vmem:[#allocation3 + $0x138] sm:$0xff] %v9080_v0  ;;  %483 = vst [vmem:[#allocation3 + $0x158] sm:$0xff] %v9080_v0 }
  0xbe   : > { %484 = vst [vmem:[#allocation3 + $0x178] sm:$0xff] %v9080_v0  ;;  %485 = vst [vmem:[#allocation3 + $0x198] sm:$0xff] %v9080_v0 }
  0xbf   : > { %486 = vst [vmem:[#allocation3 + $0x1b8] sm:$0xff] %v9080_v0  ;;  %487 = vst [vmem:[#allocation3 + $0x1d8] sm:$0xff] %v9080_v0 }
  0xc0   : > { %488 = vst [vmem:[#allocation3 + $0x1f8] sm:$0xff] %v9080_v0  ;;  %489 = vst [vmem:[#allocation3 + $0x218] sm:$0xff] %v9080_v0 }
  0xc1   : > { %492 = vst [vmem:[#allocation3 + $0x8] sm:$0xff] %v9080_v0  ;;  %493 = vst [vmem:[#allocation3 + $0x10] sm:$0xff] %v9080_v0 }
  0xc2   : > { %497 = vst [vmem:[#allocation3 + $0x228] sm:$0xff] %v9080_v0  ;;  %498 = vst [vmem:[#allocation3 + $0x230] sm:$0xff] %v9080_v0 }
  0xc3   : > { %491 = vst [vmem:[#allocation3] sm:$0xff] %v9080_v0  ;;  %494 = vst [vmem:[#allocation3 + $0x18] sm:$0xff] %v9080_v0 }
  0xc4   : > { %496 = vst [vmem:[#allocation3 + $0x220] sm:$0xff] %v9080_v0  ;;  %499 = vst [vmem:[#allocation3 + $0x238] sm:$0xff] %v9080_v0 }
  0xc5   : > { %446 = vst.msk [vmem:[#allocation2] sm:$0xff] %vm409_vm0, %v9080_v0  ;;  %449 = vst.msk [vmem:[#allocation2 + $0x18] sm:$0xff] %vm409_vm0, %v9080_v0 }
  0xc6   : > { %451 = vst.msk [vmem:[#allocation2 + $0x220] sm:$0xff] %vm409_vm0, %v9080_v0  ;;  %454 = vst.msk [vmem:[#allocation2 + $0x238] sm:$0xff] %vm409_vm0, %v9080_v0 }
  0xc7   : > { %509 = vst.msk [vmem:[#allocation2 + $0x28] sm:$0xff] %vm409_vm0, %v500_v1  ;;  %510 = vst.msk [vmem:[#allocation2 + $0x30] sm:$0xff] %vm409_vm0, %v501_v2 }
  0xc8   : > { %511 = vst.msk [vmem:[#allocation2 + $0x48] sm:$0xff] %vm409_vm0, %v502_v3  ;;  %512 = vst.msk [vmem:[#allocation2 + $0x50] sm:$0xff] %vm409_vm0, %v503_v4 }
  0xc9   : > { %513 = vst.msk [vmem:[#allocation2 + $0x68] sm:$0xff] %vm409_vm0, %v504_v5  ;;  %514 = vst.msk [vmem:[#allocation2 + $0x70] sm:$0xff] %vm409_vm0, %v505_v6 }
  0xca   : > { %515 = vst.msk [vmem:[#allocation2 + $0x88] sm:$0xff] %vm409_vm0, %v506_v7  ;;  %516 = vst.msk [vmem:[#allocation2 + $0x90] sm:$0xff] %vm409_vm0, %v507_v8 }
  0xcb LB: >> { %s523_s25 = sadd.s32 1, %s7232_s17   ;;  %s7232_s17 = sphi %s7703_s17, %s9131_s17  }
  0xcc   : >> { %p7711_p3 = scmp.ge.s32.totalorder %s523_s25, 4 }
  0xcd   : >> { %s4782_s19 = sshll.u32 (!%p7711_p3), %s7232_s17, 6  ;;  %s5062_s22 = sshll.u32 (!%p7711_p3), %s7232_s17, 7 }
  0xce   : >> { %527 = sbr.rel (%p7711_p3) target bundleno = 213 (0xd5), region = 87  ;;  %s4636_s20 = scalar_lea.vmem (!%p7711_p3), %s7541_s9, %s4782_s19 [#allocation4] }
  0xcf   : >> { %v4783_v9 = vld [vmem:[%s4636_s20 + $0x40] sm:$0xff] (!%p7711_p3)  ;;  %v4784_v10 = vld [vmem:[%s4636_s20 + $0x48] sm:$0xff] (!%p7711_p3)  ;;  %v4785_v11 = vld [vmem:[%s4636_s20 + $0x50] sm:$0xff] (!%p7711_p3)  ;;  %s4640_s29 = scalar_lea.vmem (!%p7711_p3), [#allocation2], %s5062_s22 }
  0xd0   : >> { %4793 = vst.msk [vmem:[%s4640_s29 + $0xa8] sm:$0xff] (!%p7711_p3), %vm409_vm0, %v4783_v9  ;;  %4794 = vst.msk [vmem:[%s4640_s29 + $0xb0] sm:$0xff] (!%p7711_p3), %vm409_vm0, %v4784_v10  ;;  %v4786_v12 = vld [vmem:[%s4636_s20 + $0x58] sm:$0xff] (!%p7711_p3)  ;;  %v4787_v13 = vld [vmem:[%s4636_s20 + $0x60] sm:$0xff] (!%p7711_p3) }
  0xd1   : >> { %4795 = vst.msk [vmem:[%s4640_s29 + $0xc8] sm:$0xff] (!%p7711_p3), %vm409_vm0, %v4785_v11  ;;  %v4788_v14 = vld [vmem:[%s4636_s20 + $0x68] sm:$0xff] (!%p7711_p3)  ;;  %4796 = vst.msk [vmem:[%s4640_s29 + $0xd0] sm:$0xff] (!%p7711_p3), %vm409_vm0, %v4786_v12  ;;  %v4789_v15 = vld [vmem:[%s4636_s20 + $0x70] sm:$0xff] (!%p7711_p3) }
  0xd2   : >> { %4797 = vst.msk [vmem:[%s4640_s29 + $0xe8] sm:$0xff] (!%p7711_p3), %vm409_vm0, %v4787_v13  ;;  %4798 = vst.msk [vmem:[%s4640_s29 + $0xf0] sm:$0xff] (!%p7711_p3), %vm409_vm0, %v4788_v14  ;;  %v4790_v16 = vld [vmem:[%s4636_s20 + $0x78] sm:$0xff] (!%p7711_p3) }
  0xd3   : >> { %4799 = vst.msk [vmem:[%s4640_s29 + $0x108] sm:$0xff] (!%p7711_p3), %vm409_vm0, %v4789_v15  ;;  %4800 = vst.msk [vmem:[%s4640_s29 + $0x110] sm:$0xff] (!%p7711_p3), %vm409_vm0, %v4790_v16 }
  0xd5 PF: >> { %v609_v17 = vld [vmem:[#allocation7 + $0x20] sm:$0xff]  ;;  %v610_v18 = vld [vmem:[#allocation7 + $0x28] sm:$0xff]  ;;  %v611_v19 = vld [vmem:[#allocation7 + $0x30] sm:$0xff]  ;;  %s5063_s18 = sshll.u32 %s7232_s17, 7  ;;  %v585_v41 = vlaneseq  ;;  %s9131_s17 = smov %s523_s25 }
  0xd6   : >> { %v6438_v20 = vpack.c.bf16 %v610_v18, %v609_v17  ;;  %v612_v21 = vld [vmem:[#allocation7 + $0x38] sm:$0xff]  ;;  %v604_v23 = vld [vmem:[#allocation7] sm:$0xff]  ;;  %v605_v24 = vld [vmem:[#allocation7 + $0x8] sm:$0xff]  ;;  %s7731_s16 = scalar_lea.vmem [#allocation2], %s5063_s18  ;;  %s8381_s24 = scalar_lea.vmem [#allocation3], %s5063_s18 }
  0xd7   : >> { %v6442_v22 = vpack.c.bf16 %v612_v21, %v611_v19  ;;  %v1017_v27 = vld [vmem:[#allocation7 + $0x40] sm:$0xff]  ;;  %v1018_v28 = vld [vmem:[#allocation7 + $0x48] sm:$0xff]  ;;  %v6446_v29 = vpack.c.bf16 %v605_v24, %v604_v23  ;;  %v606_v31 = vld [vmem:[#allocation7 + $0x10] sm:$0xff]  ;;  %v7778_v51 = vshrl.u32 %v585_v41, 7  ;;  %s8407_s19 = smov (%p7711_p3), 0  }
  0xd8   : >> { %6846 = vmatprep.subr.bf16.mxu1 %v6438_v20  ;;  %6439 = vmatprep.subr.bf16.mxu0 %v6438_v20  ;;  %v6454_v30 = vpack.c.bf16 %v1018_v28, %v1017_v27  ;;  %v607_v32 = vld [vmem:[#allocation7 + $0x18] sm:$0xff]  ;;  %v1019_v35 = vld [vmem:[#allocation7 + $0x50] sm:$0xff]  ;;  %v1266_v43 = vld [vmem:[#allocation7 + $0x60] sm:$0xff] }
  0xd9   : >> { %6848 = vmatpush3.bf16.msra.mxu1 %v6438_v20  ;;  %6441 = vmatpush3.bf16.msra.mxu0 %v6438_v20  ;;  %v1020_v37 = vld [vmem:[#allocation7 + $0x58] sm:$0xff]  ;;  %v6450_v39 = vpack.c.bf16 %v607_v32, %v606_v31  ;;  %v1267_v44 = vld [vmem:[#allocation7 + $0x68] sm:$0xff]  ;;  %v1464_v46 = vld [vmem:[#allocation7 + $0x80] sm:$0xff]  ;;  %vm587_vm1 = vcmp.lt.s32.totalorder %v7778_v51, 1  ;;  %vm999_vm2 = vcmp.lt.s32.totalorder %v7778_v51, 7 }
  0xda   : >> { %v7734_v25 = vld [vmem:[%s7731_s16 + $0x40] sm:$0xff]  ;;  %6847 = vmatprep.subr.bf16.mxu1 %v6442_v22  ;;  %6443 = vmatprep.subr.bf16.mxu0 %v6442_v22  ;;  %v7744_v33 = vld [vmem:[%s7731_s16 + $0x48] sm:$0xff]  ;;  %v7750_v36 = vld [vmem:[%s7731_s16 + $0x50] sm:$0xff]  ;;  %v6458_v40 = vpack.c.bf16 %v1020_v37, %v1019_v35  ;;  %v7780_v52 = vpack.c.bf16 %v1267_v44, %v1266_v43 }
  0xdb   : >> { %v7737_v26 = vld [vmem:[%s7731_s16] sm:$0xff]  ;;  %5596 = vmatprep.mubr.msk.f32.mxu1 %vm409_vm0, %v7734_v25  ;;  %v7747_v34 = vld [vmem:[%s7731_s16 + $0x8] sm:$0xff]  ;;  %v7753_v38 = vld [vmem:[%s7731_s16 + $0x10] sm:$0xff]  ;;  %v7817_v1 = vrot.slane %v7734_v25, 7  ;;  %v7827_v5 = vrot.slane %v7734_v25, 1 }
  0xdc   : >> { %5584 = vmatprep.mubr.msk.f32.mxu0 %vm409_vm0, %v7737_v26  ;;  %v7760_v42 = vld [vmem:[%s7731_s16 + $0x58] sm:$0xff]  ;;  %v1465_v47 = vld [vmem:[#allocation7 + $0x88] sm:$0xff]  ;;  %v7770_v48 = vld [vmem:[%s7731_s16 + $0x60] sm:$0xff]  ;;  %v569_v56 = vrot.slane %v7737_v26, 7  ;;  %v9083_v57 = vrot.slane %v7737_v26, 1  ;;  %v984_v58 = vrot.slane %v7747_v34, 1 }
  0xdd   : >> { %6849 = vmatpush3.bf16.msra.mxu1 %v6442_v22  ;;  %6445 = vmatpush3.bf16.msra.mxu0 %v6442_v22  ;;  %v7765_v45 = vld [vmem:[%s7731_s16 + $0x18] sm:$0xff]  ;;  %v7773_v49 = vld [vmem:[%s7731_s16 + $0x20] sm:$0xff]  ;;  %v7782_v53 = vpack.c.bf16 %v1465_v47, %v1464_v46  ;;  %v7791_v54 = vld [vmem:[%s7731_s16 + $0x68] sm:$0xff]  ;;  %v570_v62 = vrot.slane %v7747_v34, 7  ;;  %v985_v63 = vrot.slane %v7753_v38, 1  ;;  %v571_v2 = vrot.slane %v7753_v38, 7 }
  0xde   : >> { %6447 = vmatprep.subr.bf16.mxu1 %v6446_v29  ;;  %6455 = vmatprep.subr.bf16.mxu0 %v6454_v30  ;;  %v7776_v50 = vld [vmem:[%s7731_s16 + $0x78] sm:$0xff]  ;;  %v7796_v55 = vld [vmem:[%s7731_s16 + $0x28] sm:$0xff]  ;;  %v7802_v59 = vld [vmem:[%s7731_s16 + $0x70] sm:$0xff]  ;;  %v572_v3 = vrot.slane %v7765_v45, 7  ;;  %v986_v4 = vrot.slane %v7765_v45, 1  ;;  %v7830_v6 = vrot.slane %v7773_v49, 7  ;;  %v1014_v13 = vsel %vm999_vm2, %v9083_v57, %v984_v58 }
  0xdf   : >> { %v7805_v60 = vrot.slane %v7776_v50, 7  ;;  %v7808_v61 = vld [vmem:[%s7731_s16 + $0x30] sm:$0xff]  ;;  %v987_v7 = vrot.slane %v7773_v49, 1  ;;  %v574_v8 = vrot.slane %v7796_v55, 7  ;;  %v7839_v9 = vld [vmem:[%s7731_s16 + $0x38] sm:$0xff]  ;;  %v988_v10 = vrot.slane %v7796_v55, 1 }
  0xe0   : >> { %5597 = vmatmul.mubr.msk.f32.vlgmr.msra.gmra.mrb[0].mxu1 %vm409_vm0, %v7744_v33  ;;  %5585 = vmatmul.mubr.msk.f32.vlgmr.msra.gmra.mrb[0].mxu0 %vm409_vm0, %v7747_v34  ;;  %v989_v11 = vrot.slane %v7808_v61, 1  ;;  %v1268_v14 = vld [vmem:[#allocation7 + $0x70] sm:$0xff]  ;;  %v1269_v15 = vld [vmem:[#allocation7 + $0x78] sm:$0xff]  ;;  %v7851_v17 = vrot.slane %v7776_v50, 1  ;;  %v575_v18 = vrot.slane %v7808_v61, 7  ;;  %v602_v19 = vsel %vm587_vm1, %v569_v56, %v570_v62  ;;  %v1694_v23 = vld [vmem:[#allocation7 + $0xa0] sm:$0xff] }
  0xe1   : >> { %6449 = vmatpush3.bf16.msra.mxu1 %v6446_v29  ;;  %5599 = vmatprep.mubr.msk.f32.mxu1 %vm409_vm0, %v7750_v36  ;;  %v603_v12 = vsel %vm587_vm1, %v7805_v60, %v569_v56  ;;  %v1466_v16 = vld [vmem:[#allocation7 + $0x90] sm:$0xff]  ;;  %v1013_v20 = vsel %vm999_vm2, %v984_v58, %v985_v63  ;;  %v1467_v21 = vld [vmem:[#allocation7 + $0x98] sm:$0xff]  ;;  %v990_v24 = vrot.slane %v7839_v9, 1  ;;  %v601_v27 = vsel %vm587_vm1, %v570_v62, %v571_v2  ;;  %v7873_v31 = vld [vmem:[%s7731_s16 + $0x80] sm:$0xff] }
  0xe2   : >> { %6457 = vmatpush3.bf16.msra.mxu0 %v6454_v30  ;;  %5587 = vmatprep.mubr.msk.f32.mxu0 %vm409_vm0, %v7753_v38  ;;  %v7859_v22 = vld [vmem:[%s7731_s16 + $0x98] sm:$0xff]  ;;  %v600_v28 = vsel %vm587_vm1, %v571_v2, %v572_v3  ;;  %v1012_v29 = vsel %vm999_vm2, %v985_v63, %v986_v4  ;;  %v1695_v30 = vld [vmem:[#allocation7 + $0xa8] sm:$0xff]  ;;  %v1011_v34 = vsel %vm999_vm2, %v986_v4, %v987_v7  ;;  %v1943_v37 = vld [vmem:[#allocation7 + $0xc0] sm:$0xff]  ;;  %v581_v0 = vrot.slane %v7770_v48, 7 }
  0xe3   : >> { %6451 = vmatprep.subr.bf16.mxu1 %v6450_v39  ;;  %6459 = vmatprep.subr.bf16.mxu0 %v6458_v40  ;;  %v7876_v32 = vld [vmem:[%s7731_s16 + $0xb8] sm:$0xff]  ;;  %v599_v35 = vsel %vm587_vm1, %v572_v3, %v7830_v6  ;;  %v1944_v38 = vld [vmem:[#allocation7 + $0xc8] sm:$0xff]  ;;  %v7892_v41 = vsel %vm587_vm1, %v7830_v6, %v574_v8  ;;  %v7896_v43 = vsel %vm999_vm2, %v987_v7, %v988_v10  ;;  %v7908_v46 = vld [vmem:[%s7731_s16 + $0xa0] sm:$0xff] }
  0xe4   : >> { %5600 = vmatmul.mubr.msk.f32.gmra.mrb[2].mxu1 %vm409_vm0, %v7760_v42  ;;  %5588 = vmatmul.mubr.msk.f32.gmra.mrb[2].mxu0 %vm409_vm0, %v7765_v45  ;;  %v7902_v44 = vsel %vm999_vm2, %v988_v10, %v989_v11  ;;  %v7905_v45 = vrot.slane %v7859_v22, 7  ;;  %9111 = vst [vmem:[#allocation20_spill] sm:$0xff] %v7908_v46  ;;  %v7911_v47 = vld [vmem:[%s7731_s16 + $0xa8] sm:$0xff]  ;;  %v7914_v56 = vld [vmem:[%s7731_s16 + $0xb0] sm:$0xff]  ;;  %v6466_v58 = vpack.c.bf16 %v1269_v15, %v1268_v14  ;;  %v9082_v4 = vrot.slane %v7876_v32, 7 }
  0xe5   : >> { %5602 = vmatprep.mubr.msk.f32.mxu1 %vm409_vm0, %v7770_v48  ;;  %5590 = vmatprep.mubr.msk.f32.mxu0 %vm409_vm0, %v7773_v49  ;;  %9112 = vst [vmem:[#allocation21_spill] sm:$0xff] %v7911_v47  ;;  %9113 = vst [vmem:[#allocation22_spill] sm:$0xff] %v7914_v56  ;;  %v6474_v62 = vpack.c.bf16 %v1467_v21, %v1466_v16  ;;  %v7916_v63 = vpack.c.bf16 %v1695_v30, %v1694_v23  ;;  %v7919_v2 = vld [vmem:[%s7731_s16 + $0x88] sm:$0xff]  ;;  %v7922_v3 = vld [vmem:[%s7731_s16 + $0x90] sm:$0xff]  ;;  %v1922_v15 = vrot.slane %v7908_v46, 7 }
  0xe6   : >> { %6453 = vmatpush3.bf16.msra.mxu1 %v6450_v39  ;;  %6461 = vmatpush3.bf16.msra.mxu0 %v6458_v40  ;;  %v1673_v39 = vrot.slane %v7873_v31, 1  ;;  %v1676_v40 = vrot.slane %v7859_v22, 1  ;;  %v7927_v10 = vpack.c.bf16 %v1944_v38, %v1943_v37  ;;  %v1675_v14 = vrot.slane %v7922_v3, 1 }
  0xe7   : >> { %6463 = vmatprep.subr.bf16.mxu1 %v7780_v52  ;;  %6471 = vmatprep.subr.bf16.mxu0 %v7782_v53  ;;  %v1923_v16 = vrot.slane %v7911_v47, 7  ;;  %v2351_v30 = vrot.slane %v7911_v47, 1 }
  0xe8   : >> { %5603 = vmatmul.mubr.msk.f32.gmra.mrb[4].mxu1 %vm409_vm0, %v7791_v54  ;;  %5591 = vmatmul.mubr.msk.f32.gmra.mrb[4].mxu0 %vm409_vm0, %v7796_v55  ;;  %v7957_v23 = vsel %vm999_vm2, %v1675_v14, %v1676_v40 }
  0xe9   : >> { %5605 = vmatprep.mubr.msk.f32.mxu1 %vm409_vm0, %v7802_v59  ;;  %5593 = vmatprep.mubr.msk.f32.mxu0 %vm409_vm0, %v7808_v61 }
  0xec   : >> { %5606 = vmatmul.mubr.msk.f32.gmra.mrb[6].mxu1 %vm409_vm0, %v7776_v50  ;;  %5594 = vmatmul.mubr.msk.f32.gmra.mrb[6].mxu0 %vm409_vm0, %v7839_v9 }
  0xed   : >> { %5616 = vmatprep.mubr.msk.f32.mxu1 %vm409_vm0, %v603_v12  ;;  %5648 = vmatprep.mubr.msk.f32.mxu0 %vm409_vm0, %v1014_v13  ;;  %v7932_v12 = vsel %vm999_vm2, %v7851_v17, %v1673_v39  ;;  %v1674_v13 = vrot.slane %v7919_v2, 1 }
  0xef   : >> { %v7949_v21 = vsel %vm999_vm2, %v1673_v39, %v1674_v13  ;;  %v2352_v39 = vrot.slane %v7914_v56, 1 }
  0xf0   : >> { %5617 = vmatmul.mubr.msk.f32.vlgmr.msra.gmra.mrb[8].mxu1 %vm409_vm0, %v602_v19  ;;  %5649 = vmatmul.mubr.msk.f32.vlgmr.msra.gmra.mrb[8].mxu0 %vm409_vm0, %v1013_v20  ;;  %v7942_v19 = vsel %vm999_vm2, %v1676_v40, %v987_v7  ;;  %v1924_v20 = vrot.slane %v7914_v56, 7  ;;  %v2350_v7 = vrot.slane %v7908_v46, 1  ;;  %v583_v56 = vrot.slane %v7802_v59, 7  ;;  %v1945_v46 = vld [vmem:[#allocation7 + $0xd0] sm:$0xff] }
  0xf1   : >> { %6465 = vmatpush3.bf16.msra.mxu1 %v7780_v52  ;;  %5619 = vmatprep.mubr.msk.f32.mxu1 %vm409_vm0, %v601_v27  ;;  %v7953_v52 = vsel %vm999_vm2, %v1674_v13, %v1675_v14  ;;  %v7967_v27 = vsel %vm587_vm1, %v1922_v15, %v1923_v16  ;;  %v2353_v13 = vrot.slane %v7876_v32, 1  ;;  %v576_v14 = vrot.slane %v7839_v9, 7 }
  0xf2   : >> { %6473 = vmatpush3.bf16.msra.mxu0 %v7782_v53  ;;  %5651 = vmatprep.mubr.msk.f32.mxu0 %vm409_vm0, %v1012_v29  ;;  %v7963_v53 = vsel %vm587_vm1, %v7905_v45, %v1922_v15  ;;  %v7971_v29 = vsel %vm587_vm1, %v1923_v16, %v1924_v20  ;;  %v7980_v37 = vsel %vm587_vm1, %v1924_v20, %v9082_v4  ;;  %v996_v4 = vrot.slane %v7791_v54, 1 }
  0xf3   : >> { %6467 = vmatprep.subr.bf16.mxu1 %v6466_v58  ;;  %6475 = vmatprep.subr.bf16.mxu0 %v6474_v62  ;;  %9114 = vst [vmem:[#allocation23_spill] sm:$0xff] %v7980_v37  ;;  %v7984_v38 = vsel %vm999_vm2, %v1676_v40, %v2350_v7  ;;  %v992_v40 = vrot.slane %v7744_v33, 1  ;;  %v8019_v15 = vsel %vm999_vm2, %v2352_v39, %v2353_v13  ;;  %v2371_v37 = vld [vmem:[#allocation7 + $0x100] sm:$0xff] }
  0xf4   : >> { %5620 = vmatmul.mubr.msk.f32.gmra.mrb[10].mxu1 %vm409_vm0, %v600_v28  ;;  %5652 = vmatmul.mubr.msk.f32.gmra.mrb[10].mxu0 %vm409_vm0, %v1011_v34  ;;  %9115 = vst [vmem:[#allocation24_spill] sm:$0xff] %v7984_v38  ;;  %v7998_v28 = vsel %vm587_vm1, %v574_v8, %v575_v18  ;;  %v8006_v34 = vsel %vm999_vm2, %v989_v11, %v990_v24  ;;  %9118 = vst [vmem:[#allocation27_spill] sm:$0xff] %v8019_v15  ;;  %v997_v15 = vrot.slane %v7802_v59, 1  ;;  %v1946_v38 = vld [vmem:[#allocation7 + $0xd8] sm:$0xff] }
  0xf5   : >> { %5622 = vmatprep.mubr.msk.f32.mxu1 %vm409_vm0, %v599_v35  ;;  %5654 = vmatprep.mubr.msk.f32.mxu0 %vm409_vm0, %v7896_v43  ;;  %v8010_v35 = vsel %vm999_vm2, %v2350_v7, %v2351_v30  ;;  %v8015_v8 = vsel %vm999_vm2, %v2351_v30, %v2352_v39  ;;  %v8024_v11 = vsel %vm999_vm2, %v2353_v13, %v7827_v5  ;;  %v579_v7 = vrot.slane %v7750_v36, 7 }
  0xf6   : >> { %9116 = vst [vmem:[#allocation25_spill] sm:$0xff] %v8010_v35  ;;  %6469 = vmatpush3.bf16.msra.mxu1 %v6466_v58  ;;  %6477 = vmatpush3.bf16.msra.mxu0 %v6474_v62  ;;  %9117 = vst [vmem:[#allocation26_spill] sm:$0xff] %v8015_v8  ;;  %v578_v58 = vrot.slane %v7744_v33, 7  ;;  %v993_v62 = vrot.slane %v7750_v36, 1  ;;  %v8040_v16 = vsel %vm587_vm1, %v575_v18, %v576_v14  ;;  %v994_v30 = vrot.slane %v7760_v42, 1  ;;  %v1696_v35 = vld [vmem:[#allocation7 + $0xb0] sm:$0xff] }
  0xf7   : >> { %9119 = vst [vmem:[#allocation28_spill] sm:$0xff] %v8024_v11  ;;  %6479 = vmatprep.subr.bf16.mxu1 %v7916_v63  ;;  %6487 = vmatprep.subr.bf16.mxu0 %v7927_v10  ;;  %v8049_v20 = vsel %vm999_vm2, %v990_v24, %v7827_v5  ;;  %v8056_v39 = vsel %vm587_vm1, %v576_v14, %v7817_v1  ;;  %v580_v24 = vrot.slane %v7760_v42, 7  ;;  %v995_v13 = vrot.slane %v7770_v48, 1 }
  0xf8   : >> { %5623 = vmatmul.mubr.msk.f32.gmra.mrb[12].mxu1 %vm409_vm0, %v7892_v41  ;;  %5655 = vmatmul.mubr.msk.f32.gmra.mrb[12].mxu0 %vm409_vm0, %v7902_v44  ;;  %v8061_v18 = vsel %vm999_vm2, %v7827_v5, %v992_v40  ;;  %v8074_v14 = vsel %vm587_vm1, %v7817_v1, %v578_v58  ;;  %v8080_v5 = vsel %vm999_vm2, %v992_v40, %v993_v62  ;;  %v582_v40 = vrot.slane %v7791_v54, 7 }
  0xf9   : >> { %5625 = vmatprep.mubr.msk.f32.mxu1 %vm409_vm0, %v7998_v28  ;;  %5657 = vmatprep.mubr.msk.f32.mxu0 %vm409_vm0, %v8006_v34  ;;  %v8086_v57 = vsel %vm587_vm1, %v578_v58, %v579_v7  ;;  %v8090_v11 = vsel %vm999_vm2, %v993_v62, %v994_v30  ;;  %v8102_v58 = vsel %vm587_vm1, %v579_v7, %v580_v24 }
  0xfa   : >> { %v8108_v62 = vsel %vm999_vm2, %v994_v30, %v995_v13  ;;  %v8113_v8 = vsel %vm587_vm1, %v580_v24, %v581_v0  ;;  %v8117_v47 = vsel %vm999_vm2, %v995_v13, %v996_v4  ;;  %v8127_v7 = vsel %vm587_vm1, %v581_v0, %v582_v40 }
  0xfb   : >> { %v8133_v30 = vsel %vm999_vm2, %v996_v4, %v997_v15  ;;  %v8137_v24 = vsel %vm587_vm1, %v582_v40, %v583_v56  ;;  %v8142_v13 = vsel %vm999_vm2, %v997_v15, %v7851_v17  ;;  %v8153_v0 = vsel %vm587_vm1, %v583_v56, %v7805_v60  ;;  %v1697_v56 = vld [vmem:[#allocation7 + $0xb8] sm:$0xff] }
  0xfc   : >> { %5626 = vmatmul.mubr.msk.f32.gmra.mrb[14].mxu1 %vm409_vm0, %v8040_v16  ;;  %5658 = vmatmul.mubr.msk.f32.gmra.mrb[14].mxu0 %vm409_vm0, %v8049_v20  ;;  %v9120_v4 = vrot.slane %v7737_v26, 1  ;;  %v1264_v40 = vsel %vm587_vm1, %v7905_v45, %v7830_v6  ;;  %v6482_v26 = vpack.c.bf16 %v1697_v56, %v1696_v35  ;;  %v2142_v6 = vld [vmem:[#allocation7 + $0xe8] sm:$0xff]  ;;  %v2144_v35 = vld [vmem:[#allocation7 + $0xf8] sm:$0xff] }
  0xfd   : >> { %5628 = vmatprep.mubr.msk.f32.mxu1 %vm409_vm0, %v8056_v39  ;;  %5660 = vmatprep.mubr.msk.f32.mxu0 %vm409_vm0, %v8061_v18 }
  0xfe   : >> { %v1015_v15 = vsel %vm999_vm2, %v7851_v17, %v9120_v4  ;;  %v6490_v17 = vpack.c.bf16 %v1946_v38, %v1945_v46  ;;  %v2141_v4 = vld [vmem:[#allocation7 + $0xe0] sm:$0xff]  ;;  %v1247_v46 = vrot.slane %v7922_v3, 7 }
 0x100   : >> { %5629 = vmatmul.mubr.msk.f32.gmra.mrb[16].mxu1 %vm409_vm0, %v8074_v14  ;;  %5661 = vmatmul.mubr.msk.f32.gmra.mrb[16].mxu0 %vm409_vm0, %v8080_v5 }
 0x101   : >> { %5631 = vmatprep.mubr.msk.f32.mxu1 %vm409_vm0, %v8086_v57  ;;  %5663 = vmatprep.mubr.msk.f32.mxu0 %vm409_vm0, %v8090_v11 }
 0x104   : >> { %5632 = vmatmul.mubr.msk.f32.gmra.mrb[18].mxu1 %vm409_vm0, %v8102_v58  ;;  %5664 = vmatmul.mubr.msk.f32.gmra.mrb[18].mxu0 %vm409_vm0, %v8108_v62 }
 0x105   : >> { %5634 = vmatprep.mubr.msk.f32.mxu1 %vm409_vm0, %v8113_v8  ;;  %5666 = vmatprep.mubr.msk.f32.mxu0 %vm409_vm0, %v8117_v47 }
 0x108   : >> { %5635 = vmatmul.mubr.msk.f32.gmra.mrb[20].mxu1 %vm409_vm0, %v8127_v7  ;;  %5667 = vmatmul.mubr.msk.f32.gmra.mrb[20].mxu0 %vm409_vm0, %v8133_v30 }
 0x109   : >> { %5637 = vmatprep.mubr.msk.f32.mxu1 %vm409_vm0, %v8137_v24  ;;  %5669 = vmatprep.mubr.msk.f32.mxu0 %vm409_vm0, %v8142_v13 }
 0x10c   : >> { %5638 = vmatmul.mubr.msk.f32.gmra.mrb[22].mxu1 %vm409_vm0, %v8153_v0  ;;  %5670 = vmatmul.mubr.msk.f32.gmra.mrb[22].mxu0 %vm409_vm0, %v1015_v15  ;;  %v2372_v15 = vld [vmem:[#allocation7 + $0x108] sm:$0xff] }
 0x10d   : >> { %5680 = vmatprep.mubr.msk.f32.mxu1 %vm409_vm0, %v1264_v40  ;;  %5712 = vmatprep.mubr.msk.f32.mxu0 %vm409_vm0, %v7773_v49  ;;  %v6494_v49 = vpack.c.bf16 %v2142_v6, %v2141_v4 }
 0x110   : >> { %5681 = vmatmul.mubr.msk.f32.vlgmr.msra.gmra.mrb[24].mxu1 %vm409_vm0, %v7892_v41  ;;  %5713 = vmatmul.mubr.msk.f32.vlgmr.msra.gmra.mrb[24].mxu0 %vm409_vm0, %v7796_v55  ;;  %v6502_v41 = vpack.c.bf16 %v2372_v15, %v2371_v37  ;;  %v1245_v55 = vrot.slane %v7873_v31, 7  ;;  %v9121_v37 = vrot.slane %v7876_v32, 7 }
 0x111   : >> { %6481 = vmatpush3.bf16.msra.mxu1 %v7916_v63  ;;  %5683 = vmatprep.mubr.msk.f32.mxu1 %vm409_vm0, %v7998_v28  ;;  %v2143_v28 = vld [vmem:[#allocation7 + $0xf0] sm:$0xff] }
 0x112   : >> { %6489 = vmatpush3.bf16.msra.mxu0 %v7927_v10  ;;  %5715 = vmatprep.mubr.msk.f32.mxu0 %vm409_vm0, %v7808_v61  ;;  %v1246_v61 = vrot.slane %v7919_v2, 7  ;;  %v1941_v38 = vsel %vm587_vm1, %v9121_v37, %v7817_v1 }
 0x113   : >> { %6483 = vmatprep.subr.bf16.mxu1 %v6482_v26  ;;  %6491 = vmatprep.subr.bf16.mxu0 %v6490_v17 }
 0x114   : >> { %5684 = vmatmul.mubr.msk.f32.gmra.mrb[26].mxu1 %vm409_vm0, %v8040_v16  ;;  %5716 = vmatmul.mubr.msk.f32.gmra.mrb[26].mxu0 %vm409_vm0, %v7839_v9  ;;  %v1252_v9 = vsel %vm587_vm1, %v7805_v60, %v1245_v55  ;;  %v1251_v63 = vsel %vm587_vm1, %v1245_v55, %v1246_v61  ;;  %v1250_v10 = vsel %vm587_vm1, %v1246_v61, %v1247_v46  ;;  %v2373_v16 = vld [vmem:[#allocation7 + $0x110] sm:$0xff] }
 0x115   : >> { %5686 = vmatprep.mubr.msk.f32.mxu1 %vm409_vm0, %v8056_v39  ;;  %5718 = vmatprep.mubr.msk.f32.mxu0 %vm409_vm0, %v7734_v25  ;;  %v1249_v60 = vsel %vm587_vm1, %v1247_v46, %v7905_v45  ;;  %v2374_v39 = vld [vmem:[#allocation7 + $0x118] sm:$0xff]  ;;  %v6498_v45 = vpack.c.bf16 %v2144_v35, %v2143_v28 }
 0x116   : >> { %6485 = vmatpush3.bf16.msra.mxu1 %v6482_v26  ;;  %6493 = vmatpush3.bf16.msra.mxu0 %v6490_v17  ;;  %v6506_v40 = vpack.c.bf16 %v2374_v39, %v2373_v16 }
 0x117   : >> { %6495 = vmatprep.subr.bf16.mxu1 %v6494_v49  ;;  %6503 = vmatprep.subr.bf16.mxu0 %v6502_v41 }
 0x118   : >> { %5687 = vmatmul.mubr.msk.f32.gmra.mrb[28].mxu1 %vm409_vm0, %v8074_v14  ;;  %5719 = vmatmul.mubr.msk.f32.gmra.mrb[28].mxu0 %vm409_vm0, %v7744_v33 }
 0x119   : >> { %5689 = vmatprep.mubr.msk.f32.mxu1 %vm409_vm0, %v8086_v57  ;;  %5721 = vmatprep.mubr.msk.f32.mxu0 %vm409_vm0, %v7750_v36 }
 0x11c   : >> { %5690 = vmatmul.mubr.msk.f32.gmra.mrb[30].mxu1 %vm409_vm0, %v8102_v58  ;;  %5722 = vmatmul.mubr.msk.f32.gmra.mrb[30].mxu0 %vm409_vm0, %v7760_v42 }
 0x11d   : >> { %5692 = vmatprep.mubr.msk.f32.mxu1 %vm409_vm0, %v8113_v8  ;;  %5724 = vmatprep.mubr.msk.f32.mxu0 %vm409_vm0, %v7770_v48 }
 0x120   : >> { %5693 = vmatmul.mubr.msk.f32.gmra.mrb[32].mxu1 %vm409_vm0, %v8127_v7  ;;  %5725 = vmatmul.mubr.msk.f32.gmra.mrb[32].mxu0 %vm409_vm0, %v7791_v54 }
 0x121   : >> { %5695 = vmatprep.mubr.msk.f32.mxu1 %vm409_vm0, %v8137_v24  ;;  %5727 = vmatprep.mubr.msk.f32.mxu0 %vm409_vm0, %v7802_v59 }
 0x124   : >> { %5696 = vmatmul.mubr.msk.f32.gmra.mrb[34].mxu1 %vm409_vm0, %v8153_v0  ;;  %5728 = vmatmul.mubr.msk.f32.gmra.mrb[34].mxu0 %vm409_vm0, %v7776_v50 }
 0x125   : >> { %5698 = vmatprep.mubr.msk.f32.mxu1 %vm409_vm0, %v1252_v9  ;;  %5730 = vmatprep.mubr.msk.f32.mxu0 %vm409_vm0, %v7873_v31 }
 0x128   : >> { %5699 = vmatmul.mubr.msk.f32.gmra.mrb[36].mxu1 %vm409_vm0, %v1251_v63  ;;  %5731 = vmatmul.mubr.msk.f32.gmra.mrb[36].mxu0 %vm409_vm0, %v7919_v2 }
 0x129   : >> { %5701 = vmatprep.mubr.msk.f32.mxu1 %vm409_vm0, %v1250_v10  ;;  %5733 = vmatprep.mubr.msk.f32.mxu0 %vm409_vm0, %v7922_v3 }
 0x12c   : >> { %5702 = vmatmul.mubr.msk.f32.gmra.mrb[38].mxu1 %vm409_vm0, %v1249_v60  ;;  %5734 = vmatmul.mubr.msk.f32.gmra.mrb[38].mxu0 %vm409_vm0, %v7859_v22 }
 0x12d   : >> { %5744 = vmatprep.mubr.msk.f32.mxu1 %vm409_vm0, %v7896_v43  ;;  %5776 = vmatprep.mubr.msk.f32.mxu0 %vm409_vm0, %v1941_v38 }
 0x130   : >> { %5745 = vmatmul.mubr.msk.f32.vlgmr.msra.gmra.mrb[40].mxu1 %vm409_vm0, %v7902_v44  ;;  %5777 = vmatmul.mubr.msk.f32.vlgmr.msra.gmra.mrb[40].mxu0 %vm409_vm0, %v8074_v14 }
 0x131   : >> { %6497 = vmatpush3.bf16.msra.mxu1 %v6494_v49  ;;  %5747 = vmatprep.mubr.msk.f32.mxu1 %vm409_vm0, %v8006_v34 }
 0x132   : >> { %6505 = vmatpush3.bf16.msra.mxu0 %v6502_v41  ;;  %5779 = vmatprep.mubr.msk.f32.mxu0 %vm409_vm0, %v8086_v57  ;;  %v9122_v57 = vld [vmem:[#allocation23_spill] sm:$0xff] }
 0x133   : >> { %6499 = vmatprep.subr.bf16.mxu1 %v6498_v45  ;;  %6507 = vmatprep.subr.bf16.mxu0 %v6506_v40 }
 0x134   : >> { %5748 = vmatmul.mubr.msk.f32.gmra.mrb[42].mxu1 %vm409_vm0, %v8049_v20  ;;  %5780 = vmatmul.mubr.msk.f32.gmra.mrb[42].mxu0 %vm409_vm0, %v8102_v58 }
 0x135   : >> { %5750 = vmatprep.mubr.msk.f32.mxu1 %vm409_vm0, %v8061_v18  ;;  %5782 = vmatprep.mubr.msk.f32.mxu0 %vm409_vm0, %v8113_v8 }
 0x136   : >> { %6501 = vmatpush3.bf16.msra.mxu1 %v6498_v45  ;;  %6509 = vmatpush3.bf16.msra.mxu0 %v6506_v40 }
 0x138   : >> { %5751 = vmatmul.mubr.msk.f32.gmra.mrb[44].mxu1 %vm409_vm0, %v8080_v5  ;;  %5783 = vmatmul.mubr.msk.f32.gmra.mrb[44].mxu0 %vm409_vm0, %v8127_v7 }
 0x139   : >> { %5753 = vmatprep.mubr.msk.f32.mxu1 %vm409_vm0, %v8090_v11  ;;  %5785 = vmatprep.mubr.msk.f32.mxu0 %vm409_vm0, %v8137_v24 }
 0x13c   : >> { %5754 = vmatmul.mubr.msk.f32.gmra.mrb[46].mxu1 %vm409_vm0, %v8108_v62  ;;  %5786 = vmatmul.mubr.msk.f32.gmra.mrb[46].mxu0 %vm409_vm0, %v8153_v0 }
 0x13d   : >> { %5756 = vmatprep.mubr.msk.f32.mxu1 %vm409_vm0, %v8117_v47  ;;  %5788 = vmatprep.mubr.msk.f32.mxu0 %vm409_vm0, %v1252_v9 }
 0x140   : >> { %5757 = vmatmul.mubr.msk.f32.gmra.mrb[48].mxu1 %vm409_vm0, %v8133_v30  ;;  %5789 = vmatmul.mubr.msk.f32.gmra.mrb[48].mxu0 %vm409_vm0, %v1251_v63 }
 0x141   : >> { %5759 = vmatprep.mubr.msk.f32.mxu1 %vm409_vm0, %v8142_v13  ;;  %5791 = vmatprep.mubr.msk.f32.mxu0 %vm409_vm0, %v1250_v10 }
 0x144   : >> { %5760 = vmatmul.mubr.msk.f32.gmra.mrb[50].mxu1 %vm409_vm0, %v7932_v12  ;;  %5792 = vmatmul.mubr.msk.f32.gmra.mrb[50].mxu0 %vm409_vm0, %v1249_v60 }
 0x145   : >> { %5762 = vmatprep.mubr.msk.f32.mxu1 %vm409_vm0, %v7949_v21  ;;  %5794 = vmatprep.mubr.msk.f32.mxu0 %vm409_vm0, %v7963_v53 }
 0x148   : >> { %5763 = vmatmul.mubr.msk.f32.gmra.mrb[52].mxu1 %vm409_vm0, %v7953_v52  ;;  %5795 = vmatmul.mubr.msk.f32.gmra.mrb[52].mxu0 %vm409_vm0, %v7967_v27 }
 0x149   : >> { %5765 = vmatprep.mubr.msk.f32.mxu1 %vm409_vm0, %v7957_v23  ;;  %5797 = vmatprep.mubr.msk.f32.mxu0 %vm409_vm0, %v7971_v29 }
 0x14c   : >> { %5766 = vmatmul.mubr.msk.f32.gmra.mrb[54].mxu1 %vm409_vm0, %v7942_v19  ;;  %5798 = vmatmul.mubr.msk.f32.gmra.mrb[54].mxu0 %vm409_vm0, %v9122_v57 }
 0x14d   : >> { %5808 = vmatprep.mubr.msk.f32.mxu1 %vm409_vm0, %v7734_v25  ;;  %5840 = vmatprep.mubr.msk.f32.mxu0 %vm409_vm0, %v8061_v18  ;;  %v9123_v25 = vld [vmem:[#allocation24_spill] sm:$0xff] }
 0x150   : >> { %5809 = vmatmul.mubr.msk.f32.vlgmr.msra.gmra.mrb[56].mxu1 %vm409_vm0, %v7744_v33  ;;  %5841 = vmatmul.mubr.msk.f32.vlgmr.msra.gmra.mrb[56].mxu0 %vm409_vm0, %v8080_v5  ;;  %v9124_v33 = vld [vmem:[#allocation20_spill] sm:$0xff] }
 0x151   : >> { %5811 = vmatprep.mubr.msk.f32.mxu1 %vm409_vm0, %v7750_v36  ;;  %5843 = vmatprep.mubr.msk.f32.mxu0 %vm409_vm0, %v8090_v11  ;;  %v9125_v36 = vld [vmem:[#allocation25_spill] sm:$0xff] }
 0x154   : >> { %5812 = vmatmul.mubr.msk.f32.gmra.mrb[58].mxu1 %vm409_vm0, %v7760_v42  ;;  %5844 = vmatmul.mubr.msk.f32.gmra.mrb[58].mxu0 %vm409_vm0, %v8108_v62  ;;  %v9126_v42 = vld [vmem:[#allocation21_spill] sm:$0xff] }
 0x155   : >> { %5814 = vmatprep.mubr.msk.f32.mxu1 %vm409_vm0, %v7770_v48  ;;  %5846 = vmatprep.mubr.msk.f32.mxu0 %vm409_vm0, %v8117_v47  ;;  %v9127_v48 = vld [vmem:[#allocation26_spill] sm:$0xff] }
 0x158   : >> { %5815 = vmatmul.mubr.msk.f32.gmra.mrb[60].mxu1 %vm409_vm0, %v7791_v54  ;;  %5847 = vmatmul.mubr.msk.f32.gmra.mrb[60].mxu0 %vm409_vm0, %v8133_v30  ;;  %v9129_v54 = vld [vmem:[#allocation27_spill] sm:$0xff] }
 0x159   : >> { %5817 = vmatprep.mubr.msk.f32.mxu1 %vm409_vm0, %v7802_v59  ;;  %5849 = vmatprep.mubr.msk.f32.mxu0 %vm409_vm0, %v8142_v13  ;;  %v9130_v59 = vld [vmem:[#allocation28_spill] sm:$0xff] }
 0x15c   : >> { %5818 = vmatmul.mubr.msk.f32.gmra.mrb[62].mxu1 %vm409_vm0, %v7776_v50  ;;  %5850 = vmatmul.mubr.msk.f32.gmra.mrb[62].mxu0 %vm409_vm0, %v7932_v12  ;;  %v9128_v50 = vld [vmem:[#allocation22_spill] sm:$0xff] }
 0x15d   : >> { %5820 = vmatprep.mubr.msk.f32.mxu1 %vm409_vm0, %v7873_v31  ;;  %5852 = vmatprep.mubr.msk.f32.mxu0 %vm409_vm0, %v7949_v21 }
 0x160   : >> { %5821 = vmatmul.mubr.msk.f32.gmra.mrb[64].mxu1 %vm409_vm0, %v7919_v2  ;;  %5853 = vmatmul.mubr.msk.f32.gmra.mrb[64].mxu0 %vm409_vm0, %v7953_v52 }
 0x161   : >> { %5823 = vmatprep.mubr.msk.f32.mxu1 %vm409_vm0, %v7922_v3  ;;  %5855 = vmatprep.mubr.msk.f32.mxu0 %vm409_vm0, %v7957_v23 }
 0x164   : >> { %5824 = vmatmul.mubr.msk.f32.gmra.mrb[66].mxu1 %vm409_vm0, %v7859_v22  ;;  %5856 = vmatmul.mubr.msk.f32.gmra.mrb[66].mxu0 %vm409_vm0, %v9123_v25 }
 0x165   : >> { %5826 = vmatprep.mubr.msk.f32.mxu1 %vm409_vm0, %v9124_v33  ;;  %5858 = vmatprep.mubr.msk.f32.mxu0 %vm409_vm0, %v9125_v36 }
 0x168   : >> { %5827 = vmatmul.mubr.msk.f32.gmra.mrb[68].mxu1 %vm409_vm0, %v9126_v42  ;;  %5859 = vmatmul.mubr.msk.f32.gmra.mrb[68].mxu0 %vm409_vm0, %v9127_v48 }
 0x169   : >> { %5829 = vmatprep.mubr.msk.f32.mxu1 %vm409_vm0, %v9128_v50  ;;  %5861 = vmatprep.mubr.msk.f32.mxu0 %vm409_vm0, %v9129_v54 }
 0x16c   : >> { %5830 = vmatmul.mubr.msk.f32.gmra.mrb[70].mxu1 %vm409_vm0, %v7876_v32  ;;  %5862 = vmatmul.mubr.msk.f32.gmra.mrb[70].mxu0 %vm409_vm0, %v9130_v59 }
 0x1b3   : >> { %v5598_v1 = vpop.f32.mrb[0].mxu1  ;;  %v5586_v22 = vpop.f32.mrb[0].mxu0 }
 0x1b4   : >> { %v763_v31 = vpop.f32.mrb[1].mxu1  ;;  %v727_v43 = vpop.f32.mrb[1].mxu0 }
 0x1b7   : >> { %v5601_v44 = vpop.f32.mrb[2].mxu1  ;;  %v5589_v47 = vpop.f32.mrb[2].mxu0 }
 0x1b8   : >> { %v772_v2 = vpop.f32.mrb[3].mxu1  ;;  %v736_v3 = vpop.f32.mrb[3].mxu0 }
 0x1bb   : >> { %v5604_v12 = vpop.f32.mrb[4].mxu1  ;;  %v5592_v19 = vpop.f32.mrb[4].mxu0 }
 0x1bc   : >> { %v781_v21 = vpop.f32.mrb[5].mxu1  ;;  %v745_v52 = vpop.f32.mrb[5].mxu0 }
 0x1bf   : >> { %v5607_v23 = vpop.f32.mrb[6].mxu1  ;;  %v5595_v53 = vpop.f32.mrb[6].mxu0 }
 0x1c0   : >> { %v790_v27 = vpop.f32.mrb[7].mxu1  ;;  %v754_v29 = vpop.f32.mrb[7].mxu0 }
 0x1c3   : >> { %v5618_v32 = vpop.f32.mrb[8].mxu1  ;;  %v5650_v34 = vpop.f32.mrb[8].mxu0 }
 0x1c4   : >> { %v917_v8 = vadd.f32 %v5618_v32, %v5586_v22  ;;  %v912_v11 = vpop.f32.mrb[9].mxu1  ;;  %v1135_v20 = vpop.f32.mrb[9].mxu0 }
 0x1c6   : >> { %v1206_v18 = vadd.f32 %v5650_v34, %v917_v8 }
 0x1c7   : >> { %v5621_v14 = vpop.f32.mrb[10].mxu1  ;;  %v5653_v5 = vpop.f32.mrb[10].mxu0 }
 0x1c8   : >> { %v921_v58 = vpop.f32.mrb[11].mxu1  ;;  %v1144_v62 = vpop.f32.mrb[11].mxu0 }
 0x1c9   : >> { %v922_v7 = vadd.f32 %v921_v58, %v736_v3 }
 0x1cb   : >> { %v1207_v30 = vadd.f32 %v1144_v62, %v922_v7  ;;  %v5624_v24 = vpop.f32.mrb[12].mxu1  ;;  %v5656_v13 = vpop.f32.mrb[12].mxu0 }
 0x1cc   : >> { %v935_v0 = vadd.f32 %v5624_v24, %v5592_v19  ;;  %v930_v56 = vpop.f32.mrb[13].mxu1  ;;  %v1153_v26 = vpop.f32.mrb[13].mxu0 }
 0x1ce   : >> { %v1208_v17 = vadd.f32 %v5656_v13, %v935_v0 }
 0x1cf   : >> { %v5627_v4 = vpop.f32.mrb[14].mxu1  ;;  %v5659_v6 = vpop.f32.mrb[14].mxu0 }
 0x1d0   : >> { %v939_v15 = vpop.f32.mrb[15].mxu1  ;;  %v1162_v49 = vpop.f32.mrb[15].mxu0 }
 0x1d1   : >> { %v940_v41 = vadd.f32 %v939_v15, %v754_v29 }
 0x1d3   : >> { %v1209_v55 = vadd.f32 %v1162_v49, %v940_v41  ;;  %v5630_v61 = vpop.f32.mrb[16].mxu1  ;;  %v5662_v9 = vpop.f32.mrb[16].mxu0 }
 0x1d4   : >> { %v953_v46 = vadd.f32 %v5630_v61, %v5598_v1  ;;  %v948_v63 = vpop.f32.mrb[17].mxu1  ;;  %v1171_v10 = vpop.f32.mrb[17].mxu0 }
 0x1d6   : >> { %v1210_v60 = vadd.f32 %v5662_v9, %v953_v46 }
 0x1d7   : >> { %v5633_v37 = vpop.f32.mrb[18].mxu1  ;;  %v5665_v38 = vpop.f32.mrb[18].mxu0 }
 0x1d8   : >> { %v957_v28 = vpop.f32.mrb[19].mxu1  ;;  %v1180_v35 = vpop.f32.mrb[19].mxu0 }
 0x1d9   : >> { %v958_v16 = vadd.f32 %v957_v28, %v772_v2 }
 0x1db   : >> { %v1211_v39 = vadd.f32 %v1180_v35, %v958_v16  ;;  %v5636_v45 = vpop.f32.mrb[20].mxu1  ;;  %v5668_v40 = vpop.f32.mrb[20].mxu0 }
 0x1dc   : >> { %v971_v57 = vadd.f32 %v5636_v45, %v5604_v12  ;;  %v966_v25 = vpop.f32.mrb[21].mxu1  ;;  %v1189_v33 = vpop.f32.mrb[21].mxu0 }
 0x1de   : >> { %v1212_v36 = vadd.f32 %v5668_v40, %v971_v57 }
 0x1df   : >> { %v5639_v42 = vpop.f32.mrb[22].mxu1  ;;  %v5671_v48 = vpop.f32.mrb[22].mxu0 }
 0x1e0   : >> { %v975_v50 = vpop.f32.mrb[23].mxu1  ;;  %v1198_v54 = vpop.f32.mrb[23].mxu0 }
 0x1e1   : >> { %v976_v59 = vadd.f32 %v975_v50, %v790_v27 }
 0x1e3   : >> { %v1213_v1 = vadd.f32 %v1198_v54, %v976_v59  ;;  %v5682_v22 = vpop.f32.mrb[24].mxu1  ;;  %v5714_v31 = vpop.f32.mrb[24].mxu0 }
 0x1e4   : >> { %v1455_v43 = vadd.f32 %v5682_v22, %v1206_v18  ;;  %v1384_v44 = vpop.f32.mrb[25].mxu1  ;;  %v1582_v47 = vpop.f32.mrb[25].mxu0 }
 0x1e6   : >> { %v1653_v3 = vadd.f32 %v5714_v31, %v1455_v43 }
 0x1e7   : >> { %v5685_v2 = vpop.f32.mrb[26].mxu1  ;;  %v5717_v19 = vpop.f32.mrb[26].mxu0 }
 0x1e8   : >> { %v1393_v21 = vpop.f32.mrb[27].mxu1  ;;  %v1591_v52 = vpop.f32.mrb[27].mxu0 }
 0x1e9   : >> { %v1456_v12 = vadd.f32 %v1393_v21, %v1207_v30 }
 0x1eb   : >> { %v1654_v23 = vadd.f32 %v1591_v52, %v1456_v12  ;;  %v5688_v53 = vpop.f32.mrb[28].mxu1  ;;  %v5720_v29 = vpop.f32.mrb[28].mxu0 }
 0x1ec   : >> { %v1457_v32 = vadd.f32 %v5688_v53, %v1208_v17  ;;  %v1402_v34 = vpop.f32.mrb[29].mxu1  ;;  %v1600_v8 = vpop.f32.mrb[29].mxu0 }
 0x1ee   : >> { %v1655_v11 = vadd.f32 %v5720_v29, %v1457_v32 }
 0x1ef   : >> { %v5691_v27 = vpop.f32.mrb[30].mxu1  ;;  %v5723_v20 = vpop.f32.mrb[30].mxu0 }
 0x1f0   : >> { %v1411_v14 = vpop.f32.mrb[31].mxu1  ;;  %v1609_v5 = vpop.f32.mrb[31].mxu0 }
 0x1f1   : >> { %v1458_v18 = vadd.f32 %v1411_v14, %v1209_v55 }
 0x1f3   : >> { %v1656_v58 = vadd.f32 %v1609_v5, %v1458_v18  ;;  %v5694_v62 = vpop.f32.mrb[32].mxu1  ;;  %v5726_v7 = vpop.f32.mrb[32].mxu0 }
 0x1f4   : >> { %v1459_v24 = vadd.f32 %v5694_v62, %v1210_v60  ;;  %v1420_v13 = vpop.f32.mrb[33].mxu1  ;;  %v1618_v0 = vpop.f32.mrb[33].mxu0 }
 0x1f6   : >> { %v1657_v56 = vadd.f32 %v5726_v7, %v1459_v24 }
 0x1f7   : >> { %v5697_v30 = vpop.f32.mrb[34].mxu1  ;;  %v5729_v26 = vpop.f32.mrb[34].mxu0 }
 0x1f8   : >> { %v1429_v4 = vpop.f32.mrb[35].mxu1  ;;  %v1627_v6 = vpop.f32.mrb[35].mxu0 }
 0x1f9   : >> { %v1460_v17 = vadd.f32 %v1429_v4, %v1211_v39 }
 0x1fb   : >> { %v1658_v15 = vadd.f32 %v1627_v6, %v1460_v17  ;;  %v5700_v49 = vpop.f32.mrb[36].mxu1  ;;  %v5732_v41 = vpop.f32.mrb[36].mxu0 }
 0x1fc   : >> { %v1461_v61 = vadd.f32 %v5700_v49, %v1212_v36  ;;  %v1438_v9 = vpop.f32.mrb[37].mxu1  ;;  %v1636_v46 = vpop.f32.mrb[37].mxu0 }
 0x1fe   : >> { %v1659_v63 = vadd.f32 %v5732_v41, %v1461_v61  ;;  %v8376_v61 = vld [vmem:[%s9066_s2] ss:$0 sm:$0xff] }
 0x1ff   : >> { %v5703_v55 = vpop.f32.mrb[38].mxu1  ;;  %v5735_v10 = vpop.f32.mrb[38].mxu0 }
 0x200   : >> { %v1447_v37 = vpop.f32.mrb[39].mxu1  ;;  %v1645_v38 = vpop.f32.mrb[39].mxu0 }
 0x201   : >> { %v1462_v60 = vadd.f32 %v1447_v37, %v1213_v1 }
 0x203   : >> { %v1660_v28 = vadd.f32 %v1645_v38, %v1462_v60  ;;  %v5746_v35 = vpop.f32.mrb[40].mxu1  ;;  %v5778_v16 = vpop.f32.mrb[40].mxu0 }
 0x204   : >> { %v1883_v45 = vadd.f32 %v5746_v35, %v1653_v3  ;;  %v1812_v40 = vpop.f32.mrb[41].mxu1  ;;  %v2061_v57 = vpop.f32.mrb[41].mxu0 }
 0x206   : >> { %v2132_v25 = vadd.f32 %v5778_v16, %v1883_v45 }
 0x207   : >> { %v5749_v39 = vpop.f32.mrb[42].mxu1  ;;  %v5781_v33 = vpop.f32.mrb[42].mxu0 }
 0x208   : >> { %v1821_v42 = vpop.f32.mrb[43].mxu1  ;;  %v2070_v48 = vpop.f32.mrb[43].mxu0 }
 0x209   : >> { %v1884_v36 = vadd.f32 %v1821_v42, %v1654_v23 }
 0x20b   : >> { %v2133_v50 = vadd.f32 %v2070_v48, %v1884_v36  ;;  %v5752_v54 = vpop.f32.mrb[44].mxu1  ;;  %v5784_v59 = vpop.f32.mrb[44].mxu0 }
 0x20c   : >> { %v1885_v22 = vadd.f32 %v5752_v54, %v1655_v11  ;;  %v1830_v31 = vpop.f32.mrb[45].mxu1  ;;  %v2079_v43 = vpop.f32.mrb[45].mxu0 }
 0x20e   : >> { %v2134_v44 = vadd.f32 %v5784_v59, %v1885_v22 }
 0x20f   : >> { %v5755_v1 = vpop.f32.mrb[46].mxu1  ;;  %v5787_v47 = vpop.f32.mrb[46].mxu0 }
 0x210   : >> { %v1839_v2 = vpop.f32.mrb[47].mxu1  ;;  %v2088_v19 = vpop.f32.mrb[47].mxu0 }
 0x211   : >> { %v1886_v3 = vadd.f32 %v1839_v2, %v1656_v58 }
 0x213   : >> { %v2135_v21 = vadd.f32 %v2088_v19, %v1886_v3  ;;  %v5758_v52 = vpop.f32.mrb[48].mxu1  ;;  %v5790_v12 = vpop.f32.mrb[48].mxu0 }
 0x214   : >> { %v1887_v53 = vadd.f32 %v5758_v52, %v1657_v56  ;;  %v1848_v29 = vpop.f32.mrb[49].mxu1  ;;  %v2097_v32 = vpop.f32.mrb[49].mxu0 }
 0x216   : >> { %v2136_v34 = vadd.f32 %v5790_v12, %v1887_v53 }
 0x217   : >> { %v5761_v23 = vpop.f32.mrb[50].mxu1  ;;  %v5793_v8 = vpop.f32.mrb[50].mxu0 }
 0x218   : >> { %v1857_v27 = vpop.f32.mrb[51].mxu1  ;;  %v2106_v20 = vpop.f32.mrb[51].mxu0 }
 0x219   : >> { %v1888_v11 = vadd.f32 %v1857_v27, %v1658_v15 }
 0x21b   : >> { %v2137_v14 = vadd.f32 %v2106_v20, %v1888_v11  ;;  %v5764_v5 = vpop.f32.mrb[52].mxu1  ;;  %v5796_v18 = vpop.f32.mrb[52].mxu0 }
 0x21c   : >> { %v1889_v62 = vadd.f32 %v5764_v5, %v1659_v63  ;;  %v1866_v7 = vpop.f32.mrb[53].mxu1  ;;  %v2115_v24 = vpop.f32.mrb[53].mxu0 }
 0x21e   : >> { %v2138_v13 = vadd.f32 %v5796_v18, %v1889_v62 }
 0x21f   : >> { %v5767_v58 = vpop.f32.mrb[54].mxu1  ;;  %v5799_v0 = vpop.f32.mrb[54].mxu0 }
 0x220   : >> { %v1875_v30 = vpop.f32.mrb[55].mxu1  ;;  %v2124_v26 = vpop.f32.mrb[55].mxu0 }
 0x221   : >> { %v1890_v56 = vadd.f32 %v1875_v30, %v1660_v28 }
 0x223   : >> { %v8371_v4 = vadd.f32 %v2124_v26, %v1890_v56  ;;  %v5810_v6 = vpop.f32.mrb[56].mxu1  ;;  %v5842_v17 = vpop.f32.mrb[56].mxu0 }
 0x224   : >> { %v2330_v49 = vadd.f32 %v5810_v6, %v2132_v25  ;;  %v2259_v41 = vpop.f32.mrb[57].mxu1  ;;  %v2489_v15 = vpop.f32.mrb[57].mxu0 }
 0x225   : > { %v8405_v41 = vmov (%p7711_p3), 0.0  }
 0x226   : >> { %v2560_v9 = vadd.f32 %v5842_v17, %v2330_v49 }
 0x227   : >> { %v5813_v46 = vpop.f32.mrb[58].mxu1  ;;  %v5845_v63 = vpop.f32.mrb[58].mxu0 }
 0x228   : >> { %v2575_v55 = vadd.f32 %v8376_v61, %v2560_v9  ;;  %v2268_v10 = vpop.f32.mrb[59].mxu1  ;;  %v2498_v37 = vpop.f32.mrb[59].mxu0 }
 0x229   : >> { %v2331_v38 = vadd.f32 %v2268_v10, %v2133_v50 }
 0x22a   : >> { %v2583_v60 = vmax.f32 %v2575_v55, 0.0 }
 0x22b   : >> { %v2561_v28 = vadd.f32 %v2498_v37, %v2331_v38  ;;  %v5816_v35 = vpop.f32.mrb[60].mxu1  ;;  %v5848_v16 = vpop.f32.mrb[60].mxu0 }
 0x22c   : >> { %4986 = vst [vmem:[%s8381_s24 + $0x28] sm:$0xff] %v2583_v60  ;;  %v2332_v45 = vadd.f32 %v5816_v35, %v2134_v44  ;;  %v2277_v40 = vpop.f32.mrb[61].mxu1  ;;  %v2507_v57 = vpop.f32.mrb[61].mxu0 }
 0x22d   : >> { %v2576_v25 = vadd.f32 %v8376_v61, %v2561_v28 }
 0x22e   : >> { %v2562_v39 = vadd.f32 %v5848_v16, %v2332_v45 }
 0x22f   : >> { %v2584_v33 = vmax.f32 %v2576_v25, 0.0  ;;  %v5819_v42 = vpop.f32.mrb[62].mxu1  ;;  %v5851_v48 = vpop.f32.mrb[62].mxu0 }
 0x230   : >> { %v2577_v36 = vadd.f32 %v8376_v61, %v2562_v39  ;;  %v2286_v50 = vpop.f32.mrb[63].mxu1  ;;  %v2516_v54 = vpop.f32.mrb[63].mxu0 }
 0x231   : >> { %4987 = vst [vmem:[%s8381_s24 + $0x30] sm:$0xff] %v2584_v33  ;;  %v2333_v59 = vadd.f32 %v2286_v50, %v2135_v21 }
 0x232   : >> { %v2585_v22 = vmax.f32 %v2577_v36, 0.0 }
 0x233   : >> { %v2563_v31 = vadd.f32 %v2516_v54, %v2333_v59  ;;  %v5822_v43 = vpop.f32.mrb[64].mxu1  ;;  %v5854_v44 = vpop.f32.mrb[64].mxu0 }
 0x234   : >> { %4988 = vst [vmem:[%s8381_s24 + $0x48] sm:$0xff] %v2585_v22  ;;  %v2334_v1 = vadd.f32 %v5822_v43, %v2136_v34  ;;  %v2295_v47 = vpop.f32.mrb[65].mxu1  ;;  %v2525_v2 = vpop.f32.mrb[65].mxu0 }
 0x235   : >> { %v2578_v19 = vadd.f32 %v8376_v61, %v2563_v31 }
 0x236   : >> { %v2564_v3 = vadd.f32 %v5854_v44, %v2334_v1 }
 0x237   : >> { %v2586_v52 = vmax.f32 %v2578_v19, 0.0  ;;  %v5825_v12 = vpop.f32.mrb[66].mxu1  ;;  %v5857_v53 = vpop.f32.mrb[66].mxu0 }
 0x238   : >> { %v2579_v29 = vadd.f32 %v8376_v61, %v2564_v3  ;;  %v2304_v32 = vpop.f32.mrb[67].mxu1  ;;  %v2534_v21 = vpop.f32.mrb[67].mxu0 }
 0x239   : >> { %4989 = vst [vmem:[%s8381_s24 + $0x50] sm:$0xff] %v2586_v52  ;;  %v2335_v23 = vadd.f32 %v2304_v32, %v2137_v14 }
 0x23a   : >> { %v2587_v8 = vmax.f32 %v2579_v29, 0.0 }
 0x23b   : >> { %v2565_v27 = vadd.f32 %v2534_v21, %v2335_v23  ;;  %v5828_v20 = vpop.f32.mrb[68].mxu1  ;;  %v5860_v34 = vpop.f32.mrb[68].mxu0 }
 0x23c   : >> { %4990 = vst [vmem:[%s8381_s24 + $0x68] sm:$0xff] %v2587_v8  ;;  %v2336_v11 = vadd.f32 %v5828_v20, %v2138_v13  ;;  %v2313_v5 = vpop.f32.mrb[69].mxu1  ;;  %v2543_v18 = vpop.f32.mrb[69].mxu0 }
 0x23d   : >> { %v2580_v62 = vadd.f32 %v8376_v61, %v2565_v27 }
 0x23e   : >> { %v2566_v7 = vadd.f32 %v5860_v34, %v2336_v11 }
 0x23f   : >> { %v2588_v24 = vmax.f32 %v2580_v62, 0.0  ;;  %v5831_v58 = vpop.f32.mrb[70].mxu1  ;;  %v5863_v0 = vpop.f32.mrb[70].mxu0 }
 0x240   : >> { %v2581_v30 = vadd.f32 %v8376_v61, %v2566_v7  ;;  %v2322_v14 = vpop.f32.mrb[71].mxu1  ;;  %v2552_v26 = vpop.f32.mrb[71].mxu0 }
 0x241   : >> { %4991 = vst [vmem:[%s8381_s24 + $0x70] sm:$0xff] %v2588_v24  ;;  %v2337_v56 = vadd.f32 %v2322_v14, %v8371_v4 }
 0x242   : >> { %v2589_v6 = vmax.f32 %v2581_v30, 0.0 }
 0x243   : >> { %v2567_v17 = vadd.f32 %v2552_v26, %v2337_v56  ;;  %521 = sbr.rel (!%p7711_p3) target bundleno = 203 (0xcb), region = 174 }
 0x244   : >> { %4992 = vst [vmem:[%s8381_s24 + $0x88] sm:$0xff] %v2589_v6 }
 0x245   : >> { %v2582_v13 = vadd.f32 %v8376_v61, %v2567_v17 }
 0x247   : >> { %v2590_v49 = vmax.f32 %v2582_v13, 0.0 }
 0x249   : >> { %4993 = vst [vmem:[%s8381_s24 + $0x90] sm:$0xff] %v2590_v49 }
 0x24a LB: >> { %v2678_v4 = vld [vmem:[#allocation9 + $0x80] sm:$0xff]  ;;  %v2679_v15 = vld [vmem:[#allocation9 + $0x88] sm:$0xff]  ;;  %v2680_v63 = vld [vmem:[#allocation9 + $0x90] sm:$0xff]  ;;  %s5067_s17 = sshll.u32 %s7240_s19, 7  ;;  %s2605_s19 = sadd.s32 1, %s7240_s19   ;;  %s7240_s19 = sphi %s8407_s19, %s2605_s19   ;;  %v7236_v41 = vphi %v8405_v41, %v9139_v41  }
 0x24b   : >> { %v2661_v61 = vld [vmem:[#allocation9] sm:$0xff]  ;;  %v6510_v9 = vpack.c.bf16 %v2679_v15, %v2678_v4  ;;  %v2662_v46 = vld [vmem:[#allocation9 + $0x8] sm:$0xff]  ;;  %v2681_v55 = vld [vmem:[#allocation9 + $0x98] sm:$0xff]  ;;  %s8418_s25 = scalar_lea.vmem [#allocation3], %s5067_s17  ;;  %s8920_s20 = scalar_lea.vmem [#allocation2], %s5067_s17 }
 0x24c   : >> { %v6542_v10 = vpack.c.bf16 %v2662_v46, %v2661_v61  ;;  %v6514_v37 = vpack.c.bf16 %v2681_v55, %v2680_v63  ;;  %v2663_v38 = vld [vmem:[#allocation9 + $0x10] sm:$0xff]  ;;  %v2664_v60 = vld [vmem:[#allocation9 + $0x18] sm:$0xff]  ;;  %v2682_v28 = vld [vmem:[#allocation9 + $0xa0] sm:$0xff]  ;;  %p2602_p5 = scmp.ge.s32.totalorder %s2605_s19, 4  }
 0x24d   : >> { %6511 = vmatprep.subr.bf16.mxu0 %v6510_v9  ;;  %v6546_v35 = vpack.c.bf16 %v2664_v60, %v2663_v38  ;;  %v2683_v16 = vld [vmem:[#allocation9 + $0xa8] sm:$0xff]  ;;  %v2665_v45 = vld [vmem:[#allocation9 + $0x20] sm:$0xff]  ;;  %v2684_v39 = vld [vmem:[#allocation9 + $0xb0] sm:$0xff]  ;;  %vm7255_vm3 = vmmov (%p2602_p5), 0   ;;  %s8972_s21 = smov (%p2602_p5), 0  }
 0x24e   : >> { %v2666_v40 = vld [vmem:[#allocation9 + $0x28] sm:$0xff]  ;;  %6543 = vmatprep.subr.bf16.mxu1 %v6542_v10  ;;  %6513 = vmatpush3.bf16.msra.mxu0 %v6510_v9  ;;  %v6518_v57 = vpack.c.bf16 %v2683_v16, %v2682_v28  ;;  %v2685_v33 = vld [vmem:[#allocation9 + $0xb8] sm:$0xff]  ;;  %v2667_v42 = vld [vmem:[#allocation9 + $0x30] sm:$0xff] }
 0x24f   : >> { %6545 = vmatpush3.bf16.msra.mxu1 %v6542_v10  ;;  %6515 = vmatprep.subr.bf16.mxu0 %v6514_v37  ;;  %v6550_v25 = vpack.c.bf16 %v2666_v40, %v2665_v45  ;;  %v2668_v48 = vld [vmem:[#allocation9 + $0x38] sm:$0xff]  ;;  %v6522_v36 = vpack.c.bf16 %v2685_v33, %v2684_v39  ;;  %v2686_v54 = vld [vmem:[#allocation9 + $0xc0] sm:$0xff]  ;;  %v2687_v59 = vld [vmem:[#allocation9 + $0xc8] sm:$0xff] }
 0x250   : >> { %6547 = vmatprep.subr.bf16.mxu1 %v6546_v35  ;;  %v6554_v50 = vpack.c.bf16 %v2668_v48, %v2667_v42  ;;  %v8421_v22 = vld [vmem:[%s8418_s25] sm:$0xff]  ;;  %v2670_v43 = vld [vmem:[#allocation9 + $0x48] sm:$0xff]  ;;  %v8425_v44 = vld [vmem:[%s8418_s25 + $0x78] sm:$0xff]  ;;  %v6526_v2 = vpack.c.bf16 %v2687_v59, %v2686_v54 }
 0x251   : >> { %v2669_v31 = vld [vmem:[#allocation9 + $0x40] sm:$0xff]  ;;  %5896 = vmatprep.mubr.f32.mxu0 %v8421_v22  ;;  %v2626_v1 = vrot.slane %v8421_v22, 7  ;;  %v8429_v47 = vrot.slane %v8425_v44, 7  ;;  %v2688_v3 = vld [vmem:[#allocation9 + $0xd0] sm:$0xff]  ;;  %v2689_v52 = vld [vmem:[#allocation9 + $0xd8] sm:$0xff] }
 0x252   : >> { %6517 = vmatpush3.bf16.msra.mxu0 %v6514_v37  ;;  %v6558_v19 = vpack.c.bf16 %v2670_v43, %v2669_v31  ;;  %v2671_v53 = vld [vmem:[#allocation9 + $0x50] sm:$0xff]  ;;  %v2672_v29 = vld [vmem:[#allocation9 + $0x58] sm:$0xff]  ;;  %v6530_v32 = vpack.c.bf16 %v2689_v52, %v2688_v3  ;;  %v2690_v23 = vld [vmem:[#allocation9 + $0xe0] sm:$0xff] }
 0x253   : >> { %6549 = vmatpush3.bf16.msra.mxu1 %v6546_v35  ;;  %6519 = vmatprep.subr.bf16.mxu0 %v6518_v57  ;;  %v2660_v12 = vsel %vm587_vm1, %v8429_v47, %v2626_v1  ;;  %v6562_v21 = vpack.c.bf16 %v2672_v29, %v2671_v53  ;;  %v2691_v8 = vld [vmem:[#allocation9 + $0xe8] sm:$0xff]  ;;  %v2673_v27 = vld [vmem:[#allocation9 + $0x60] sm:$0xff]  ;;  %v2692_v5 = vld [vmem:[#allocation9 + $0xf0] sm:$0xff] }
 0x254   : >> { %6551 = vmatprep.subr.bf16.mxu1 %v6550_v25  ;;  %5952 = vmatprep.mubr.f32.mxu1 %v2660_v12  ;;  %v2674_v20 = vld [vmem:[#allocation9 + $0x68] sm:$0xff]  ;;  %v6534_v34 = vpack.c.bf16 %v2691_v8, %v2690_v23  ;;  %v2693_v18 = vld [vmem:[#allocation9 + $0xf8] sm:$0xff]  ;;  %v2675_v62 = vld [vmem:[#allocation9 + $0x70] sm:$0xff] }
 0x255   : >> { %v6566_v11 = vpack.c.bf16 %v2674_v20, %v2673_v27  ;;  %v2676_v7 = vld [vmem:[#allocation9 + $0x78] sm:$0xff]  ;;  %v6538_v24 = vpack.c.bf16 %v2693_v18, %v2692_v5  ;;  %v8437_v0 = vld [vmem:[%s8418_s25 + $0x8] sm:$0xff]  ;;  %v3002_v30 = vld [vmem:[#allocation9 + $0x100] sm:$0xff] }
 0x256   : >> { %6521 = vmatpush3.bf16.msra.mxu0 %v6518_v57  ;;  %v6570_v58 = vpack.c.bf16 %v2676_v7, %v2675_v62  ;;  %v3003_v14 = vld [vmem:[#allocation9 + $0x108] sm:$0xff]  ;;  %v3215_v26 = vld [vmem:[#allocation9 + $0x180] sm:$0xff]  ;;  %v8440_v6 = vld [vmem:[%s8418_s25 + $0x10] sm:$0xff]  ;;  %v2627_v17 = vrot.slane %v8437_v0, 7 }
 0x257   : >> { %6553 = vmatpush3.bf16.msra.mxu1 %v6550_v25  ;;  %6523 = vmatprep.subr.bf16.mxu0 %v6522_v36  ;;  %v3216_v56 = vld [vmem:[#allocation9 + $0x188] sm:$0xff]  ;;  %v6574_v13 = vpack.c.bf16 %v3003_v14, %v3002_v30  ;;  %v8444_v4 = vld [vmem:[%s8418_s25 + $0x18] sm:$0xff]  ;;  %v2628_v15 = vrot.slane %v8440_v6, 7  ;;  %v3004_v61 = vld [vmem:[#allocation9 + $0x110] sm:$0xff] }
 0x258   : >> { %6555 = vmatprep.subr.bf16.mxu1 %v6554_v50  ;;  %v6606_v49 = vpack.c.bf16 %v3216_v56, %v3215_v26  ;;  %v3005_v9 = vld [vmem:[#allocation9 + $0x118] sm:$0xff]  ;;  %v3217_v46 = vld [vmem:[#allocation9 + $0x190] sm:$0xff]  ;;  %v8448_v55 = vld [vmem:[%s8418_s25 + $0x20] sm:$0xff]  ;;  %v2659_v10 = vsel %vm587_vm1, %v2626_v1, %v2627_v17  ;;  %v2629_v37 = vrot.slane %v8444_v4, 7 }
 0x259   : >> { %v3218_v63 = vld [vmem:[#allocation9 + $0x198] sm:$0xff]  ;;  %v6578_v38 = vpack.c.bf16 %v3005_v9, %v3004_v61  ;;  %v8456_v60 = vld [vmem:[%s8418_s25 + $0x28] sm:$0xff]  ;;  %v2658_v28 = vsel %vm587_vm1, %v2627_v17, %v2628_v15  ;;  %v8462_v16 = vrot.slane %v8448_v55, 7  ;;  %v3006_v45 = vld [vmem:[#allocation9 + $0x120] sm:$0xff] }
 0x25a   : >> { %6525 = vmatpush3.bf16.msra.mxu0 %v6522_v36  ;;  %v6610_v35 = vpack.c.bf16 %v3218_v63, %v3217_v46  ;;  %v3007_v40 = vld [vmem:[#allocation9 + $0x128] sm:$0xff]  ;;  %v8465_v57 = vld [vmem:[%s8418_s25 + $0x80] sm:$0xff]  ;;  %v8468_v33 = vld [vmem:[%s8418_s25 + $0x30] sm:$0xff]  ;;  %v2657_v48 = vsel %vm587_vm1, %v2628_v15, %v2629_v37  ;;  %v2631_v36 = vrot.slane %v8456_v60, 7 }
 0x25b   : >> { %6557 = vmatpush3.bf16.msra.mxu1 %v6554_v50  ;;  %6527 = vmatprep.subr.bf16.mxu0 %v6526_v2  ;;  %v3219_v25 = vld [vmem:[#allocation9 + $0x1a0] sm:$0xff]  ;;  %v3220_v39 = vld [vmem:[#allocation9 + $0x1a8] sm:$0xff]  ;;  %v8471_v42 = vrot.slane %v8465_v57, 7  ;;  %v6582_v50 = vpack.c.bf16 %v3007_v40, %v3006_v45  ;;  %v8478_v54 = vld [vmem:[%s8418_s25 + $0x38] sm:$0xff]  ;;  %v2656_v31 = vsel %vm587_vm1, %v2629_v37, %v8462_v16  ;;  %v2632_v1 = vrot.slane %v8468_v33, 7 }
 0x25c   : >> { %6559 = vmatprep.subr.bf16.mxu1 %v6558_v19  ;;  %v6614_v43 = vpack.c.bf16 %v3220_v39, %v3219_v25  ;;  %v3221_v3 = vld [vmem:[#allocation9 + $0x1b0] sm:$0xff]  ;;  %v3222_v52 = vld [vmem:[#allocation9 + $0x1b8] sm:$0xff]  ;;  %v8492_v12 = vld [vmem:[%s8418_s25 + $0x40] sm:$0xff]  ;;  %v8498_v53 = vsel %vm587_vm1, %v8462_v16, %v2631_v36  ;;  %v2633_v29 = vrot.slane %v8478_v54, 7 }
 0x25d   : >> { %v8484_v59 = vsel %vm587_vm1, %v8429_v47, %v8471_v42  ;;  %v8507_v23 = vsel %vm587_vm1, %v2631_v36, %v2632_v1  ;;  %v6618_v8 = vpack.c.bf16 %v3222_v52, %v3221_v3  ;;  %v2634_v27 = vrot.slane %v8492_v12, 7  ;;  %v3010_v20 = vld [vmem:[#allocation9 + $0x140] sm:$0xff]  ;;  %v3224_v5 = vld [vmem:[#allocation9 + $0x1c8] sm:$0xff]  ;;  %v8512_v18 = vld [vmem:[%s8418_s25 + $0x50] sm:$0xff] }
 0x25e   : >> { %6529 = vmatpush3.bf16.msra.mxu0 %v6526_v2  ;;  %v3008_v2 = vld [vmem:[#allocation9 + $0x130] sm:$0xff]  ;;  %v8517_v62 = vsel %vm587_vm1, %v2632_v1, %v2633_v29  ;;  %v2636_v26 = vrot.slane %v8512_v18, 7  ;;  %v3013_v17 = vld [vmem:[#allocation9 + $0x158] sm:$0xff]  ;;  %v8532_v15 = vld [vmem:[%s8418_s25 + $0x60] sm:$0xff] }
 0x25f   : >> { %6561 = vmatpush3.bf16.msra.mxu1 %v6558_v19  ;;  %6531 = vmatprep.subr.bf16.mxu0 %v6530_v32  ;;  %v3009_v19 = vld [vmem:[#allocation9 + $0x138] sm:$0xff]  ;;  %v8527_v30 = vsel %vm587_vm1, %v2633_v29, %v2634_v27  ;;  %v3012_v56 = vld [vmem:[#allocation9 + $0x150] sm:$0xff]  ;;  %v8548_v37 = vld [vmem:[%s8418_s25 + $0x68] sm:$0xff]  ;;  %v2638_v39 = vrot.slane %v8532_v15, 7 }
 0x260   : >> { %6563 = vmatprep.subr.bf16.mxu1 %v6562_v21  ;;  %v8541_v46 = vld [vmem:[%s8418_s25 + $0x70] sm:$0xff]  ;;  %v8544_v63 = vld [vmem:[%s8418_s25 + $0xb8] sm:$0xff]  ;;  %v3228_v36 = vld [vmem:[#allocation9 + $0x1e8] sm:$0xff]  ;;  %v2639_v52 = vrot.slane %v8548_v37, 7 }
 0x261   : >> { %v9088_v45 = vrot.slane %v8544_v63, 1  ;;  %v8567_v1 = vld [vmem:[%s8418_s25 + $0x98] sm:$0xff] }
 0x262   : >> { %6533 = vmatpush3.bf16.msra.mxu0 %v6530_v32  ;;  %v6586_v32 = vpack.c.bf16 %v3009_v19, %v3008_v2 }
 0x263   : >> { %6565 = vmatpush3.bf16.msra.mxu1 %v6562_v21  ;;  %6535 = vmatprep.subr.bf16.mxu0 %v6534_v34  ;;  %v8502_v21 = vld [vmem:[%s8418_s25 + $0x48] sm:$0xff] }
 0x264   : >> { %6567 = vmatprep.subr.bf16.mxu1 %v6566_v11  ;;  %v2635_v7 = vrot.slane %v8502_v21, 7 }
 0x266   : >> { %6537 = vmatpush3.bf16.msra.mxu0 %v6534_v34  ;;  %v3011_v34 = vld [vmem:[#allocation9 + $0x148] sm:$0xff]  ;;  %v8537_v61 = vsel %vm587_vm1, %v2634_v27, %v2635_v7  ;;  %v8555_v40 = vsel %vm587_vm1, %v2635_v7, %v2636_v26  ;;  %v8605_v7 = vrot.slane %v8567_v1, 7 }
 0x267   : >> { %6569 = vmatpush3.bf16.msra.mxu1 %v6566_v11  ;;  %6539 = vmatprep.subr.bf16.mxu0 %v6538_v24  ;;  %v3223_v11 = vld [vmem:[#allocation9 + $0x1c0] sm:$0xff] }
 0x268   : >> { %6571 = vmatprep.subr.bf16.mxu1 %v6570_v58  ;;  %v6622_v14 = vpack.c.bf16 %v3224_v5, %v3223_v11  ;;  %v3016_v11 = vld [vmem:[#allocation9 + $0x170] sm:$0xff]  ;;  %v3017_v5 = vld [vmem:[#allocation9 + $0x178] sm:$0xff] }
 0x26a   : >> { %6541 = vmatpush3.bf16.msra.mxu0 %v6538_v24  ;;  %v6590_v24 = vpack.c.bf16 %v3011_v34, %v3010_v20  ;;  %v8597_v20 = vld [vmem:[%s8418_s25 + $0xa0] sm:$0xff] }
 0x26b   : >> { %6573 = vmatpush3.bf16.msra.mxu1 %v6570_v58  ;;  %6575 = vmatprep.subr.bf16.mxu0 %v6574_v13  ;;  %v8522_v58 = vld [vmem:[%s8418_s25 + $0x58] sm:$0xff] }
 0x26c   : >> { %6607 = vmatprep.subr.bf16.mxu1 %v6606_v49  ;;  %v2637_v9 = vrot.slane %v8522_v58, 7 }
 0x26d   : >> { %5897 = vmatmul.mubr.f32.vlgmr.msra.gmra.mrb[0].mxu0 %v8437_v0 }
 0x26e   : >> { %5953 = vmatmul.mubr.f32.vlgmr.msra.gmra.mrb[0].mxu1 %v2659_v10  ;;  %6577 = vmatpush3.bf16.msra.mxu0 %v6574_v13  ;;  %v3225_v13 = vld [vmem:[#allocation9 + $0x1d0] sm:$0xff]  ;;  %v6594_v10 = vpack.c.bf16 %v3013_v17, %v3012_v56  ;;  %v8579_v3 = vsel %vm587_vm1, %v2636_v26, %v2637_v9  ;;  %v8602_v34 = vsel %vm587_vm1, %v2637_v9, %v2638_v39  ;;  %v3230_v56 = vld [vmem:[#allocation9 + $0x1f8] sm:$0xff] }
 0x26f   : >> { %6609 = vmatpush3.bf16.msra.mxu1 %v6606_v49  ;;  %5899 = vmatprep.mubr.f32.mxu0 %v8440_v6  ;;  %v3226_v49 = vld [vmem:[#allocation9 + $0x1d8] sm:$0xff]  ;;  %v3229_v26 = vld [vmem:[#allocation9 + $0x1f0] sm:$0xff]  ;;  %v8613_v17 = vsel %vm587_vm1, %v2638_v39, %v2639_v52  ;;  %v6602_v9 = vpack.c.bf16 %v3017_v5, %v3016_v11  ;;  %v3377_v39 = vld [vmem:[#allocation9 + $0x200] sm:$0xff]  ;;  %v2970_v11 = vrot.slane %v8440_v6, 1 }
 0x270   : >> { %5955 = vmatprep.mubr.f32.mxu1 %v2658_v28  ;;  %6579 = vmatprep.subr.bf16.mxu0 %v6578_v38  ;;  %v3015_v28 = vld [vmem:[#allocation9 + $0x168] sm:$0xff]  ;;  %v6626_v25 = vpack.c.bf16 %v3226_v49, %v3225_v13  ;;  %v8616_v13 = vrot.slane %v8541_v46, 1 }
 0x271   : >> { %5900 = vmatmul.mubr.f32.gmra.mrb[2].mxu0 %v8444_v4  ;;  %6611 = vmatprep.subr.bf16.mxu1 %v6610_v35  ;;  %v3572_v5 = vld [vmem:[#allocation9 + $0x288] sm:$0xff] }
 0x272   : >> { %5956 = vmatmul.mubr.f32.gmra.mrb[2].mxu1 %v2657_v48  ;;  %6581 = vmatpush3.bf16.msra.mxu0 %v6578_v38  ;;  %v3014_v38 = vld [vmem:[#allocation9 + $0x160] sm:$0xff] }
 0x273   : >> { %6613 = vmatpush3.bf16.msra.mxu1 %v6610_v35  ;;  %5902 = vmatprep.mubr.f32.mxu0 %v8448_v55  ;;  %v9089_v35 = vrot.slane %v8544_v63, 7  ;;  %v3227_v48 = vld [vmem:[#allocation9 + $0x1e0] sm:$0xff] }
 0x274   : >> { %5958 = vmatprep.mubr.f32.mxu1 %v2656_v31  ;;  %6583 = vmatprep.subr.bf16.mxu0 %v6582_v50  ;;  %v8562_v31 = vld [vmem:[%s8418_s25 + $0x78] sm:$0xff] }
 0x275   : >> { %5903 = vmatmul.mubr.f32.gmra.mrb[4].mxu0 %v8456_v60  ;;  %6615 = vmatprep.subr.bf16.mxu1 %v6614_v43  ;;  %v8573_v2 = vsel %vm587_vm1, %v9089_v35, %v2634_v27  ;;  %v9091_v19 = vrot.slane %v8562_v31, 7  ;;  %v3576_v35 = vld [vmem:[#allocation9 + $0x2a8] sm:$0xff] }
 0x276   : >> { %5959 = vmatmul.mubr.f32.gmra.mrb[4].mxu1 %v8498_v53  ;;  %6585 = vmatpush3.bf16.msra.mxu0 %v6582_v50  ;;  %v8559_v50 = vrot.slane %v8492_v12, 1 }
 0x277   : >> { %6617 = vmatpush3.bf16.msra.mxu1 %v6614_v43  ;;  %5905 = vmatprep.mubr.f32.mxu0 %v8468_v33  ;;  %v2640_v43 = vrot.slane %v8541_v46, 7 }
 0x278   : >> { %5961 = vmatprep.mubr.f32.mxu1 %v8507_v23  ;;  %6587 = vmatprep.subr.bf16.mxu0 %v6586_v32  ;;  %v8587_v29 = vsel %vm999_vm2, %v9088_v45, %v8559_v50  ;;  %v3381_v45 = vld [vmem:[#allocation9 + $0x220] sm:$0xff] }
 0x279   : >> { %5906 = vmatmul.mubr.f32.gmra.mrb[6].mxu0 %v8478_v54  ;;  %6619 = vmatprep.subr.bf16.mxu1 %v6618_v8  ;;  %v8594_v27 = vsel %vm587_vm1, %v2640_v43, %v9091_v19  ;;  %v3392_v19 = vld [vmem:[#allocation9 + $0x278] sm:$0xff] }
 0x27a   : >> { %5962 = vmatmul.mubr.f32.gmra.mrb[6].mxu1 %v8517_v62  ;;  %6589 = vmatpush3.bf16.msra.mxu0 %v6586_v32  ;;  %v6598_v32 = vpack.c.bf16 %v3015_v28, %v3014_v38  ;;  %v2969_v38 = vrot.slane %v8437_v0, 1  ;;  %v8631_v28 = vsel %vm587_vm1, %v2639_v52, %v2640_v43  ;;  %v3571_v0 = vld [vmem:[#allocation9 + $0x280] sm:$0xff]  ;;  %v8646_v52 = vsel %vm587_vm1, %v2640_v43, %v8429_v47 }
 0x27b   : >> { %6621 = vmatpush3.bf16.msra.mxu1 %v6618_v8  ;;  %5908 = vmatprep.mubr.f32.mxu0 %v8492_v12  ;;  %v6630_v8 = vpack.c.bf16 %v3228_v36, %v3227_v48  ;;  %v3378_v48 = vld [vmem:[#allocation9 + $0x208] sm:$0xff]  ;;  %v3213_v47 = vsel %vm587_vm1, %v8605_v7, %v8462_v16  ;;  %v6670_v43 = vpack.c.bf16 %v3572_v5, %v3571_v0  ;;  %v2973_v5 = vrot.slane %v8456_v60, 1 }
 0x27c   : >> { %5964 = vmatprep.mubr.f32.mxu1 %v8527_v30  ;;  %6591 = vmatprep.subr.bf16.mxu0 %v6590_v24 }
 0x27d   : >> { %5909 = vmatmul.mubr.f32.gmra.mrb[8].mxu0 %v8502_v21  ;;  %6623 = vmatprep.subr.bf16.mxu1 %v6622_v14 }
 0x27e   : >> { %5965 = vmatmul.mubr.f32.gmra.mrb[8].mxu1 %v8537_v61  ;;  %6593 = vmatpush3.bf16.msra.mxu0 %v6590_v24  ;;  %v9090_v24 = vrot.slane %v8597_v20, 7 }
 0x27f   : >> { %6625 = vmatpush3.bf16.msra.mxu1 %v6622_v14  ;;  %5911 = vmatprep.mubr.f32.mxu0 %v8512_v18  ;;  %v9087_v14 = vrot.slane %v8562_v31, 1 }
 0x280   : >> { %5967 = vmatprep.mubr.f32.mxu1 %v8555_v40  ;;  %6595 = vmatprep.subr.bf16.mxu0 %v6594_v10  ;;  %v8623_v49 = vsel %vm587_vm1, %v8605_v7, %v9090_v24  ;;  %v3391_v24 = vld [vmem:[#allocation9 + $0x270] sm:$0xff] }
 0x281   : >> { %5912 = vmatmul.mubr.f32.gmra.mrb[10].mxu0 %v8522_v58  ;;  %6627 = vmatprep.subr.bf16.mxu1 %v6626_v25  ;;  %v8638_v36 = vsel %vm999_vm2, %v8616_v13, %v9087_v14  ;;  %v2998_v14 = vsel %vm999_vm2, %v2969_v38, %v2970_v11 }
 0x282   : >> { %5968 = vmatmul.mubr.f32.gmra.mrb[10].mxu1 %v8579_v3  ;;  %6597 = vmatpush3.bf16.msra.mxu0 %v6594_v10  ;;  %v9092_v10 = vrot.slane %v8421_v22, 1 }
 0x283   : >> { %6629 = vmatpush3.bf16.msra.mxu1 %v6626_v25  ;;  %5914 = vmatprep.mubr.f32.mxu0 %v8532_v15  ;;  %v6634_v25 = vpack.c.bf16 %v3230_v56, %v3229_v26  ;;  %v6638_v26 = vpack.c.bf16 %v3378_v48, %v3377_v39  ;;  %v3380_v56 = vld [vmem:[#allocation9 + $0x218] sm:$0xff]  ;;  %v8663_v39 = vrot.slane %v8448_v55, 1 }
 0x284   : >> { %5970 = vmatprep.mubr.f32.mxu1 %v8602_v34  ;;  %6599 = vmatprep.subr.bf16.mxu0 %v6598_v32  ;;  %v2999_v6 = vsel %vm999_vm2, %v9092_v10, %v2969_v38  ;;  %v3574_v48 = vld [vmem:[#allocation9 + $0x298] sm:$0xff]  ;;  %v3382_v38 = vld [vmem:[#allocation9 + $0x228] sm:$0xff] }
 0x285   : >> { %5915 = vmatmul.mubr.f32.gmra.mrb[12].mxu0 %v8548_v37  ;;  %6631 = vmatprep.subr.bf16.mxu1 %v6630_v8  ;;  %v3785_v10 = vld [vmem:[#allocation9 + $0x308] sm:$0xff] }
 0x286   : >> { %5971 = vmatmul.mubr.f32.gmra.mrb[12].mxu1 %v8613_v17  ;;  %6601 = vmatpush3.bf16.msra.mxu0 %v6598_v32  ;;  %v2971_v32 = vrot.slane %v8444_v4, 1  ;;  %v3573_v4 = vld [vmem:[#allocation9 + $0x290] sm:$0xff] }
 0x287   : >> { %6633 = vmatpush3.bf16.msra.mxu1 %v6630_v8  ;;  %5917 = vmatprep.mubr.f32.mxu0 %v8541_v46  ;;  %v3379_v8 = vld [vmem:[#allocation9 + $0x210] sm:$0xff] }
 0x288   : >> { %5973 = vmatprep.mubr.f32.mxu1 %v8631_v28  ;;  %6603 = vmatprep.subr.bf16.mxu0 %v6602_v9  ;;  %v2997_v16 = vsel %vm999_vm2, %v2970_v11, %v2971_v32  ;;  %v6642_v0 = vpack.c.bf16 %v3380_v56, %v3379_v8  ;;  %v2975_v11 = vrot.slane %v8478_v54, 1  ;;  %v3384_v8 = vld [vmem:[#allocation9 + $0x238] sm:$0xff] }
 0x289   : >> { %5918 = vmatmul.mubr.f32.gmra.mrb[14].mxu0 %v8425_v44  ;;  %6635 = vmatprep.subr.bf16.mxu1 %v6634_v25  ;;  %v3578_v56 = vld [vmem:[#allocation9 + $0x2b8] sm:$0xff] }
 0x28a   : >> { %5974 = vmatmul.mubr.f32.gmra.mrb[14].mxu1 %v8646_v52  ;;  %6605 = vmatpush3.bf16.msra.mxu0 %v6602_v9  ;;  %v6674_v9 = vpack.c.bf16 %v3574_v48, %v3573_v4  ;;  %v3385_v48 = vld [vmem:[#allocation9 + $0x240] sm:$0xff] }
 0x28b   : >> { %6637 = vmatpush3.bf16.msra.mxu1 %v6634_v25  ;;  %6008 = vmatprep.mubr.f32.mxu0 %v2999_v6  ;;  %v2996_v25 = vsel %vm999_vm2, %v2971_v32, %v8663_v39  ;;  %v2974_v6 = vrot.slane %v8468_v33, 1  ;;  %v3383_v32 = vld [vmem:[#allocation9 + $0x230] sm:$0xff] }
 0x28c   : >> { %6064 = vmatprep.mubr.f32.mxu1 %v3213_v47  ;;  %6639 = vmatprep.subr.bf16.mxu0 %v6638_v26  ;;  %v3575_v47 = vld [vmem:[#allocation9 + $0x2a0] sm:$0xff] }
 0x28d   : >> { %6009 = vmatmul.mubr.f32.vlgmr.msra.gmra.mrb[16].mxu0 %v2998_v14  ;;  %6671 = vmatprep.subr.bf16.mxu1 %v6670_v43  ;;  %v8677_v14 = vsel %vm999_vm2, %v8663_v39, %v2973_v5 }
 0x28e   : >> { %6065 = vmatmul.mubr.f32.vlgmr.msra.gmra.mrb[16].mxu1 %v8498_v53  ;;  %6641 = vmatpush3.bf16.msra.mxu0 %v6638_v26  ;;  %v6646_v53 = vpack.c.bf16 %v3382_v38, %v3381_v45  ;;  %v6678_v26 = vpack.c.bf16 %v3576_v35, %v3575_v47  ;;  %v8689_v35 = vsel %vm999_vm2, %v2974_v6, %v2975_v11 }
 0x28f   : >> { %6673 = vmatpush3.bf16.msra.mxu1 %v6670_v43  ;;  %6011 = vmatprep.mubr.f32.mxu0 %v2997_v16  ;;  %v3577_v43 = vld [vmem:[#allocation9 + $0x2b0] sm:$0xff]  ;;  %v6650_v45 = vpack.c.bf16 %v3384_v8, %v3383_v32  ;;  %v3386_v16 = vld [vmem:[#allocation9 + $0x248] sm:$0xff]  ;;  %v3582_v8 = vld [vmem:[#allocation9 + $0x2d8] sm:$0xff] }
 0x290   : >> { %6067 = vmatprep.mubr.f32.mxu1 %v8507_v23  ;;  %6643 = vmatprep.subr.bf16.mxu0 %v6642_v0  ;;  %v8683_v23 = vsel %vm999_vm2, %v2973_v5, %v2974_v6  ;;  %v6682_v4 = vpack.c.bf16 %v3578_v56, %v3577_v43  ;;  %v3579_v5 = vld [vmem:[#allocation9 + $0x2c0] sm:$0xff]  ;;  %v2979_v6 = vrot.slane %v8522_v58, 1  ;;  %v3581_v32 = vld [vmem:[#allocation9 + $0x2d0] sm:$0xff] }
 0x291   : >> { %6012 = vmatmul.mubr.f32.gmra.mrb[18].mxu0 %v2996_v25  ;;  %6675 = vmatprep.subr.bf16.mxu1 %v6674_v9  ;;  %v6654_v25 = vpack.c.bf16 %v3386_v16, %v3385_v48  ;;  %v6690_v48 = vpack.c.bf16 %v3582_v8, %v3581_v32  ;;  %v3390_v16 = vld [vmem:[#allocation9 + $0x268] sm:$0xff] }
 0x292   : >> { %6068 = vmatmul.mubr.f32.gmra.mrb[18].mxu1 %v8517_v62  ;;  %6645 = vmatpush3.bf16.msra.mxu0 %v6642_v0  ;;  %v2977_v62 = vrot.slane %v8502_v21, 1  ;;  %v2978_v0 = vrot.slane %v8512_v18, 1 }
 0x293   : >> { %6677 = vmatpush3.bf16.msra.mxu1 %v6674_v9  ;;  %6014 = vmatprep.mubr.f32.mxu0 %v8677_v14  ;;  %v3580_v9 = vld [vmem:[#allocation9 + $0x2c8] sm:$0xff] }
 0x294   : >> { %6070 = vmatprep.mubr.f32.mxu1 %v8527_v30  ;;  %6647 = vmatprep.subr.bf16.mxu0 %v6646_v53  ;;  %v8697_v30 = vsel %vm999_vm2, %v2975_v11, %v8559_v50  ;;  %v8705_v38 = vsel %vm999_vm2, %v8559_v50, %v2977_v62  ;;  %v6686_v47 = vpack.c.bf16 %v3580_v9, %v3579_v5  ;;  %v3388_v11 = vld [vmem:[#allocation9 + $0x258] sm:$0xff]  ;;  %v2980_v50 = vrot.slane %v8532_v15, 1  ;;  %v3584_v9 = vld [vmem:[#allocation9 + $0x2e8] sm:$0xff] }
 0x295   : >> { %6015 = vmatmul.mubr.f32.gmra.mrb[20].mxu0 %v8683_v23  ;;  %6679 = vmatprep.subr.bf16.mxu1 %v6678_v26  ;;  %v8719_v43 = vsel %vm999_vm2, %v2978_v0, %v2979_v6 }
 0x296   : >> { %6071 = vmatmul.mubr.f32.gmra.mrb[20].mxu1 %v8537_v61  ;;  %6649 = vmatpush3.bf16.msra.mxu0 %v6646_v53  ;;  %v3387_v53 = vld [vmem:[#allocation9 + $0x250] sm:$0xff]  ;;  %v8729_v5 = vsel %vm999_vm2, %v2979_v6, %v2980_v50  ;;  %v8742_v6 = vrot.slane %v8425_v44, 1 }
 0x297   : >> { %6681 = vmatpush3.bf16.msra.mxu1 %v6678_v26  ;;  %6017 = vmatprep.mubr.f32.mxu0 %v8689_v35  ;;  %v8712_v26 = vsel %vm999_vm2, %v2977_v62, %v2978_v0  ;;  %v6658_v56 = vpack.c.bf16 %v3388_v11, %v3387_v53  ;;  %v8723_v62 = vld [vmem:[%s8418_s25 + $0x88] sm:$0xff]  ;;  %v3583_v0 = vld [vmem:[#allocation9 + $0x2e0] sm:$0xff]  ;;  %v8732_v53 = vld [vmem:[%s8418_s25 + $0x90] sm:$0xff] }
 0x298   : >> { %6073 = vmatprep.mubr.f32.mxu1 %v8555_v40  ;;  %6651 = vmatprep.subr.bf16.mxu0 %v6650_v45  ;;  %v3195_v11 = vrot.slane %v8723_v62, 7  ;;  %v6694_v8 = vpack.c.bf16 %v3584_v9, %v3583_v0  ;;  %v3784_v9 = vld [vmem:[#allocation9 + $0x300] sm:$0xff] }
 0x299   : >> { %6018 = vmatmul.mubr.f32.gmra.mrb[22].mxu0 %v8697_v30  ;;  %6683 = vmatprep.subr.bf16.mxu1 %v6682_v4 }
 0x29a   : >> { %6074 = vmatmul.mubr.f32.gmra.mrb[22].mxu1 %v8579_v3  ;;  %6653 = vmatpush3.bf16.msra.mxu0 %v6650_v45  ;;  %v2981_v45 = vrot.slane %v8548_v37, 1  ;;  %v8756_v0 = vsel %vm587_vm1, %v8471_v42, %v3195_v11 }
 0x29b   : >> { %6685 = vmatpush3.bf16.msra.mxu1 %v6682_v4  ;;  %6020 = vmatprep.mubr.f32.mxu0 %v8705_v38  ;;  %v3389_v4 = vld [vmem:[#allocation9 + $0x260] sm:$0xff] }
 0x29c   : >> { %6076 = vmatprep.mubr.f32.mxu1 %v8602_v34  ;;  %6655 = vmatprep.subr.bf16.mxu0 %v6654_v25  ;;  %v8739_v32 = vsel %vm999_vm2, %v2980_v50, %v2981_v45  ;;  %v8750_v50 = vsel %vm999_vm2, %v2981_v45, %v8616_v13 }
 0x29d   : >> { %6021 = vmatmul.mubr.f32.gmra.mrb[24].mxu0 %v8712_v26  ;;  %6687 = vmatprep.subr.bf16.mxu1 %v6686_v47 }
 0x29e   : >> { %6077 = vmatmul.mubr.f32.gmra.mrb[24].mxu1 %v8613_v17  ;;  %6657 = vmatpush3.bf16.msra.mxu0 %v6654_v25  ;;  %v6662_v25 = vpack.c.bf16 %v3390_v16, %v3389_v4  ;;  %v3585_v4 = vld [vmem:[#allocation9 + $0x2f0] sm:$0xff]  ;;  %v3586_v16 = vld [vmem:[#allocation9 + $0x2f8] sm:$0xff] }
 0x29f   : >> { %6689 = vmatpush3.bf16.msra.mxu1 %v6686_v47  ;;  %6023 = vmatprep.mubr.f32.mxu0 %v8719_v43  ;;  %v3196_v47 = vrot.slane %v8732_v53, 7 }
 0x2a0   : >> { %6079 = vmatprep.mubr.f32.mxu1 %v8631_v28  ;;  %6659 = vmatprep.subr.bf16.mxu0 %v6658_v56 }
 0x2a1   : >> { %6024 = vmatmul.mubr.f32.gmra.mrb[26].mxu0 %v8729_v5  ;;  %6691 = vmatprep.subr.bf16.mxu1 %v6690_v48  ;;  %v8768_v45 = vsel %vm587_vm1, %v3195_v11, %v3196_v47  ;;  %v8780_v11 = vsel %vm587_vm1, %v3196_v47, %v8605_v7  ;;  %v3788_v47 = vld [vmem:[#allocation9 + $0x320] sm:$0xff] }
 0x2a2   : >> { %6080 = vmatmul.mubr.f32.gmra.mrb[26].mxu1 %v8646_v52  ;;  %6661 = vmatpush3.bf16.msra.mxu0 %v6658_v56  ;;  %v8763_v52 = vsel %vm999_vm2, %v8616_v13, %v8742_v6  ;;  %v6666_v56 = vpack.c.bf16 %v3392_v19, %v3391_v24  ;;  %v3946_v19 = vld [vmem:[#allocation9 + $0x380] sm:$0xff]  ;;  %v3947_v24 = vld [vmem:[#allocation9 + $0x388] sm:$0xff] }
 0x2a3   : >> { %6693 = vmatpush3.bf16.msra.mxu1 %v6690_v48  ;;  %6026 = vmatprep.mubr.f32.mxu0 %v8739_v32  ;;  %v6698_v48 = vpack.c.bf16 %v3586_v16, %v3585_v4  ;;  %v3786_v4 = vld [vmem:[#allocation9 + $0x310] sm:$0xff]  ;;  %v3787_v16 = vld [vmem:[#allocation9 + $0x318] sm:$0xff] }
 0x2a4   : >> { %6082 = vmatprep.mubr.f32.mxu1 %v8484_v59  ;;  %6663 = vmatprep.subr.bf16.mxu0 %v6662_v25  ;;  %v9132_v59 = vrot.slane %v8421_v22, 1  ;;  %v6734_v22 = vpack.c.bf16 %v3947_v24, %v3946_v19  ;;  %v6706_v7 = vpack.c.bf16 %v3787_v16, %v3786_v4  ;;  %v3953_v19 = vld [vmem:[#allocation9 + $0x3b8] sm:$0xff]  ;;  %v3793_v24 = vld [vmem:[#allocation9 + $0x348] sm:$0xff]  ;;  %v3794_v16 = vld [vmem:[#allocation9 + $0x350] sm:$0xff] }
 0x2a5   : >> { %6027 = vmatmul.mubr.f32.gmra.mrb[28].mxu0 %v8750_v50  ;;  %6695 = vmatprep.subr.bf16.mxu1 %v6694_v8 }
 0x2a6   : >> { %6083 = vmatmul.mubr.f32.gmra.mrb[28].mxu1 %v8756_v0  ;;  %6665 = vmatpush3.bf16.msra.mxu0 %v6662_v25  ;;  %v3000_v13 = vsel %vm999_vm2, %v8742_v6, %v9132_v59  ;;  %v6702_v25 = vpack.c.bf16 %v3785_v10, %v3784_v9  ;;  %v3949_v59 = vld [vmem:[#allocation9 + $0x398] sm:$0xff]  ;;  %v3789_v9 = vld [vmem:[#allocation9 + $0x328] sm:$0xff] }
 0x2a7   : >> { %6697 = vmatpush3.bf16.msra.mxu1 %v6694_v8  ;;  %6029 = vmatprep.mubr.f32.mxu0 %v8763_v52  ;;  %v3948_v8 = vld [vmem:[#allocation9 + $0x390] sm:$0xff] }
 0x2a8   : >> { %6085 = vmatprep.mubr.f32.mxu1 %v8768_v45  ;;  %6667 = vmatprep.subr.bf16.mxu0 %v6666_v56  ;;  %v6738_v10 = vpack.c.bf16 %v3949_v59, %v3948_v8  ;;  %v3795_v8 = vld [vmem:[#allocation9 + $0x358] sm:$0xff]  ;;  %v3956_v59 = vld [vmem:[#allocation9 + $0x3d0] sm:$0xff] }
 0x2a9   : >> { %6030 = vmatmul.mubr.f32.gmra.mrb[30].mxu0 %v3000_v13  ;;  %6699 = vmatprep.subr.bf16.mxu1 %v6698_v48  ;;  %v3950_v13 = vld [vmem:[#allocation9 + $0x3a0] sm:$0xff] }
 0x2aa   : >> { %6086 = vmatmul.mubr.f32.gmra.mrb[30].mxu1 %v8780_v11  ;;  %6669 = vmatpush3.bf16.msra.mxu0 %v6666_v56  ;;  %v3951_v56 = vld [vmem:[#allocation9 + $0x3a8] sm:$0xff] }
 0x2ab   : >> { %6701 = vmatpush3.bf16.msra.mxu1 %v6698_v48  ;;  %6120 = vmatprep.mubr.f32.mxu0 %v8448_v55  ;;  %v6710_v55 = vpack.c.bf16 %v3789_v9, %v3788_v47  ;;  %v3791_v48 = vld [vmem:[#allocation9 + $0x338] sm:$0xff]  ;;  %v6722_v47 = vpack.c.bf16 %v3795_v8, %v3794_v16  ;;  %v4140_v16 = vld [vmem:[#allocation9 + $0x400] sm:$0xff]  ;;  %v4141_v8 = vld [vmem:[#allocation9 + $0x408] sm:$0xff] }
 0x2ac   : >> { %6176 = vmatprep.mubr.f32.mxu1 %v8677_v14  ;;  %6703 = vmatprep.subr.bf16.mxu0 %v6702_v25  ;;  %v3790_v14 = vld [vmem:[#allocation9 + $0x330] sm:$0xff] }
 0x2ad   : >> { %6121 = vmatmul.mubr.f32.vlgmr.msra.gmra.mrb[32].mxu0 %v8456_v60  ;;  %6735 = vmatprep.subr.bf16.mxu1 %v6734_v22  ;;  %v6742_v60 = vpack.c.bf16 %v3951_v56, %v3950_v13  ;;  %v3551_v13 = vrot.slane %v8723_v62, 1  ;;  %v3796_v56 = vld [vmem:[#allocation9 + $0x360] sm:$0xff] }
 0x2ae   : >> { %6177 = vmatmul.mubr.f32.vlgmr.msra.gmra.mrb[32].mxu1 %v8683_v23  ;;  %6705 = vmatpush3.bf16.msra.mxu0 %v6702_v25  ;;  %v3952_v23 = vld [vmem:[#allocation9 + $0x3b0] sm:$0xff]  ;;  %v3955_v25 = vld [vmem:[#allocation9 + $0x3c8] sm:$0xff] }
 0x2af   : >> { %6737 = vmatpush3.bf16.msra.mxu1 %v6734_v22  ;;  %6123 = vmatprep.mubr.f32.mxu0 %v8468_v33  ;;  %v6714_v33 = vpack.c.bf16 %v3791_v48, %v3790_v14  ;;  %v3959_v14 = vld [vmem:[#allocation9 + $0x3e8] sm:$0xff] }
 0x2b0   : >> { %6179 = vmatprep.mubr.f32.mxu1 %v8689_v35  ;;  %6707 = vmatprep.subr.bf16.mxu0 %v6706_v7  ;;  %v3792_v35 = vld [vmem:[#allocation9 + $0x340] sm:$0xff] }
 0x2b1   : >> { %6124 = vmatmul.mubr.f32.gmra.mrb[34].mxu0 %v8478_v54  ;;  %6739 = vmatprep.subr.bf16.mxu1 %v6738_v10  ;;  %v6746_v54 = vpack.c.bf16 %v3953_v19, %v3952_v23  ;;  %v6718_v22 = vpack.c.bf16 %v3793_v24, %v3792_v35  ;;  %v3552_v23 = vrot.slane %v8732_v53, 1  ;;  %v8822_v35 = vrot.slane %v8567_v1, 1  ;;  %v3798_v24 = vld [vmem:[#allocation9 + $0x370] sm:$0xff] }
 0x2b2   : >> { %6180 = vmatmul.mubr.f32.gmra.mrb[34].mxu1 %v8697_v30  ;;  %6709 = vmatpush3.bf16.msra.mxu0 %v6706_v7  ;;  %v3954_v30 = vld [vmem:[#allocation9 + $0x3c0] sm:$0xff]  ;;  %v3957_v7 = vld [vmem:[#allocation9 + $0x3d8] sm:$0xff] }
 0x2b3   : >> { %6741 = vmatpush3.bf16.msra.mxu1 %v6738_v10  ;;  %6126 = vmatprep.mubr.f32.mxu0 %v8492_v12  ;;  %v6750_v4 = vpack.c.bf16 %v3955_v25, %v3954_v30  ;;  %v8802_v10 = vrot.slane %v8465_v57, 1  ;;  %v6754_v9 = vpack.c.bf16 %v3957_v7, %v3956_v59  ;;  %v3960_v30 = vld [vmem:[#allocation9 + $0x3f0] sm:$0xff]  ;;  %v3569_v59 = vsel %vm999_vm2, %v8822_v35, %v8663_v39  ;;  %v4144_v39 = vld [vmem:[#allocation9 + $0x420] sm:$0xff] }
 0x2b4   : >> { %6182 = vmatprep.mubr.f32.mxu1 %v8705_v38  ;;  %6711 = vmatprep.subr.bf16.mxu0 %v6710_v55  ;;  %v6766_v7 = vpack.c.bf16 %v4141_v8, %v4140_v16 }
 0x2b5   : >> { %6127 = vmatmul.mubr.f32.gmra.mrb[36].mxu0 %v8502_v21  ;;  %6743 = vmatprep.subr.bf16.mxu1 %v6742_v60  ;;  %v3557_v48 = vsel %vm999_vm2, %v8742_v6, %v8802_v10  ;;  %v3799_v6 = vld [vmem:[#allocation9 + $0x378] sm:$0xff] }
 0x2b6   : >> { %6183 = vmatmul.mubr.f32.gmra.mrb[36].mxu1 %v8712_v26  ;;  %6713 = vmatpush3.bf16.msra.mxu0 %v6710_v55  ;;  %v3797_v55 = vld [vmem:[#allocation9 + $0x368] sm:$0xff]  ;;  %v6730_v25 = vpack.c.bf16 %v3799_v6, %v3798_v24 }
 0x2b7   : >> { %6745 = vmatpush3.bf16.msra.mxu1 %v6742_v60  ;;  %6129 = vmatprep.mubr.f32.mxu0 %v8512_v18  ;;  %v3958_v60 = vld [vmem:[#allocation9 + $0x3e0] sm:$0xff]  ;;  %v6726_v19 = vpack.c.bf16 %v3797_v55, %v3796_v56  ;;  %v4145_v56 = vld [vmem:[#allocation9 + $0x428] sm:$0xff] }
 0x2b8   : >> { %6185 = vmatprep.mubr.f32.mxu1 %v8719_v43  ;;  %6715 = vmatprep.subr.bf16.mxu0 %v6714_v33  ;;  %v6774_v55 = vpack.c.bf16 %v4145_v56, %v4144_v39 }
 0x2b9   : >> { %6130 = vmatmul.mubr.f32.gmra.mrb[38].mxu0 %v8522_v58  ;;  %6747 = vmatprep.subr.bf16.mxu1 %v6746_v54 }
 0x2ba   : >> { %6186 = vmatmul.mubr.f32.gmra.mrb[38].mxu1 %v8729_v5  ;;  %6717 = vmatpush3.bf16.msra.mxu0 %v6714_v33  ;;  %v8819_v33 = vsel %vm999_vm2, %v8802_v10, %v3551_v13 }
 0x2bb   : >> { %6749 = vmatpush3.bf16.msra.mxu1 %v6746_v54  ;;  %6132 = vmatprep.mubr.f32.mxu0 %v8532_v15  ;;  %v6758_v54 = vpack.c.bf16 %v3959_v14, %v3958_v60  ;;  %v4155_v14 = vld [vmem:[#allocation9 + $0x478] sm:$0xff] }
 0x2bc   : >> { %6188 = vmatprep.mubr.f32.mxu1 %v8739_v32  ;;  %6719 = vmatprep.subr.bf16.mxu0 %v6718_v22 }
 0x2bd   : >> { %6133 = vmatmul.mubr.f32.gmra.mrb[40].mxu0 %v8548_v37  ;;  %6751 = vmatprep.subr.bf16.mxu1 %v6750_v4 }
 0x2be   : >> { %6189 = vmatmul.mubr.f32.gmra.mrb[40].mxu1 %v8750_v50  ;;  %6721 = vmatpush3.bf16.msra.mxu0 %v6718_v22  ;;  %v8834_v22 = vsel %vm999_vm2, %v3552_v23, %v8822_v35 }
 0x2bf   : >> { %6753 = vmatpush3.bf16.msra.mxu1 %v6750_v4  ;;  %6135 = vmatprep.mubr.f32.mxu0 %v8541_v46 }
 0x2c0   : >> { %6191 = vmatprep.mubr.f32.mxu1 %v8763_v52  ;;  %6723 = vmatprep.subr.bf16.mxu0 %v6722_v47  ;;  %v3961_v52 = vld [vmem:[#allocation9 + $0x3f8] sm:$0xff] }
 0x2c1   : >> { %6136 = vmatmul.mubr.f32.gmra.mrb[42].mxu0 %v8425_v44  ;;  %6755 = vmatprep.subr.bf16.mxu1 %v6754_v9  ;;  %v8827_v44 = vsel %vm999_vm2, %v3551_v13, %v3552_v23  ;;  %v6762_v4 = vpack.c.bf16 %v3961_v52, %v3960_v30 }
 0x2c2   : >> { %6192 = vmatmul.mubr.f32.gmra.mrb[42].mxu1 %v3557_v48  ;;  %6725 = vmatpush3.bf16.msra.mxu0 %v6722_v47  ;;  %v4142_v47 = vld [vmem:[#allocation9 + $0x410] sm:$0xff] }
 0x2c3   : >> { %6757 = vmatpush3.bf16.msra.mxu1 %v6754_v9  ;;  %6138 = vmatprep.mubr.f32.mxu0 %v8465_v57  ;;  %v4143_v9 = vld [vmem:[#allocation9 + $0x418] sm:$0xff] }
 0x2c4   : >> { %6194 = vmatprep.mubr.f32.mxu1 %v8819_v33  ;;  %6727 = vmatprep.subr.bf16.mxu0 %v6726_v19  ;;  %v6770_v13 = vpack.c.bf16 %v4143_v9, %v4142_v47 }
 0x2c5   : >> { %6139 = vmatmul.mubr.f32.gmra.mrb[44].mxu0 %v8723_v62  ;;  %6759 = vmatprep.subr.bf16.mxu1 %v6758_v54 }
 0x2c6   : >> { %6195 = vmatmul.mubr.f32.gmra.mrb[44].mxu1 %v8827_v44  ;;  %6729 = vmatpush3.bf16.msra.mxu0 %v6726_v19 }
 0x2c7   : >> { %6761 = vmatpush3.bf16.msra.mxu1 %v6758_v54  ;;  %6141 = vmatprep.mubr.f32.mxu0 %v8732_v53 }
 0x2c8   : >> { %6197 = vmatprep.mubr.f32.mxu1 %v8834_v22  ;;  %6731 = vmatprep.subr.bf16.mxu0 %v6730_v25 }
 0x2c9   : >> { %6142 = vmatmul.mubr.f32.gmra.mrb[46].mxu0 %v8567_v1  ;;  %6763 = vmatprep.subr.bf16.mxu1 %v6762_v4 }
 0x2ca   : >> { %6198 = vmatmul.mubr.f32.gmra.mrb[46].mxu1 %v3569_v59  ;;  %6733 = vmatpush3.bf16.msra.mxu0 %v6730_v25 }
 0x2cb   : >> { %6765 = vmatpush3.bf16.msra.mxu1 %v6762_v4  ;;  %6232 = vmatprep.mubr.f32.mxu0 %v8573_v2  ;;  %v4147_v2 = vld [vmem:[#allocation9 + $0x438] sm:$0xff] }
 0x2cc   : >> { %6288 = vmatprep.mubr.f32.mxu1 %v8492_v12  ;;  %6767 = vmatprep.subr.bf16.mxu0 %v6766_v7  ;;  %v4146_v12 = vld [vmem:[#allocation9 + $0x430] sm:$0xff] }
 0x2cd   : >> { %6233 = vmatmul.mubr.f32.vlgmr.msra.gmra.mrb[48].mxu0 %v8537_v61  ;;  %6850 = vmatprep.subr.bf16.mxu1 %v6766_v7  ;;  %v4149_v61 = vld [vmem:[#allocation9 + $0x448] sm:$0xff] }
 0x2ce   : >> { %6289 = vmatmul.mubr.f32.vlgmr.msra.gmra.mrb[48].mxu1 %v8502_v21  ;;  %6769 = vmatpush3.bf16.msra.mxu0 %v6766_v7  ;;  %v6778_v21 = vpack.c.bf16 %v4147_v2, %v4146_v12 }
 0x2cf   : >> { %6858 = vmatpush3.bf16.msra.mxu1 %v6766_v7  ;;  %6235 = vmatprep.mubr.f32.mxu0 %v8555_v40 }
 0x2d0   : >> { %6291 = vmatprep.mubr.f32.mxu1 %v8512_v18  ;;  %6771 = vmatprep.subr.bf16.mxu0 %v6770_v13  ;;  %v4148_v18 = vld [vmem:[#allocation9 + $0x440] sm:$0xff] }
 0x2d1   : >> { %6236 = vmatmul.mubr.f32.gmra.mrb[50].mxu0 %v8579_v3  ;;  %6851 = vmatprep.subr.bf16.mxu1 %v6770_v13  ;;  %v6782_v40 = vpack.c.bf16 %v4149_v61, %v4148_v18  ;;  %v4151_v3 = vld [vmem:[#allocation9 + $0x458] sm:$0xff] }
 0x2d2   : >> { %6292 = vmatmul.mubr.f32.gmra.mrb[50].mxu1 %v8522_v58  ;;  %6773 = vmatpush3.bf16.msra.mxu0 %v6770_v13  ;;  %v9133_v58 = vrot.slane %v8562_v31, 7 }
 0x2d3   : >> { %6859 = vmatpush3.bf16.msra.mxu1 %v6770_v13  ;;  %6238 = vmatprep.mubr.f32.mxu0 %v8602_v34 }
 0x2d4   : >> { %6294 = vmatprep.mubr.f32.mxu1 %v8532_v15  ;;  %6775 = vmatprep.subr.bf16.mxu0 %v6774_v55  ;;  %v3774_v15 = vsel %vm587_vm1, %v9133_v58, %v8471_v42  ;;  %v4152_v42 = vld [vmem:[#allocation9 + $0x460] sm:$0xff] }
 0x2d5   : >> { %6239 = vmatmul.mubr.f32.gmra.mrb[52].mxu0 %v8613_v17  ;;  %6852 = vmatprep.subr.bf16.mxu1 %v6774_v55  ;;  %v4153_v17 = vld [vmem:[#allocation9 + $0x468] sm:$0xff] }
 0x2d6   : >> { %6295 = vmatmul.mubr.f32.gmra.mrb[52].mxu1 %v8548_v37  ;;  %6777 = vmatpush3.bf16.msra.mxu0 %v6774_v55  ;;  %v4150_v37 = vld [vmem:[#allocation9 + $0x450] sm:$0xff]  ;;  %v6790_v60 = vpack.c.bf16 %v4153_v17, %v4152_v42 }
 0x2d7   : >> { %6860 = vmatpush3.bf16.msra.mxu1 %v6774_v55  ;;  %6241 = vmatprep.mubr.f32.mxu0 %v8631_v28  ;;  %v6786_v34 = vpack.c.bf16 %v4151_v3, %v4150_v37 }
 0x2d8   : >> { %6297 = vmatprep.mubr.f32.mxu1 %v8541_v46  ;;  %6779 = vmatprep.subr.bf16.mxu0 %v6778_v21  ;;  %v5029_v46 = vld [vmem:[%s8418_s25 + $0xa8] sm:$0xff] }
 0x2d9   : >> { %6242 = vmatmul.mubr.f32.gmra.mrb[54].mxu0 %v8594_v27  ;;  %6853 = vmatprep.subr.bf16.mxu1 %v6778_v21  ;;  %v5030_v27 = vld [vmem:[%s8418_s25 + $0xb0] sm:$0xff]  ;;  %v3764_v28 = vrot.slane %v5029_v46, 7  ;;  %v4120_v23 = vrot.slane %v5029_v46, 1 }
 0x2da   : >> { %6298 = vmatmul.mubr.f32.gmra.mrb[54].mxu1 %v8562_v31  ;;  %6781 = vmatpush3.bf16.msra.mxu0 %v6778_v21  ;;  %v4121_v54 = vrot.slane %v5030_v27, 1 }
 0x2db   : >> { %6861 = vmatpush3.bf16.msra.mxu1 %v6778_v21  ;;  %6244 = vmatprep.mubr.f32.mxu0 %v3774_v15 }
 0x2dc   : >> { %6300 = vmatprep.mubr.f32.mxu1 %v8465_v57  ;;  %6783 = vmatprep.subr.bf16.mxu0 %v6782_v40  ;;  %v3765_v57 = vrot.slane %v5030_v27, 7 }
 0x2dd   : >> { %6245 = vmatmul.mubr.f32.gmra.mrb[56].mxu0 %v8756_v0  ;;  %6854 = vmatprep.subr.bf16.mxu1 %v6782_v40  ;;  %v4154_v0 = vld [vmem:[#allocation9 + $0x470] sm:$0xff] }
 0x2de   : >> { %6301 = vmatmul.mubr.f32.gmra.mrb[56].mxu1 %v8723_v62  ;;  %6785 = vmatpush3.bf16.msra.mxu0 %v6782_v40  ;;  %v9134_v62 = vrot.slane %v8597_v20, 7 }
 0x2df   : >> { %6862 = vmatpush3.bf16.msra.mxu1 %v6782_v40  ;;  %6247 = vmatprep.mubr.f32.mxu0 %v8768_v45  ;;  %v6794_v45 = vpack.c.bf16 %v4155_v14, %v4154_v0 }
 0x2e0   : >> { %6303 = vmatprep.mubr.f32.mxu1 %v8732_v53  ;;  %6787 = vmatprep.subr.bf16.mxu0 %v6786_v34  ;;  %v3769_v48 = vsel %vm587_vm1, %v9134_v62, %v3764_v28  ;;  %v3768_v53 = vsel %vm587_vm1, %v3764_v28, %v3765_v57 }
 0x2e1   : >> { %6248 = vmatmul.mubr.f32.gmra.mrb[58].mxu0 %v8780_v11  ;;  %6855 = vmatprep.subr.bf16.mxu1 %v6786_v34 }
 0x2e2   : >> { %6304 = vmatmul.mubr.f32.gmra.mrb[58].mxu1 %v8567_v1  ;;  %6789 = vmatpush3.bf16.msra.mxu0 %v6786_v34  ;;  %v9135_v1 = vrot.slane %v8544_v63, 7 }
 0x2e3   : >> { %6863 = vmatpush3.bf16.msra.mxu1 %v6786_v34  ;;  %6250 = vmatprep.mubr.f32.mxu0 %v8623_v49  ;;  %v4119_v49 = vrot.slane %v8597_v20, 1 }
 0x2e4   : >> { %6306 = vmatprep.mubr.f32.mxu1 %v8597_v20  ;;  %6791 = vmatprep.subr.bf16.mxu0 %v6790_v60  ;;  %v3767_v11 = vsel %vm587_vm1, %v3765_v57, %v9135_v1  ;;  %v4124_v20 = vsel %vm999_vm2, %v4120_v23, %v4121_v54 }
 0x2e5   : >> { %6251 = vmatmul.mubr.f32.gmra.mrb[60].mxu0 %v3769_v48  ;;  %6856 = vmatprep.subr.bf16.mxu1 %v6790_v60  ;;  %v4126_v19 = vsel %vm999_vm2, %v8822_v35, %v4119_v49 }
 0x2e6   : >> { %6307 = vmatmul.mubr.f32.gmra.mrb[60].mxu1 %v5029_v46  ;;  %6793 = vmatpush3.bf16.msra.mxu0 %v6790_v60 }
 0x2e7   : >> { %6864 = vmatpush3.bf16.msra.mxu1 %v6790_v60  ;;  %6253 = vmatprep.mubr.f32.mxu0 %v3768_v53 }
 0x2e8   : >> { %6309 = vmatprep.mubr.f32.mxu1 %v5030_v27  ;;  %6795 = vmatprep.subr.bf16.mxu0 %v6794_v45 }
 0x2e9   : >> { %6254 = vmatmul.mubr.f32.gmra.mrb[62].mxu0 %v3767_v11  ;;  %6857 = vmatprep.subr.bf16.mxu1 %v6794_v45 }
 0x2ea   : >> { %6310 = vmatmul.mubr.f32.gmra.mrb[62].mxu1 %v8544_v63  ;;  %6797 = vmatpush3.bf16.msra.mxu0 %v6794_v45 }
 0x2eb   : >> { %6865 = vmatpush3.bf16.msra.mxu1 %v6794_v45  ;;  %6344 = vmatprep.mubr.f32.mxu0 %v8705_v38  ;;  %v4125_v38 = vsel %vm999_vm2, %v4119_v49, %v4120_v23 }
 0x2ec   : >> { %6356 = vmatprep.mubr.f32.mxu1 %v8819_v33 }
 0x2ed   : >> { %6345 = vmatmul.mubr.f32.vlgmr.msra.gmra.mrb[64].mxu0 %v8712_v26  ;;  %v9136_v26 = vrot.slane %v8544_v63, 1 }
 0x2ee   : >> { %6357 = vmatmul.mubr.f32.vlgmr.msra.gmra.mrb[64].mxu1 %v8827_v44  ;;  %6347 = vmatprep.mubr.f32.mxu0 %v8719_v43 }
 0x2ef   : >> { %6359 = vmatprep.mubr.f32.mxu1 %v8834_v22  ;;  %v4123_v43 = vsel %vm999_vm2, %v4121_v54, %v9136_v26 }
 0x2f1   : >> { %6348 = vmatmul.mubr.f32.gmra.mrb[66].mxu0 %v8729_v5  ;;  %v9137_v5 = vrot.slane %v8562_v31, 1 }
 0x2f2   : >> { %6360 = vmatmul.mubr.f32.gmra.mrb[66].mxu1 %v4126_v19  ;;  %6350 = vmatprep.mubr.f32.mxu0 %v8739_v32 }
 0x2f3   : >> { %6362 = vmatprep.mubr.f32.mxu1 %v4125_v38  ;;  %v4130_v32 = vsel %vm999_vm2, %v9137_v5, %v8802_v10 }
 0x2f5   : >> { %6351 = vmatmul.mubr.f32.gmra.mrb[68].mxu0 %v8750_v50 }
 0x2f6   : >> { %6363 = vmatmul.mubr.f32.gmra.mrb[68].mxu1 %v4124_v20  ;;  %6353 = vmatprep.mubr.f32.mxu0 %v8638_v36 }
 0x2f7   : >> { %6365 = vmatprep.mubr.f32.mxu1 %v4123_v43 }
 0x2f9   : >> { %6354 = vmatmul.mubr.f32.gmra.mrb[70].mxu0 %v4130_v32 }
 0x2fa   : >> { %6366 = vmatmul.mubr.f32.gmra.mrb[70].mxu1 %v8587_v29 }
 0x340   : >> { %v5898_v33 = vpop.f32.mrb[0].mxu0 }
 0x341   : >> { %v2760_v63 = vpop.f32.mrb[1].mxu0  ;;  %v5954_v35 = vpop.f32.mrb[0].mxu1 }
 0x342   : >> { %v2902_v24 = vadd.f32 %v5954_v35, %v5898_v33  ;;  %v2897_v6 = vpop.f32.mrb[1].mxu1 }
 0x344   : >> { %v5901_v30 = vpop.f32.mrb[2].mxu0 }
 0x345   : >> { %v5957_v50 = vpop.f32.mrb[2].mxu1  ;;  %v2769_v52 = vpop.f32.mrb[3].mxu0 }
 0x346   : >> { %v2906_v44 = vpop.f32.mrb[3].mxu1 }
 0x347   : >> { %v2907_v36 = vadd.f32 %v2906_v44, %v2769_v52 }
 0x348   : >> { %v5904_v25 = vpop.f32.mrb[4].mxu0 }
 0x349   : >> { %v2778_v22 = vpop.f32.mrb[5].mxu0  ;;  %v5960_v31 = vpop.f32.mrb[4].mxu1 }
 0x34a   : >> { %v2920_v4 = vadd.f32 %v5960_v31, %v5904_v25  ;;  %v2915_v16 = vpop.f32.mrb[5].mxu1 }
 0x34c   : >> { %v5907_v10 = vpop.f32.mrb[6].mxu0 }
 0x34d   : >> { %v5963_v8 = vpop.f32.mrb[6].mxu1  ;;  %v2787_v59 = vpop.f32.mrb[7].mxu0 }
 0x34e   : >> { %v2924_v7 = vpop.f32.mrb[7].mxu1 }
 0x34f   : >> { %v2925_v29 = vadd.f32 %v2924_v7, %v2787_v59 }
 0x350   : >> { %v5910_v47 = vpop.f32.mrb[8].mxu0 }
 0x351   : >> { %v2796_v9 = vpop.f32.mrb[9].mxu0  ;;  %v5966_v13 = vpop.f32.mrb[8].mxu1 }
 0x352   : >> { %v2938_v39 = vadd.f32 %v5966_v13, %v5910_v47  ;;  %v2933_v56 = vpop.f32.mrb[9].mxu1 }
 0x354   : >> { %v5913_v55 = vpop.f32.mrb[10].mxu0 }
 0x355   : >> { %v5969_v12 = vpop.f32.mrb[10].mxu1  ;;  %v2805_v2 = vpop.f32.mrb[11].mxu0 }
 0x356   : >> { %v2942_v21 = vpop.f32.mrb[11].mxu1 }
 0x357   : >> { %v2943_v18 = vadd.f32 %v2942_v21, %v2805_v2 }
 0x358   : >> { %v5916_v61 = vpop.f32.mrb[12].mxu0 }
 0x359   : >> { %v2814_v58 = vpop.f32.mrb[13].mxu0  ;;  %v5972_v15 = vpop.f32.mrb[12].mxu1 }
 0x35a   : >> { %v2956_v40 = vadd.f32 %v5972_v15, %v5916_v61  ;;  %v2951_v37 = vpop.f32.mrb[13].mxu1 }
 0x35c   : >> { %v5919_v3 = vpop.f32.mrb[14].mxu0 }
 0x35d   : >> { %v5975_v46 = vpop.f32.mrb[14].mxu1  ;;  %v2823_v34 = vpop.f32.mrb[15].mxu0 }
 0x35e   : >> { %v2960_v42 = vpop.f32.mrb[15].mxu1 }
 0x35f   : >> { %v2961_v17 = vadd.f32 %v2960_v42, %v2823_v34 }
 0x360   : >> { %v6010_v27 = vpop.f32.mrb[16].mxu0 }
 0x361   : >> { %v3155_v28 = vadd.f32 %v6010_v27, %v2902_v24  ;;  %v3084_v60 = vpop.f32.mrb[17].mxu0  ;;  %v6066_v57 = vpop.f32.mrb[16].mxu1 }
 0x362   : >> { %v3297_v0 = vpop.f32.mrb[17].mxu1 }
 0x363   : >> { %v3368_v14 = vadd.f32 %v6066_v57, %v3155_v28 }
 0x364   : >> { %v6013_v62 = vpop.f32.mrb[18].mxu0 }
 0x365   : >> { %v3093_v48 = vpop.f32.mrb[19].mxu0  ;;  %v6069_v53 = vpop.f32.mrb[18].mxu1 }
 0x366   : >> { %v3156_v45 = vadd.f32 %v3093_v48, %v2907_v36  ;;  %v3306_v1 = vpop.f32.mrb[19].mxu1 }
 0x368   : >> { %v3369_v11 = vadd.f32 %v3306_v1, %v3156_v45  ;;  %v6016_v49 = vpop.f32.mrb[20].mxu0 }
 0x369   : >> { %v3157_v23 = vadd.f32 %v6016_v49, %v2920_v4  ;;  %v3102_v19 = vpop.f32.mrb[21].mxu0  ;;  %v6072_v54 = vpop.f32.mrb[20].mxu1 }
 0x36a   : >> { %v3315_v38 = vpop.f32.mrb[21].mxu1 }
 0x36b   : >> { %v3370_v20 = vadd.f32 %v6072_v54, %v3157_v23 }
 0x36c   : >> { %v6019_v26 = vpop.f32.mrb[22].mxu0 }
 0x36d   : >> { %v3111_v43 = vpop.f32.mrb[23].mxu0  ;;  %v6075_v5 = vpop.f32.mrb[22].mxu1 }
 0x36e   : >> { %v3158_v32 = vadd.f32 %v3111_v43, %v2925_v29  ;;  %v3324_v33 = vpop.f32.mrb[23].mxu1 }
 0x370   : >> { %v3371_v63 = vadd.f32 %v3324_v33, %v3158_v32  ;;  %v6022_v35 = vpop.f32.mrb[24].mxu0 }
 0x371   : >> { %v3159_v24 = vadd.f32 %v6022_v35, %v2938_v39  ;;  %v3120_v6 = vpop.f32.mrb[25].mxu0  ;;  %v6078_v30 = vpop.f32.mrb[24].mxu1 }
 0x372   : >> { %v3333_v50 = vpop.f32.mrb[25].mxu1 }
 0x373   : >> { %v3372_v52 = vadd.f32 %v6078_v30, %v3159_v24 }
 0x374   : >> { %v6025_v44 = vpop.f32.mrb[26].mxu0 }
 0x375   : >> { %v3129_v36 = vpop.f32.mrb[27].mxu0  ;;  %v6081_v25 = vpop.f32.mrb[26].mxu1 }
 0x376   : >> { %v3160_v22 = vadd.f32 %v3129_v36, %v2943_v18  ;;  %v3342_v31 = vpop.f32.mrb[27].mxu1 }
 0x378   : >> { %v3373_v4 = vadd.f32 %v3342_v31, %v3160_v22  ;;  %v6028_v16 = vpop.f32.mrb[28].mxu0 }
 0x379   : >> { %v3161_v10 = vadd.f32 %v6028_v16, %v2956_v40  ;;  %v3138_v8 = vpop.f32.mrb[29].mxu0  ;;  %v6084_v59 = vpop.f32.mrb[28].mxu1 }
 0x37a   : >> { %v3351_v7 = vpop.f32.mrb[29].mxu1 }
 0x37b   : >> { %v3374_v29 = vadd.f32 %v6084_v59, %v3161_v10 }
 0x37c   : >> { %v6031_v47 = vpop.f32.mrb[30].mxu0 }
 0x37d   : >> { %v3147_v9 = vpop.f32.mrb[31].mxu0  ;;  %v6087_v13 = vpop.f32.mrb[30].mxu1 }
 0x37e   : >> { %v3162_v39 = vadd.f32 %v3147_v9, %v2961_v17  ;;  %v3360_v56 = vpop.f32.mrb[31].mxu1 }
 0x380   : >> { %v3375_v55 = vadd.f32 %v3360_v56, %v3162_v39  ;;  %v6122_v12 = vpop.f32.mrb[32].mxu0 }
 0x381   : >> { %v3530_v2 = vadd.f32 %v6122_v12, %v3368_v14  ;;  %v3459_v21 = vpop.f32.mrb[33].mxu0  ;;  %v6178_v61 = vpop.f32.mrb[32].mxu1 }
 0x382   : >> { %v3653_v58 = vpop.f32.mrb[33].mxu1 }
 0x383   : >> { %v3724_v18 = vadd.f32 %v6178_v61, %v3530_v2 }
 0x384   : >> { %v6125_v15 = vpop.f32.mrb[34].mxu0 }
 0x385   : >> { %v3468_v37 = vpop.f32.mrb[35].mxu0  ;;  %v6181_v3 = vpop.f32.mrb[34].mxu1 }
 0x386   : >> { %v3531_v40 = vadd.f32 %v3468_v37, %v3369_v11  ;;  %v3662_v46 = vpop.f32.mrb[35].mxu1 }
 0x388   : >> { %v3725_v34 = vadd.f32 %v3662_v46, %v3531_v40  ;;  %v6128_v42 = vpop.f32.mrb[36].mxu0 }
 0x389   : >> { %v3532_v27 = vadd.f32 %v6128_v42, %v3370_v20  ;;  %v3477_v28 = vpop.f32.mrb[37].mxu0  ;;  %v6184_v60 = vpop.f32.mrb[36].mxu1 }
 0x38a   : >> { %v3671_v57 = vpop.f32.mrb[37].mxu1 }
 0x38b   : >> { %v3726_v17 = vadd.f32 %v6184_v60, %v3532_v27 }
 0x38c   : >> { %v6131_v0 = vpop.f32.mrb[38].mxu0 }
 0x38d   : >> { %v3486_v62 = vpop.f32.mrb[39].mxu0  ;;  %v6187_v48 = vpop.f32.mrb[38].mxu1 }
 0x38e   : >> { %v3533_v14 = vadd.f32 %v3486_v62, %v3371_v63  ;;  %v3680_v53 = vpop.f32.mrb[39].mxu1 }
 0x390   : >> { %v3727_v45 = vadd.f32 %v3680_v53, %v3533_v14  ;;  %v6134_v1 = vpop.f32.mrb[40].mxu0 }
 0x391   : >> { %v3534_v49 = vadd.f32 %v6134_v1, %v3372_v52  ;;  %v3495_v23 = vpop.f32.mrb[41].mxu0  ;;  %v6190_v19 = vpop.f32.mrb[40].mxu1 }
 0x392   : >> { %v3689_v54 = vpop.f32.mrb[41].mxu1 }
 0x393   : >> { %v3728_v11 = vadd.f32 %v6190_v19, %v3534_v49 }
 0x394   : >> { %v6137_v38 = vpop.f32.mrb[42].mxu0 }
 0x395   : >> { %v3504_v26 = vpop.f32.mrb[43].mxu0  ;;  %v6193_v43 = vpop.f32.mrb[42].mxu1 }
 0x396   : >> { %v3535_v20 = vadd.f32 %v3504_v26, %v3373_v4  ;;  %v3698_v5 = vpop.f32.mrb[43].mxu1 }
 0x398   : >> { %v3729_v32 = vadd.f32 %v3698_v5, %v3535_v20  ;;  %v6140_v33 = vpop.f32.mrb[44].mxu0 }
 0x399   : >> { %v3536_v35 = vadd.f32 %v6140_v33, %v3374_v29  ;;  %v3513_v24 = vpop.f32.mrb[45].mxu0  ;;  %v6196_v6 = vpop.f32.mrb[44].mxu1 }
 0x39a   : >> { %v3707_v30 = vpop.f32.mrb[45].mxu1 }
 0x39b   : >> { %v3730_v63 = vadd.f32 %v6196_v6, %v3536_v35 }
 0x39c   : >> { %v6143_v50 = vpop.f32.mrb[46].mxu0 }
 0x39d   : >> { %v3522_v44 = vpop.f32.mrb[47].mxu0  ;;  %v6199_v36 = vpop.f32.mrb[46].mxu1 }
 0x39e   : >> { %v3537_v52 = vadd.f32 %v3522_v44, %v3375_v55  ;;  %v3716_v25 = vpop.f32.mrb[47].mxu1 }
 0x3a0   : >> { %v3731_v22 = vadd.f32 %v3716_v25, %v3537_v52  ;;  %v6234_v31 = vpop.f32.mrb[48].mxu0 }
 0x3a1   : >> { %v3937_v16 = vadd.f32 %v6234_v31, %v3724_v18  ;;  %v3866_v10 = vpop.f32.mrb[49].mxu0  ;;  %v6290_v8 = vpop.f32.mrb[48].mxu1 }
 0x3a2   : >> { %v4028_v59 = vpop.f32.mrb[49].mxu1 }
 0x3a3   : >> { %v4099_v4 = vadd.f32 %v6290_v8, %v3937_v16 }
 0x3a4   : >> { %v6237_v7 = vpop.f32.mrb[50].mxu0 }
 0x3a5   : >> { %v3875_v47 = vpop.f32.mrb[51].mxu0  ;;  %v6293_v9 = vpop.f32.mrb[50].mxu1 }
 0x3a6   : >> { %v3938_v29 = vadd.f32 %v3875_v47, %v3725_v34  ;;  %v4037_v13 = vpop.f32.mrb[51].mxu1 }
 0x3a8   : >> { %v4100_v39 = vadd.f32 %v4037_v13, %v3938_v29  ;;  %v6240_v56 = vpop.f32.mrb[52].mxu0 }
 0x3a9   : >> { %v3939_v12 = vadd.f32 %v6240_v56, %v3726_v17  ;;  %v3884_v2 = vpop.f32.mrb[53].mxu0  ;;  %v6296_v21 = vpop.f32.mrb[52].mxu1 }
 0x3aa   : >> { %v4046_v61 = vpop.f32.mrb[53].mxu1 }
 0x3ab   : >> { %v4101_v55 = vadd.f32 %v6296_v21, %v3939_v12 }
 0x3ac   : >> { %v6243_v58 = vpop.f32.mrb[54].mxu0 }
 0x3ad   : >> { %v3893_v15 = vpop.f32.mrb[55].mxu0  ;;  %v6299_v37 = vpop.f32.mrb[54].mxu1 }
 0x3ae   : >> { %v3940_v18 = vadd.f32 %v3893_v15, %v3727_v45  ;;  %v4055_v3 = vpop.f32.mrb[55].mxu1 }
 0x3b0   : >> { %v4102_v40 = vadd.f32 %v4055_v3, %v3940_v18  ;;  %v6246_v46 = vpop.f32.mrb[56].mxu0 }
 0x3b1   : >> { %v3941_v42 = vadd.f32 %v6246_v46, %v3728_v11  ;;  %v3902_v27 = vpop.f32.mrb[57].mxu0  ;;  %v6302_v28 = vpop.f32.mrb[56].mxu1 }
 0x3b2   : >> { %v4064_v60 = vpop.f32.mrb[57].mxu1 }
 0x3b3   : >> { %v4103_v34 = vadd.f32 %v6302_v28, %v3941_v42 }
 0x3b4   : >> { %v6249_v57 = vpop.f32.mrb[58].mxu0 }
 0x3b5   : >> { %v3911_v0 = vpop.f32.mrb[59].mxu0  ;;  %v6305_v62 = vpop.f32.mrb[58].mxu1 }
 0x3b6   : >> { %v3942_v17 = vadd.f32 %v3911_v0, %v3729_v32  ;;  %v4073_v48 = vpop.f32.mrb[59].mxu1  ;;  %v5032_v32 = vld [vmem:[%s9068_s4] ss:$0 sm:$0xff] }
 0x3b8   : >> { %v4104_v14 = vadd.f32 %v4073_v48, %v3942_v17  ;;  %v6252_v53 = vpop.f32.mrb[60].mxu0  ;;  %v4340_v17 = vld [vmem:[#allocation10] sm:$0xff] (%p2602_p5)  ;;  %v4341_v48 = vld [vmem:[#allocation10 + $0x8] sm:$0xff] (%p2602_p5) }
 0x3b9   : >> { %v3943_v1 = vadd.f32 %v6252_v53, %v3730_v63  ;;  %v3920_v49 = vpop.f32.mrb[61].mxu0  ;;  %v6308_v23 = vpop.f32.mrb[60].mxu1  ;;  %v7254_v53 = vmov (%p2602_p5), 0.0|0.0  }
 0x3ba   : >> { %v4082_v19 = vpop.f32.mrb[61].mxu1  ;;  %6798 = vmatprep.subr.bf16.mxu0 (%p2602_p5), %v7254_v53  ;;  %v4343_v49 = vld [vmem:[#allocation10 + $0x18] sm:$0xff] (%p2602_p5)  ;;  %6822 = vmatprep.subr.bf16.mxu1 (%p2602_p5), %v7254_v53 }
 0x3bb   : >> { %v4105_v45 = vadd.f32 %v6308_v23, %v3943_v1  ;;  %v6799_v1 = vpack.c.bf16 (%p2602_p5), %v4341_v48, %v4340_v17  ;;  %v9140_v23 = vmov (%p2602_p5), 0.0   ;;  %v4344_v19 = vld [vmem:[#allocation10 + $0x20] sm:$0xff] (%p2602_p5) }
 0x3bc   : >> { %v6255_v54 = vpop.f32.mrb[62].mxu0  ;;  %6400 = vmatprep.mubr.msk.f32.mxu0 (%p2602_p5), %vm7255_vm3, %v9140_v23  ;;  %6435 = vmatprep.mubr.msk.f32.mxu1 (%p2602_p5), %vm7255_vm3, %v9140_v23 }
 0x3bd   : >> { %v3929_v38 = vpop.f32.mrb[63].mxu0  ;;  %v6311_v11 = vpop.f32.mrb[62].mxu1  ;;  %6800 = vmatpush3.bf16.msra.mxu0 (%p2602_p5), %v6799_v1  ;;  %v4428_v54 = vld [vmem:[#allocation12] sm:$0xff] (%p2602_p5) }
 0x3be   : >> { %v3944_v26 = vadd.f32 %v3929_v38, %v3731_v22  ;;  %v4091_v43 = vpop.f32.mrb[63].mxu1  ;;  %6801 = vmatprep.subr.bf16.mxu0 (%p2602_p5), %v7254_v53  ;;  %v4429_v38 = vld [vmem:[#allocation12 + $0x8] sm:$0xff] (%p2602_p5) }
 0x3bf   : > { %v6823_v11 = vpack.c.bf16 (%p2602_p5), %v4429_v38, %v4428_v54 }
 0x3c0   : >> { %v4106_v20 = vadd.f32 %v4091_v43, %v3944_v26  ;;  %v6346_v5 = vpop.f32.mrb[64].mxu0  ;;  %v4430_v26 = vld [vmem:[#allocation12 + $0x10] sm:$0xff] (%p2602_p5)  ;;  %v4431_v43 = vld [vmem:[#allocation12 + $0x18] sm:$0xff] (%p2602_p5) }
 0x3c1   : >> { %v4293_v33 = vadd.f32 %v6346_v5, %v4099_v4  ;;  %v6358_v35 = vpop.f32.mrb[64].mxu1  ;;  %v4222_v24 = vpop.f32.mrb[65].mxu0  ;;  %v4346_v5 = vld [vmem:[#allocation10 + $0x30] sm:$0xff] (%p2602_p5)  ;;  %6824 = vmatpush3.bf16.msra.mxu1 (%p2602_p5), %v6823_v11 }
 0x3c2   : >> { %v4297_v6 = vadd.f32 %v6358_v35, %v4103_v34  ;;  %v4258_v30 = vpop.f32.mrb[65].mxu1  ;;  %6825 = vmatprep.subr.bf16.mxu1 (%p2602_p5), %v7254_v53  ;;  %v4432_v35 = vld [vmem:[#allocation12 + $0x20] sm:$0xff] (%p2602_p5)  ;;  %v4433_v24 = vld [vmem:[#allocation12 + $0x28] sm:$0xff] (%p2602_p5) }
 0x3c3   : >> { %v4308_v63 = vadd.f32 %v5032_v32, %v4293_v33  ;;  %v6826_v33 = vpack.c.bf16 (%p2602_p5), %v4431_v43, %v4430_v26  ;;  %v4348_v30 = vld [vmem:[#allocation10 + $0x40] sm:$0xff] (%p2602_p5) }
 0x3c4   : >> { %v4312_v50 = vadd.f32 %v5032_v32, %v4297_v6  ;;  %v6349_v44 = vpop.f32.mrb[66].mxu0 }
 0x3c5   : >> { %5035 = vst.msk [vmem:[%s8920_s20 + $0x28] sm:$0xff] %vm409_vm0, %v4308_v63  ;;  %v6361_v36 = vpop.f32.mrb[66].mxu1  ;;  %v4231_v52 = vpop.f32.mrb[67].mxu0  ;;  %6827 = vmatpush3.bf16.msra.mxu1 (%p2602_p5), %v6826_v33  ;;  %v4434_v44 = vld [vmem:[#allocation12 + $0x30] sm:$0xff] (%p2602_p5) }
 0x3c6   : >> { %5039 = vst.msk [vmem:[%s8920_s20 + $0x68] sm:$0xff] %vm409_vm0, %v4312_v50  ;;  %v4294_v25 = vadd.f32 %v4231_v52, %v4100_v39  ;;  %v4267_v22 = vpop.f32.mrb[67].mxu1  ;;  %6828 = vmatprep.subr.bf16.mxu1 (%p2602_p5), %v7254_v53  ;;  %v4435_v36 = vld [vmem:[#allocation12 + $0x38] sm:$0xff] (%p2602_p5) }
 0x3c7   : >> { %v4298_v31 = vadd.f32 %v4267_v22, %v4104_v14  ;;  %v4342_v14 = vld [vmem:[#allocation10 + $0x10] sm:$0xff] (%p2602_p5)  ;;  %v4351_v22 = vld [vmem:[#allocation10 + $0x58] sm:$0xff] (%p2602_p5) }
 0x3c8   : >> { %v4309_v16 = vadd.f32 %v5032_v32, %v4294_v25  ;;  %v6352_v10 = vpop.f32.mrb[68].mxu0  ;;  %v4350_v25 = vld [vmem:[#allocation10 + $0x50] sm:$0xff] (%p2602_p5) }
 0x3c9   : >> { %v4313_v8 = vadd.f32 %v5032_v32, %v4298_v31  ;;  %v4295_v59 = vadd.f32 %v6352_v10, %v4101_v55  ;;  %v6364_v4 = vpop.f32.mrb[68].mxu1  ;;  %v4240_v7 = vpop.f32.mrb[69].mxu0  ;;  %v6832_v31 = vpack.c.bf16 (%p2602_p5), %v4435_v36, %v4434_v44  ;;  %v4437_v10 = vld [vmem:[#allocation12 + $0x48] sm:$0xff] (%p2602_p5) }
 0x3ca   : >> { %5036 = vst.msk [vmem:[%s8920_s20 + $0x30] sm:$0xff] %vm409_vm0, %v4309_v16  ;;  %v4325_v47 = vadd.f32 %v4309_v16, %v4308_v63  ;;  %v4299_v9 = vadd.f32 %v6364_v4, %v4105_v45  ;;  %v4276_v29 = vpop.f32.mrb[69].mxu1  ;;  %v4345_v45 = vld [vmem:[#allocation10 + $0x28] sm:$0xff] (%p2602_p5)  ;;  %v4436_v16 = vld [vmem:[#allocation12 + $0x40] sm:$0xff] (%p2602_p5) }
 0x3cb   : >> { %5040 = vst.msk [vmem:[%s8920_s20 + $0x70] sm:$0xff] %vm409_vm0, %v4313_v8  ;;  %v4310_v13 = vadd.f32 %v5032_v32, %v4295_v59  ;;  %v4349_v63 = vld [vmem:[#allocation10 + $0x48] sm:$0xff] (%p2602_p5)  ;;  %v4352_v59 = vld [vmem:[#allocation10 + $0x60] sm:$0xff] (%p2602_p5)  ;;  %v6835_v7 = vpack.c.bf16 (%p2602_p5), %v4437_v10, %v4436_v16 }
 0x3cc   : >> { %v4314_v39 = vadd.f32 %v5032_v32, %v4299_v9  ;;  %v6355_v56 = vpop.f32.mrb[70].mxu0  ;;  %v6811_v52 = vpack.c.bf16 (%p2602_p5), %v4349_v63, %v4348_v30  ;;  %v4353_v4 = vld [vmem:[#allocation10 + $0x68] sm:$0xff] (%p2602_p5)  ;;  %v4439_v9 = vld [vmem:[#allocation12 + $0x58] sm:$0xff] (%p2602_p5) }
 0x3cd   : >> { %5037 = vst.msk [vmem:[%s8920_s20 + $0x48] sm:$0xff] %vm409_vm0, %v4310_v13  ;;  %v4326_v12 = vadd.f32 %v4325_v47, %v4310_v13  ;;  %v6367_v2 = vpop.f32.mrb[70].mxu1  ;;  %v4249_v21 = vpop.f32.mrb[71].mxu0  ;;  %v4438_v47 = vld [vmem:[#allocation12 + $0x50] sm:$0xff] (%p2602_p5)  ;;  %v6817_v29 = vpack.c.bf16 (%p2602_p5), %v4353_v4, %v4352_v59 }
 0x3ce   : >> { %5041 = vst.msk [vmem:[%s8920_s20 + $0x88] sm:$0xff] %vm409_vm0, %v4314_v39  ;;  %v4296_v61 = vadd.f32 %v4249_v21, %v4102_v40  ;;  %v4285_v55 = vpop.f32.mrb[71].mxu1  ;;  %v4354_v13 = vld [vmem:[#allocation10 + $0x70] sm:$0xff] (%p2602_p5)  ;;  %v6838_v56 = vpack.c.bf16 (%p2602_p5), %v4439_v9, %v4438_v47  ;;  %v4441_v2 = vld [vmem:[#allocation12 + $0x68] sm:$0xff] (%p2602_p5) }
 0x3cf   : >> { %v4300_v58 = vadd.f32 %v4285_v55, %v4106_v20  ;;  %v6805_v20 = vpack.c.bf16 (%p2602_p5), %v4345_v45, %v4344_v19 }
 0x3d0   : >> { %v4311_v15 = vadd.f32 %v5032_v32, %v4296_v61 }
 0x3d1   : >> { %v4315_v37 = vadd.f32 %v5032_v32, %v4300_v58  ;;  %v4347_v32 = vld [vmem:[#allocation10 + $0x38] sm:$0xff] (%p2602_p5)  ;;  %v4442_v58 = vld [vmem:[#allocation12 + $0x70] sm:$0xff] (%p2602_p5) }
 0x3d2   : >> { %5038 = vst.msk [vmem:[%s8920_s20 + $0x50] sm:$0xff] %vm409_vm0, %v4311_v15  ;;  %v4327_v18 = vadd.f32 %v4326_v12, %v4311_v15  ;;  %v6808_v6 = vpack.c.bf16 (%p2602_p5), %v4347_v32, %v4346_v5  ;;  %v4440_v12 = vld [vmem:[#allocation12 + $0x60] sm:$0xff] (%p2602_p5)  ;;  %v4443_v15 = vld [vmem:[#allocation12 + $0x78] sm:$0xff] (%p2602_p5) }
 0x3d3   : >> { %5042 = vst.msk [vmem:[%s8920_s20 + $0x90] sm:$0xff] %vm409_vm0, %v4315_v37  ;;  %v6841_v61 = vpack.c.bf16 (%p2602_p5), %v4441_v2, %v4440_v12 }
 0x3d4   : >> { %v4328_v3 = vadd.f32 %v4327_v18, %v4312_v50  ;;  %v6829_v50 = vpack.c.bf16 (%p2602_p5), %v4433_v24, %v4432_v35  ;;  %v4356_v18 = vld [vmem:[%s9070_s6] sm:$0x1] (%p2602_p5) }
 0x3d6   : >> { %v4329_v46 = vadd.f32 %v4328_v3, %v4313_v8  ;;  %6830 = vmatpush3.bf16.msra.mxu1 (%p2602_p5), %v6829_v50  ;;  %v6814_v8 = vpack.c.bf16 (%p2602_p5), %v4351_v22, %v4350_v25 }
 0x3d7   : > { %6831 = vmatprep.subr.bf16.mxu1 (%p2602_p5), %v7254_v53 }
 0x3d8   : >> { %v4330_v42 = vadd.f32 %v4329_v46, %v4314_v39  ;;  %v4355_v39 = vld [vmem:[#allocation10 + $0x78] sm:$0xff] (%p2602_p5) }
 0x3d9   : > { %v6820_v21 = vpack.c.bf16 (%p2602_p5), %v4355_v39, %v4354_v13 }
 0x3da   : >> { %v4331_v27 = vadd.f32 %v4330_v42, %v4315_v37  ;;  %6833 = vmatpush3.bf16.msra.mxu1 (%p2602_p5), %v6832_v31  ;;  %v6844_v37 = vpack.c.bf16 (%p2602_p5), %v4443_v15, %v4442_v58 }
 0x3db   : > { %6834 = vmatprep.subr.bf16.mxu1 (%p2602_p5), %v7254_v53 }
 0x3dc   : >> { %v4332_v28 = vrot.slane %v4331_v27, 4 }
 0x3de   : >> { %v4333_v60 = vadd.f32 %v4332_v28, %v4331_v27  ;;  %6836 = vmatpush3.bf16.msra.mxu1 (%p2602_p5), %v6835_v7  ;;  %v4444_v28 = vld [vmem:[%s9072_s8] sm:$0x1] (%p2602_p5) }
 0x3df   : > { %6837 = vmatprep.subr.bf16.mxu1 (%p2602_p5), %v7254_v53 }
 0x3e0   : >> { %v4334_v34 = vrot.slane %v4333_v60, 2 }
 0x3e2   : >> { %v4335_v57 = vadd.f32 %v4334_v34, %v4333_v60  ;;  %6839 = vmatpush3.bf16.msra.mxu1 (%p2602_p5), %v6838_v56 }
 0x3e3   : > { %6840 = vmatprep.subr.bf16.mxu1 (%p2602_p5), %v7254_v53 }
 0x3e4   : >> { %v4336_v0 = vrot.slane %v4335_v57, 1 }
 0x3e5   : > { %2604 = sbr.rel (!%p2602_p5) target bundleno = 586 (0x24a), region = 185 }
 0x3e6   : >> { %v4337_v62 = vadd.f32 %v4336_v0, %v4335_v57  ;;  %6842 = vmatpush3.bf16.msra.mxu1 (%p2602_p5), %v6841_v61 }
 0x3e7   : > { %6843 = vmatprep.subr.bf16.mxu1 (%p2602_p5), %v7254_v53 }
 0x3e8   : >> { %v8939_v41 = vadd.f32 %v7236_v41, %v4337_v62  }
 0x3ea   : >> { %v9138_v40 = vmov %v8939_v41  ;;  %6845 = vmatpush3.bf16.msra.mxu1 (%p2602_p5), %v6844_v37 }
 0x3eb   : >> { %v9139_v41 = vmov %v9138_v40  ;;  %v4339_v55 = vmul.f32 (%p2602_p5), 0.00390625, %v9138_v40 }
 0x3ec   : > { %v6802_v41 = vpack.c.bf16 %v4343_v49, %v4342_v14 }
 0x3ee   : > { %6803 = vmatpush3.bf16.msra.mxu0 %v6802_v41 }
 0x3ef   : > { %6804 = vmatprep.subr.bf16.mxu0 %v7254_v53 }
 0x3f2   : > { %6806 = vmatpush3.bf16.msra.mxu0 %v6805_v20 }
 0x3f3   : > { %6807 = vmatprep.subr.bf16.mxu0 %v7254_v53 }
 0x3f6   : > { %6809 = vmatpush3.bf16.msra.mxu0 %v6808_v6 }
 0x3f7   : > { %6810 = vmatprep.subr.bf16.mxu0 %v7254_v53 }
 0x3fa   : > { %6812 = vmatpush3.bf16.msra.mxu0 %v6811_v52 }
 0x3fb   : > { %6813 = vmatprep.subr.bf16.mxu0 %v7254_v53 }
 0x3fe   : > { %6815 = vmatpush3.bf16.msra.mxu0 %v6814_v8 }
 0x3ff   : > { %6816 = vmatprep.subr.bf16.mxu0 %v7254_v53 }
 0x402   : > { %6818 = vmatpush3.bf16.msra.mxu0 %v6817_v29 }
 0x403   : > { %6819 = vmatprep.subr.bf16.mxu0 %v7254_v53 }
 0x406   : > { %6821 = vmatpush3.bf16.msra.mxu0 %v6820_v21 }
 0x409   : > { %6401 = vmatmul.mubr.f32.vlgmr.msra.gmra.mrb[0].mxu0 %v4339_v55 }
 0x4dc   : > { %v4423_v3 = vpop.f32.mrb[0].mxu0 }
 0x4dd   : > { %v4424_v46 = vadd.f32 %v4423_v3, %v4356_v18  ;;  %v6402_v42 = vpop.f32.mrb[1].mxu0 }
 0x4df   : > { %v4427_v27 = vmax.f32 %v4424_v46, 0.0 }
 0x4e1   : > { %6436 = vmatmul.mubr.f32.vlgmr.msra.gmra.mrb[0].mxu1 %v4427_v27 }
 0x5b4   : > { %v4511_v60 = vpop.f32.mrb[0].mxu1 }
 0x5b5   : > { %v4512_v34 = vadd.f32 %v4511_v60, %v4444_v28  ;;  %v6437_v57 = vpop.f32.mrb[1].mxu1 }
 0x5b7   : > { %v5043_v0 = vmul.f32 -1.442695, %v4512_v34 }
 0x5b9   : > { %6992 = vpow2.f32 %v5043_v0 }
 0x5c3   : > { %v6993_v62 = vpop.eup %6992 }
 0x5c4   : > { %v4518_v40 = vadd.f32 1.0, %v6993_v62 }
 0x5c6   : > { %6994 = vrcp.f32 %v4518_v40 }
 0x5d0   : > { %v6995_v17 = vpop.eup %6994 }
 0x5d1 LB: >> { %v4551_v48 = vsub.s32 0, %v7778_v51  ;;  %s5071_s24 = sshll.u32 %s7244_s21, 7  ;;  %s5072_s19 = sshll.u32 %s7244_s21, 6  ;;  %s7244_s21 = sphi %s8972_s21, %s4526_s21  }
 0x5d2   : >> { %s8981_s17 = scalar_lea.vmem %s7541_s9, %s5072_s19 [#allocation4]  ;;  %s4672_s25 = scalar_lea.vmem [#allocation2], %s5071_s24 }
 0x5d3   : >> { %v4552_v14 = vrot.slane %v6995_v17, %v4551_v48  ;;  %v5047_v53 = vld [vmem:[%s4672_s25 + $0x28] sm:$0xff]  ;;  %v4541_v1 = vld [vmem:[%s8981_s17] sm:$0xff]  ;;  %v5048_v49 = vld [vmem:[%s4672_s25 + $0x30] sm:$0xff]  ;;  %s8987_s26 = scalar_lea.vmem %s7701_s15, %s5072_s19 [#allocation13]  ;;  %s4526_s21 = sadd.s32 1, %s7244_s21  }
 0x5d4   : >> { %v4542_v41 = vld [vmem:[%s8981_s17 + $0x8] sm:$0xff]  ;;  %v4543_v54 = vld [vmem:[%s8981_s17 + $0x10] sm:$0xff]  ;;  %v4544_v26 = vld [vmem:[%s8981_s17 + $0x18] sm:$0xff]  ;;  %p4523_p7 = scmp.ge.s32.totalorder %s4526_s21, 4  }
 0x5d5   : >> { %v4553_v23 = vmul.f32 %v5047_v53, %v4552_v14  ;;  %v4554_v19 = vmul.f32 %v5048_v49, %v4552_v14  ;;  %v5049_v45 = vld [vmem:[%s4672_s25 + $0x48] sm:$0xff]  ;;  %v5050_v11 = vld [vmem:[%s4672_s25 + $0x50] sm:$0xff]  ;;  %v4545_v33 = vld [vmem:[%s8981_s17 + $0x20] sm:$0xff]  ;;  %s5073_s22 = sshll.u32 (%p4523_p7), %s7330_s13, 12  ;;  %s9141_s18 = sld [smem:[#allocation29_spill]] (%p4523_p7) }
 0x5d6   : >> { %v4555_v38 = vmul.f32 %v5049_v45, %v4552_v14  ;;  %v5051_v43 = vld [vmem:[%s4672_s25 + $0x68] sm:$0xff]  ;;  %v4556_v32 = vmul.f32 %v5050_v11, %v4552_v14  ;;  %v5052_v24 = vld [vmem:[%s4672_s25 + $0x70] sm:$0xff]  ;;  %v4548_v31 = vld [vmem:[%s8981_s17 + $0x38] sm:$0xff]  ;;  %s4592_s23 = sshll.u32 (%p4523_p7), %s7701_s15, 4  ;;  %s4579_s24 = scalar_lea.sflag (%p4523_p7), [#allocation6], %s7535_s30  ;;  %s9020_s23 = int_to_ptr.vmem [resolvable:$true] %s4592_s23 }
 0x5d7   : >> { %v4561_v20 = vadd.f32 %v4553_v23, %v4541_v1  ;;  %v4562_v5 = vadd.f32 %v4554_v19, %v4542_v41  ;;  %v4557_v35 = vmul.f32 %v5051_v43, %v4552_v14  ;;  %v4546_v6 = vld [vmem:[%s8981_s17 + $0x28] sm:$0xff]  ;;  %v4558_v63 = vmul.f32 %v5052_v24, %v4552_v14  ;;  %v4547_v44 = vld [vmem:[%s8981_s17 + $0x30] sm:$0xff]  ;;  %4525 = sbr.rel (!%p4523_p7) target bundleno = 1489 (0x5d1), region = 196  ;;  %s7138_s19 = scalar_lea.vmem (%p4523_p7), %s9020_s23, 4096 }
 0x5d8   : >> { %v4563_v30 = vadd.f32 %v4555_v38, %v4543_v54  ;;  %v5053_v50 = vld [vmem:[%s4672_s25 + $0x88] sm:$0xff]  ;;  %v5054_v36 = vld [vmem:[%s4672_s25 + $0x90] sm:$0xff]  ;;  %v4564_v52 = vadd.f32 %v4556_v32, %v4544_v26  ;;  %p7139_p12 = scmp.ne.s32.totalorder (%p4523_p7), %s9020_s23, %s7138_s19  ;;  %s7256_s9 = smov (%p4523_p7), [#allocation13]  }
 0x5d9   : >> { %4570 = vst.msk [vmem:[%s8987_s26] sm:$0xff] %vm409_vm0, %v4561_v20  ;;  %4571 = vst.msk [vmem:[%s8987_s26 + $0x8] sm:$0xff] %vm409_vm0, %v4562_v5  ;;  %v4565_v25 = vadd.f32 %v4557_v35, %v4545_v33  ;;  %v4559_v22 = vmul.f32 %v5053_v50, %v4552_v14  ;;  %v4560_v16 = vmul.f32 %v5054_v36, %v4552_v14  ;;  %s7142_s21 = sshll.u32 (%p4523_p7), %s7256_s9, 4  ;;  %s7143_s21 = int_to_ptr.vmem [resolvable:$false] %s7142_s21 }
 0x5da   : >> { %4572 = vst.msk [vmem:[%s8987_s26 + $0x10] sm:$0xff] %vm409_vm0, %v4563_v30  ;;  %v4566_v10 = vadd.f32 %v4558_v63, %v4546_v6  ;;  %4573 = vst.msk [vmem:[%s8987_s26 + $0x18] sm:$0xff] %vm409_vm0, %v4564_v52  ;;  %p7140_p1 = pnand (%p4523_p7), %p7139_p12, %p7480_p10  ;;  %s7144_s13 = scalar_lea.vmem (%p4523_p7), %s7143_s21, 8192 }
 0x5db   : >> { %4574 = vst.msk [vmem:[%s8987_s26 + $0x20] sm:$0xff] %vm409_vm0, %v4565_v25  ;;  %v4567_v8 = vadd.f32 %v4559_v22, %v4547_v44  ;;  %v4568_v59 = vadd.f32 %v4560_v16, %v4548_v31  ;;  %s9017_s16 = scalar_lea.hbm (%p4523_p7), %s9141_s18, %s5073_s22  ;;  %p7145_p13 = scmp.lt.s32.totalorder (%p4523_p7), %s9020_s23, %s7143_s21 }
 0x5dc   : >> { %4575 = vst.msk [vmem:[%s8987_s26 + $0x28] sm:$0xff] %vm409_vm0, %v4566_v10  ;;  %p7141_p2 = pneg (%p4523_p7), %p7140_p1  ;;  %p7146_p9 = scmp.lt.s32.totalorder (%p4523_p7), %s7144_s13, %s7138_s19 }
 0x5dd   : >> { %4576 = vst.msk [vmem:[%s8987_s26 + $0x30] sm:$0xff] %vm409_vm0, %v4567_v8  ;;  %4577 = vst.msk [vmem:[%s8987_s26 + $0x38] sm:$0xff] %vm409_vm0, %v4568_v59 }
 0x5de   : > { %p7147_p0 = por %p7146_p9, %p7145_p13 }
 0x5e0   : > { %p7148_p11 = pnand %p7147_p0, %p7141_p2 }
 0x5e2   : > { %7151 = shalt.err (!%p7148_p11)
}
 0x5e3   : > { %s7152_s15 = scalar_lea.hbm %s9017_s16, 4096  ;;  %s7156_s26 = scalar_lea.hbm %s9141_s18, 8192 }
 0x5e4   : > { %p7153_p4 = scmp.ne.s32.totalorder %s9017_s16, %s7152_s15  ;;  %p7157_p3 = scmp.lt.u32.totalorder %s9017_s16, %s9141_s18 }
 0x5e5   : > { %p7158_p5 = scmp.lt.u32.totalorder %s7156_s26, %s7152_s15  ;;  %p7160_p12 = scmp.lt.u32.totalorder %s7152_s15, %s9017_s16 }
 0x5e6   : > { %p7154_p8 = pnand %p7153_p4, %p7480_p10 }
 0x5e7   : > { %p7159_p7 = por %p7158_p5, %p7157_p3 }
 0x5e8   : > { %p7155_p6 = pneg %p7154_p8 }
 0x5e9   : > { %p7161_p1 = por %p7160_p12, %p7159_p7 }
 0x5eb   : > { %p7162_p2 = pnand %p7161_p1, %p7155_p6 }
 0x5ed   : > { %7165 = shalt.err (!%p7162_p2)
}
 0x5ee   : > { %s7257_s29 = smov 128   ;;  %s7258_s19 = smov 8  }
 0x5ef   : > { %6884 = dma.vmem_to_hbm [thread:$0]  (%p7480_p10), %s9020_s23, 4096, %s9017_s16, %s4579_s24, %s7257_s29, %s7257_s29, %s7258_s19  }
 0x5f0 PF: > { %s9142_s9 = sld [smem:[#allocation18_spill]]  ;;  %s9143_s21 = sld [smem:[#allocation19_spill]] }
 0x5f1   : > { %p9145_p9 = scmp.ge.s32.totalorder %s7228_s12, 2 }
 0x5f6   : > { %s4607_s13 = sand.u32 1, %s9142_s9   ;;  %p9144_p13 = scmp.ne.s32.totalorder %s9143_s21, 0 }
 0x5f7   : > { %s4608_s15 = scalar_lea.sflag [#allocation6], %s4607_s13 }
 0x5f8   : > { %p6904_p0 = pnand %p9145_p9, %p9144_p13 }
 0x5fa   : > { %7211 = dma.done.wait (!%p6904_p0), %s4608_s15, 4096  }
 0x5fb   : > { %7213 = vsyncadd (!%p6904_p0), %s4608_s15, 4294963200  ;;  %p24_p11 = scmp.ge.s32.totalorder %s7470_s14, 4   ;;  %s9146_s30 = smov %s7220_s10 }
 0x5fc   : > { %s9147_s10 = smov %s7224_s11  ;;  %s9148_s11 = smov %s7486_s28 }
 0x5fd   : > { %s9149_s12 = smov %s7470_s14  ;;  %26 = sbr.rel (!%p24_p11) target bundleno = 9 (0x9), region = 207 }
 0x604   :  { %4613 = vsyncpa [#allocation5], 1 }
 0x605   :  { %4615 = vsyncpa [#allocation5 + $0x1], 1 }
 0x606   :  { %4616 = vsyncpa [#allocation8], 1 }
 0x607   :  { %4617 = vsyncpa [#allocation11], 1 }
 0x608   :  { %4618 = vsyncpa [#allocation6], 1 }
 0x609   :  { %4620 = vsyncpa [#allocation6 + $0x1], 1 }

</bundles_post_ra>
